<compile_context>
chip_gen: v7x
topology: tpu7x:2x2x1
jax: 0.10.0
libtpu: 0.0.40
codegen_flags: <defaults>
</compile_context>

<pallas_src>
import functools

import jax
import jax.numpy as jnp
from jax.experimental import pallas as pl
from jax.experimental.pallas import tpu as pltpu


# -----------------------------------------------------------------------------
# Pallas kernel
# -----------------------------------------------------------------------------
def _signnet2_kernel(nl_phi,
                     x_ref, m_ref,          # [TN, K] data / mask tiles
                     vec_ref,               # [2, 2*nl_phi+1, H] packed per-branch vectors
                     wh_ref,                # [2, max(nl_phi-1,1), H, H] hidden weights (BN-folded)
                     wout_ref,              # [H, H] (BN-scale folded)
                     shift_ref,             # [1, H]  output BN shift
                     o_ref):                # [TN, H]
    x3 = x_ref[...][:, :, None]             # [TN, K, 1]
    m3 = m_ref[...][:, :, None]             # [TN, K, 1]
    TN, K = x_ref.shape
    H = wout_ref.shape[0]

    # vec row layout per branch: [w1'; b1'; bh'(0..L-2); sh(0..L-1)]
    OFF_W1, OFF_B1, OFF_BH = 0, 1, 2
    OFF_SH = nl_phi + 1

    def branch_sum(br):
        vec = vec_ref[br]                                   # [2L+1, H]
        row = lambda r: vec[r:r + 1][None]                  # [1, 1, H]

        # Layer 0: Linear(1, H) as outer product; BN scale folded into w1/b1,
        # neg-branch sign folded into its w1.
        h = x3 * row(OFF_W1) + row(OFF_B1)                  # [TN, K, H]
        h = h * m3 + row(OFF_SH)                            # post-linear mask + folded BN shift
        h = jnp.maximum(h, 0.0)
        # Post-ReLU mask dropped: next layer's post-linear mask / final mask re-zeroes those rows.

        # Layers 1 .. nl_phi-1: Linear(H, H). H is a multiple of 128, so the reshape is
        # layout-free and the dot is a lane-dense 2-D MXU matmul.
        for l in range(nl_phi - 1):
            hw = jnp.dot(h.reshape(TN * K, H), wh_ref[br, l],
                         preferred_element_type=jnp.float32).reshape(TN, K, H)
            h = hw + row(OFF_BH + l)
            h = h * m3 + row(OFF_SH + l + 1)
            h = jnp.maximum(h, 0.0)

        # Final mask before the eigenvector-axis reduction.
        return jnp.sum(h * m3, axis=1)                      # [TN, H]

    # Reduce each branch to [TN, H] before combining -> only one [TN,K,H] live at a time.
    s = branch_sum(0) + branch_sum(1)                       # sign invariant

    y = jnp.dot(s, wout_ref[...], preferred_element_type=jnp.float32)   # Linear(H,H,bias=False)*scale
    o_ref[...] = y + shift_ref[...]                         # folded BatchNorm1d shift (eval)


# -----------------------------------------------------------------------------
# Wrapper: packs / folds / pads parameters, pads N to the tile, calls pallas_call
# -----------------------------------------------------------------------------
def signnet2_forward(x_dense, mask, params, *, nl_phi, tile_n=256):
    N, K = x_dense.shape
    H = params["w1_pos"].shape[1]
    H_pad = max(128, ((H + 127) // 128) * 128)              # lane-dense hidden width
    L = nl_phi

    tile_n = min(tile_n, max(8, ((N + 7) // 8) * 8))        # don't over-pad tiny inputs
    N_pad = pl.cdiv(N, tile_n) * tile_n

    # --- pad node dimension; padded rows are fully masked (mask = 0) -----------------
    if N_pad != N:
        x_dense = jnp.pad(x_dense, ((0, N_pad - N), (0, 0)))
        mask = jnp.pad(mask, ((0, N_pad - N), (0, 0)))

    def pad_last(a):
        return jnp.pad(a, [(0, 0)] * (a.ndim - 1) + [(0, H_pad - H)])

    # --- pack per-branch vectors (BN scale folded): [w1'; b1'; bh'(0..L-2); sh(0..L-1)] ---
    def pack_branch(w1, b1, bh, sc, sh, negate_w1):
        sc_f = sc.reshape(L, H)                              # folded BN scale per layer
        sh_f = sh.reshape(L, H)
        w1f = (-w1 if negate_w1 else w1).reshape(1, H) * sc_f[0:1]   # fold -x and sc0 into w1
        b1f = b1.reshape(1, H) * sc_f[0:1]
        rows = [w1f, b1f]
        if L > 1:
            rows.append(bh.reshape(L - 1, H) * sc_f[1:])
        rows.append(sh_f)
        return pad_last(jnp.concatenate(rows, axis=0).astype(jnp.float32))

    vec = jnp.stack([
        pack_branch(params["w1_pos"], params["b1_pos"], params["bh_pos"],
                    params["sc_pos"], params["sh_pos"], negate_w1=False),
        pack_branch(params["w1_neg"], params["b1_neg"], params["bh_neg"],
                    params["sc_neg"], params["sh_neg"], negate_w1=True),
    ])                                                      # [2, 2L+1, H_pad]

    def fold_pad_hidden(wh_b, sc):                           # [L-1,H,H] -> [L-1,H_pad,H_pad]
        sc_f = sc.reshape(L, H)[1:].reshape(L - 1, 1, H)     # scale output columns
        w = (wh_b * sc_f).astype(jnp.float32)
        return jnp.pad(w, ((0, 0), (0, H_pad - H), (0, H_pad - H)))

    if L > 1:
        wh = jnp.stack([fold_pad_hidden(params["wh_pos"], params["sc_pos"]),
                        fold_pad_hidden(params["wh_neg"], params["sc_neg"])])
    else:
        wh = jnp.zeros((2, 1, H_pad, H_pad), jnp.float32)    # unused dummy

    w_out = (params["w_out"].astype(jnp.float32)
             * params["out_scale"].reshape(1, H).astype(jnp.float32))   # fold BN scale
    w_out = jnp.pad(w_out, ((0, H_pad - H), (0, H_pad - H)))
    shift = pad_last(params["out_shift"].reshape(1, H).astype(jnp.float32))   # [1, H_pad]

    # --- specs ------------------------------------------------------------------------
    def full_spec(a):
        nd = a.ndim
        return pl.BlockSpec(a.shape, lambda i, nd=nd: (0,) * nd)

    in_specs = [
        pl.BlockSpec((tile_n, K), lambda i: (i, 0)),        # x tile
        pl.BlockSpec((tile_n, K), lambda i: (i, 0)),        # mask tile
        full_spec(vec), full_spec(wh), full_spec(w_out), full_spec(shift),
    ]
    out_spec = pl.BlockSpec((tile_n, H_pad), lambda i: (i, 0))

    kernel = functools.partial(_signnet2_kernel, nl_phi)

    y = pl.pallas_call(
        kernel,
        out_shape=jax.ShapeDtypeStruct((N_pad, H_pad), jnp.float32),
        grid=(N_pad // tile_n,),
        in_specs=in_specs,
        out_specs=out_spec,
        compiler_params=pltpu.CompilerParams(dimension_semantics=("parallel",)),
    )(x_dense, mask, vec, wh, w_out, shift)

    return y[:N, :H]


# -----------------------------------------------------------------------------
# Deterministic parameter init (synthetic; shapes follow the module's __init__)
# -----------------------------------------------------------------------------
def init_params(key, n_hid, nl_phi, eps=1e-5):
    H = n_hid
    keys = iter(jax.random.split(key, 64))
    nk = lambda: next(keys)

    def fold_bn(nlayers):
        gamma = jax.random.uniform(nk(), (nlayers, 1, H), minval=0.5, maxval=1.5)
        beta = jax.random.normal(nk(), (nlayers, 1, H)) * 0.1
        mean = jax.random.normal(nk(), (nlayers, 1, H)) * 0.1
        var = jax.random.uniform(nk(), (nlayers, 1, H), minval=0.5, maxval=1.5)
        sc = gamma / jnp.sqrt(var + eps)
        sh = beta - mean * sc
        return sc.astype(jnp.float32), sh.astype(jnp.float32)

    def mlp_params():
        w1 = jax.random.normal(nk(), (1, H))                                # Linear(1, H).weight.T
        b1 = jax.random.normal(nk(), (1, H)) * 0.1
        wh = jax.random.normal(nk(), (nl_phi - 1, H, H)) / jnp.sqrt(H)       # Linear(H, H).weight.T
        bh = jax.random.normal(nk(), (nl_phi - 1, 1, H)) * 0.1
        sc, sh = fold_bn(nl_phi)
        return (w1.astype(jnp.float32), b1.astype(jnp.float32),
                wh.astype(jnp.float32), bh.astype(jnp.float32), sc, sh)

    w1p, b1p, whp, bhp, scp, shp = mlp_params()
    w1n, b1n, whn, bhn, scn, shn = mlp_params()

    w_out = (jax.random.normal(nk(), (H, H)) / jnp.sqrt(H)).astype(jnp.float32)
    osc3, osh3 = fold_bn(1)
    out_scale, out_shift = osc3[0], osh3[0]          # [1, H]

    return dict(
        w1_pos=w1p, b1_pos=b1p, wh_pos=whp, bh_pos=bhp, sc_pos=scp, sh_pos=shp,
        w1_neg=w1n, b1_neg=b1n, wh_neg=whn, bh_neg=bhn, sc_neg=scn, sh_neg=shn,
        w_out=w_out, out_scale=out_scale, out_shift=out_shift,
    )


# -----------------------------------------------------------------------------
# Glue: dense eigenvector features + per-node validity mask (to_dense_list_EVD + scatter)
# -----------------------------------------------------------------------------
def build_dense_inputs(key, graph_sizes, max_eigenvectors):
    K = max_eigenvectors
    xs, ms = [], []
    gkeys = jax.random.split(key, len(graph_sizes))
    for gkey, n_g in zip(gkeys, graph_sizes):
        V = jax.random.normal(gkey, (n_g, n_g), dtype=jnp.float32)  # per-node eigenvector rows
        row = V[:, :K]
        if n_g < K:
            row = jnp.pad(row, ((0, 0), (0, K - n_g)))
        mask_row = (jnp.arange(K) < n_g).astype(jnp.float32)
        xs.append(row)
        ms.append(jnp.tile(mask_row[None, :], (n_g, 1)))
    return jnp.concatenate(xs, axis=0), jnp.concatenate(ms, axis=0)


# -----------------------------------------------------------------------------
# Plain-JAX reference (for validation)
# -----------------------------------------------------------------------------
def reference_forward(x_dense, mask, params, nl_phi):
    m3 = mask[:, :, None]

    def mlp(xin, w1, b1, wh, bh, sc, sh):
        h = xin[:, :, None] * w1[None] + b1[None]
        h = h * m3
        h = h * sc[0][None] + sh[0][None]
        h = jnp.maximum(h, 0.0) * m3
        for l in range(nl_phi - 1):
            h = jnp.einsum("nkh,hg->nkg", h, wh[l]) + bh[l][None]
            h = h * m3
            h = h * sc[l + 1][None] + sh[l + 1][None]
            h = jnp.maximum(h, 0.0) * m3
        return h

    hp = mlp(x_dense, params["w1_pos"], params["b1_pos"], params["wh_pos"],
             params["bh_pos"], params["sc_pos"], params["sh_pos"])
    hn = mlp(-x_dense, params["w1_neg"], params["b1_neg"], params["wh_neg"],
             params["bh_neg"], params["sc_neg"], params["sh_neg"])
    s = jnp.sum(hp + hn, axis=1)
    y = s @ params["w_out"]
    return y * params["out_scale"] + params["out_shift"]


# -----------------------------------------------------------------------------
if __name__ == "__main__":
    n_hid = 32
    nl_phi = 3
    max_eigenvectors = 16          # module default is 35; small shape for the demo
    graph_sizes = [12, 20]         # graph 0 needs padding+mask, graph 1 is truncated

    key = jax.random.PRNGKey(0)
    k_data, k_param = jax.random.split(key)

    x_dense, mask = build_dense_inputs(k_data, graph_sizes, max_eigenvectors)
    params = init_params(k_param, n_hid, nl_phi)

    out = signnet2_forward(x_dense, mask, params, nl_phi=nl_phi, tile_n=256)
    out = jax.block_until_ready(out)

    ref = reference_forward(x_dense, mask, params, nl_phi)
    assert out.shape == (sum(graph_sizes), n_hid)
    assert jnp.allclose(out, ref, atol=1e-4, rtol=1e-4), "Pallas kernel mismatch vs reference"

    print("KERNEL_OK")
</pallas_src>

<mosaic_0001>
module attributes {stable_mosaic.version = 11 : i64} {
  func.func @_signnet2_kernel(%arg0: i32, %arg1: memref<32x16xf32, #tpu.memory_space<vmem>>, %arg2: memref<32x16xf32, #tpu.memory_space<vmem>>, %arg3: memref<2x7x128xf32, #tpu.memory_space<vmem>>, %arg4: memref<2x2x128x128xf32, #tpu.memory_space<vmem>>, %arg5: memref<128x128xf32, #tpu.memory_space<vmem>>, %arg6: memref<1x128xf32, #tpu.memory_space<vmem>>, %arg7: memref<32x128xf32, #tpu.memory_space<vmem>>) attributes {dimension_semantics = [#tpu.dimension_semantics<parallel>], iteration_bounds = array<i64: 1>, scalar_prefetch = 0 : i64, scratch_operands = 0 : i64, tpu.core_type = #tpu.core_type<tc>, window_params = [{transform_indices = @transform_0, window_bounds = array<i64: 32, 16>}, {transform_indices = @transform_1, window_bounds = array<i64: 32, 16>}, {pipeline_mode = #tpu.pipeline_mode<synchronous>, transform_indices = @transform_2, window_bounds = array<i64: 2, 7, 128>}, {pipeline_mode = #tpu.pipeline_mode<synchronous>, transform_indices = @transform_3, window_bounds = array<i64: 2, 2, 128, 128>}, {pipeline_mode = #tpu.pipeline_mode<synchronous>, transform_indices = @transform_4, window_bounds = array<i64: 128, 128>}, {pipeline_mode = #tpu.pipeline_mode<synchronous>, transform_indices = @transform_5, window_bounds = array<i64: 1, 128>}, {transform_indices = @transform_6, window_bounds = array<i64: 32, 128>}]} {
    %c0 = arith.constant 0 : index
    %c0_0 = arith.constant 0 : index
    %0 = vector.load %arg1[%c0, %c0_0] : memref<32x16xf32, #tpu.memory_space<vmem>>, vector<32x16xf32>
    %1 = vector.shape_cast %0 : vector<32x16xf32> to vector<32x16x1xf32>
    %c0_1 = arith.constant 0 : index
    %c0_2 = arith.constant 0 : index
    %2 = vector.load %arg2[%c0_1, %c0_2] : memref<32x16xf32, #tpu.memory_space<vmem>>, vector<32x16xf32>
    %3 = vector.shape_cast %2 : vector<32x16xf32> to vector<32x16x1xf32>
    %c0_3 = arith.constant 0 : index
    %c0_4 = arith.constant 0 : index
    %c0_5 = arith.constant 0 : index
    %4 = vector.load %arg3[%c0_3, %c0_4, %c0_5] : memref<2x7x128xf32, #tpu.memory_space<vmem>>, vector<1x7x128xf32>
    %5 = vector.shape_cast %4 : vector<1x7x128xf32> to vector<7x128xf32>
    %6 = vector.extract_strided_slice %5 {offsets = [0, 0], sizes = [1, 128], strides = [1, 1]} : vector<7x128xf32> to vector<1x128xf32>
    %7 = vector.shape_cast %6 : vector<1x128xf32> to vector<1x1x128xf32>
    %8 = vector.broadcast %1 : vector<32x16x1xf32> to vector<32x16x128xf32>
    %9 = vector.broadcast %7 : vector<1x1x128xf32> to vector<32x16x128xf32>
    %10 = arith.mulf %8, %9 : vector<32x16x128xf32>
    %11 = vector.extract_strided_slice %5 {offsets = [1, 0], sizes = [1, 128], strides = [1, 1]} : vector<7x128xf32> to vector<1x128xf32>
    %12 = vector.shape_cast %11 : vector<1x128xf32> to vector<1x1x128xf32>
    %13 = vector.broadcast %12 : vector<1x1x128xf32> to vector<32x16x128xf32>
    %14 = arith.addf %10, %13 : vector<32x16x128xf32>
    %15 = vector.broadcast %3 : vector<32x16x1xf32> to vector<32x16x128xf32>
    %16 = arith.mulf %14, %15 : vector<32x16x128xf32>
    %17 = vector.extract_strided_slice %5 {offsets = [4, 0], sizes = [1, 128], strides = [1, 1]} : vector<7x128xf32> to vector<1x128xf32>
    %18 = vector.shape_cast %17 : vector<1x128xf32> to vector<1x1x128xf32>
    %19 = vector.broadcast %18 : vector<1x1x128xf32> to vector<32x16x128xf32>
    %20 = arith.addf %16, %19 : vector<32x16x128xf32>
    %cst = arith.constant 0.000000e+00 : f32
    %21 = vector.broadcast %cst : f32 to vector<32x16x128xf32>
    %22 = arith.maximumf %20, %21 : vector<32x16x128xf32>
    %23 = vector.shape_cast %22 : vector<32x16x128xf32> to vector<512x128xf32>
    %c0_6 = arith.constant 0 : index
    %c0_7 = arith.constant 0 : index
    %c0_8 = arith.constant 0 : index
    %c0_9 = arith.constant 0 : index
    %24 = vector.load %arg4[%c0_6, %c0_7, %c0_8, %c0_9] : memref<2x2x128x128xf32, #tpu.memory_space<vmem>>, vector<1x1x128x128xf32>
    %25 = vector.shape_cast %24 : vector<1x1x128x128xf32> to vector<128x128xf32>
    %cst_10 = arith.constant dense<0.000000e+00> : vector<512x128xf32>
    %26 = tpu.matmul %23, %25, %cst_10 {dimension_numbers = #tpu.dot_dimension_numbers<[1], [0], [0], [1], [0, 0, 1, 1], [], []>} : vector<512x128xf32>, vector<128x128xf32>, vector<512x128xf32> -> vector<512x128xf32>
    %27 = vector.shape_cast %26 : vector<512x128xf32> to vector<32x16x128xf32>
    %28 = vector.extract_strided_slice %5 {offsets = [2, 0], sizes = [1, 128], strides = [1, 1]} : vector<7x128xf32> to vector<1x128xf32>
    %29 = vector.shape_cast %28 : vector<1x128xf32> to vector<1x1x128xf32>
    %30 = vector.broadcast %29 : vector<1x1x128xf32> to vector<32x16x128xf32>
    %31 = arith.addf %27, %30 : vector<32x16x128xf32>
    %32 = vector.broadcast %3 : vector<32x16x1xf32> to vector<32x16x128xf32>
    %33 = arith.mulf %31, %32 : vector<32x16x128xf32>
    %34 = vector.extract_strided_slice %5 {offsets = [5, 0], sizes = [1, 128], strides = [1, 1]} : vector<7x128xf32> to vector<1x128xf32>
    %35 = vector.shape_cast %34 : vector<1x128xf32> to vector<1x1x128xf32>
    %36 = vector.broadcast %35 : vector<1x1x128xf32> to vector<32x16x128xf32>
    %37 = arith.addf %33, %36 : vector<32x16x128xf32>
    %cst_11 = arith.constant 0.000000e+00 : f32
    %38 = vector.broadcast %cst_11 : f32 to vector<32x16x128xf32>
    %39 = arith.maximumf %37, %38 : vector<32x16x128xf32>
    %40 = vector.shape_cast %39 : vector<32x16x128xf32> to vector<512x128xf32>
    %c0_12 = arith.constant 0 : index
    %c1 = arith.constant 1 : index
    %c0_13 = arith.constant 0 : index
    %c0_14 = arith.constant 0 : index
    %41 = vector.load %arg4[%c0_12, %c1, %c0_13, %c0_14] : memref<2x2x128x128xf32, #tpu.memory_space<vmem>>, vector<1x1x128x128xf32>
    %42 = vector.shape_cast %41 : vector<1x1x128x128xf32> to vector<128x128xf32>
    %cst_15 = arith.constant dense<0.000000e+00> : vector<512x128xf32>
    %43 = tpu.matmul %40, %42, %cst_15 {dimension_numbers = #tpu.dot_dimension_numbers<[1], [0], [0], [1], [0, 0, 1, 1], [], []>} : vector<512x128xf32>, vector<128x128xf32>, vector<512x128xf32> -> vector<512x128xf32>
    %44 = vector.shape_cast %43 : vector<512x128xf32> to vector<32x16x128xf32>
    %45 = vector.extract_strided_slice %5 {offsets = [3, 0], sizes = [1, 128], strides = [1, 1]} : vector<7x128xf32> to vector<1x128xf32>
    %46 = vector.shape_cast %45 : vector<1x128xf32> to vector<1x1x128xf32>
    %47 = vector.broadcast %46 : vector<1x1x128xf32> to vector<32x16x128xf32>
    %48 = arith.addf %44, %47 : vector<32x16x128xf32>
    %49 = vector.broadcast %3 : vector<32x16x1xf32> to vector<32x16x128xf32>
    %50 = arith.mulf %48, %49 : vector<32x16x128xf32>
    %51 = vector.extract_strided_slice %5 {offsets = [6, 0], sizes = [1, 128], strides = [1, 1]} : vector<7x128xf32> to vector<1x128xf32>
    %52 = vector.shape_cast %51 : vector<1x128xf32> to vector<1x1x128xf32>
    %53 = vector.broadcast %52 : vector<1x1x128xf32> to vector<32x16x128xf32>
    %54 = arith.addf %50, %53 : vector<32x16x128xf32>
    %cst_16 = arith.constant 0.000000e+00 : f32
    %55 = vector.broadcast %cst_16 : f32 to vector<32x16x128xf32>
    %56 = arith.maximumf %54, %55 : vector<32x16x128xf32>
    %57 = vector.broadcast %3 : vector<32x16x1xf32> to vector<32x16x128xf32>
    %58 = arith.mulf %56, %57 : vector<32x16x128xf32>
    %cst_17 = arith.constant dense<0.000000e+00> : vector<32x128xf32>
    %59 = vector.multi_reduction <add>, %58, %cst_17 [1] : vector<32x16x128xf32> to vector<32x128xf32>
    %c1_18 = arith.constant 1 : index
    %c0_19 = arith.constant 0 : index
    %c0_20 = arith.constant 0 : index
    %60 = vector.load %arg3[%c1_18, %c0_19, %c0_20] : memref<2x7x128xf32, #tpu.memory_space<vmem>>, vector<1x7x128xf32>
    %61 = vector.shape_cast %60 : vector<1x7x128xf32> to vector<7x128xf32>
    %62 = vector.extract_strided_slice %61 {offsets = [0, 0], sizes = [1, 128], strides = [1, 1]} : vector<7x128xf32> to vector<1x128xf32>
    %63 = vector.shape_cast %62 : vector<1x128xf32> to vector<1x1x128xf32>
    %64 = vector.broadcast %1 : vector<32x16x1xf32> to vector<32x16x128xf32>
    %65 = vector.broadcast %63 : vector<1x1x128xf32> to vector<32x16x128xf32>
    %66 = arith.mulf %64, %65 : vector<32x16x128xf32>
    %67 = vector.extract_strided_slice %61 {offsets = [1, 0], sizes = [1, 128], strides = [1, 1]} : vector<7x128xf32> to vector<1x128xf32>
    %68 = vector.shape_cast %67 : vector<1x128xf32> to vector<1x1x128xf32>
    %69 = vector.broadcast %68 : vector<1x1x128xf32> to vector<32x16x128xf32>
    %70 = arith.addf %66, %69 : vector<32x16x128xf32>
    %71 = vector.broadcast %3 : vector<32x16x1xf32> to vector<32x16x128xf32>
    %72 = arith.mulf %70, %71 : vector<32x16x128xf32>
    %73 = vector.extract_strided_slice %61 {offsets = [4, 0], sizes = [1, 128], strides = [1, 1]} : vector<7x128xf32> to vector<1x128xf32>
    %74 = vector.shape_cast %73 : vector<1x128xf32> to vector<1x1x128xf32>
    %75 = vector.broadcast %74 : vector<1x1x128xf32> to vector<32x16x128xf32>
    %76 = arith.addf %72, %75 : vector<32x16x128xf32>
    %cst_21 = arith.constant 0.000000e+00 : f32
    %77 = vector.broadcast %cst_21 : f32 to vector<32x16x128xf32>
    %78 = arith.maximumf %76, %77 : vector<32x16x128xf32>
    %79 = vector.shape_cast %78 : vector<32x16x128xf32> to vector<512x128xf32>
    %c1_22 = arith.constant 1 : index
    %c0_23 = arith.constant 0 : index
    %c0_24 = arith.constant 0 : index
    %c0_25 = arith.constant 0 : index
    %80 = vector.load %arg4[%c1_22, %c0_23, %c0_24, %c0_25] : memref<2x2x128x128xf32, #tpu.memory_space<vmem>>, vector<1x1x128x128xf32>
    %81 = vector.shape_cast %80 : vector<1x1x128x128xf32> to vector<128x128xf32>
    %cst_26 = arith.constant dense<0.000000e+00> : vector<512x128xf32>
    %82 = tpu.matmul %79, %81, %cst_26 {dimension_numbers = #tpu.dot_dimension_numbers<[1], [0], [0], [1], [0, 0, 1, 1], [], []>} : vector<512x128xf32>, vector<128x128xf32>, vector<512x128xf32> -> vector<512x128xf32>
    %83 = vector.shape_cast %82 : vector<512x128xf32> to vector<32x16x128xf32>
    %84 = vector.extract_strided_slice %61 {offsets = [2, 0], sizes = [1, 128], strides = [1, 1]} : vector<7x128xf32> to vector<1x128xf32>
    %85 = vector.shape_cast %84 : vector<1x128xf32> to vector<1x1x128xf32>
    %86 = vector.broadcast %85 : vector<1x1x128xf32> to vector<32x16x128xf32>
    %87 = arith.addf %83, %86 : vector<32x16x128xf32>
    %88 = vector.broadcast %3 : vector<32x16x1xf32> to vector<32x16x128xf32>
    %89 = arith.mulf %87, %88 : vector<32x16x128xf32>
    %90 = vector.extract_strided_slice %61 {offsets = [5, 0], sizes = [1, 128], strides = [1, 1]} : vector<7x128xf32> to vector<1x128xf32>
    %91 = vector.shape_cast %90 : vector<1x128xf32> to vector<1x1x128xf32>
    %92 = vector.broadcast %91 : vector<1x1x128xf32> to vector<32x16x128xf32>
    %93 = arith.addf %89, %92 : vector<32x16x128xf32>
    %cst_27 = arith.constant 0.000000e+00 : f32
    %94 = vector.broadcast %cst_27 : f32 to vector<32x16x128xf32>
    %95 = arith.maximumf %93, %94 : vector<32x16x128xf32>
    %96 = vector.shape_cast %95 : vector<32x16x128xf32> to vector<512x128xf32>
    %c1_28 = arith.constant 1 : index
    %c1_29 = arith.constant 1 : index
    %c0_30 = arith.constant 0 : index
    %c0_31 = arith.constant 0 : index
    %97 = vector.load %arg4[%c1_28, %c1_29, %c0_30, %c0_31] : memref<2x2x128x128xf32, #tpu.memory_space<vmem>>, vector<1x1x128x128xf32>
    %98 = vector.shape_cast %97 : vector<1x1x128x128xf32> to vector<128x128xf32>
    %cst_32 = arith.constant dense<0.000000e+00> : vector<512x128xf32>
    %99 = tpu.matmul %96, %98, %cst_32 {dimension_numbers = #tpu.dot_dimension_numbers<[1], [0], [0], [1], [0, 0, 1, 1], [], []>} : vector<512x128xf32>, vector<128x128xf32>, vector<512x128xf32> -> vector<512x128xf32>
    %100 = vector.shape_cast %99 : vector<512x128xf32> to vector<32x16x128xf32>
    %101 = vector.extract_strided_slice %61 {offsets = [3, 0], sizes = [1, 128], strides = [1, 1]} : vector<7x128xf32> to vector<1x128xf32>
    %102 = vector.shape_cast %101 : vector<1x128xf32> to vector<1x1x128xf32>
    %103 = vector.broadcast %102 : vector<1x1x128xf32> to vector<32x16x128xf32>
    %104 = arith.addf %100, %103 : vector<32x16x128xf32>
    %105 = vector.broadcast %3 : vector<32x16x1xf32> to vector<32x16x128xf32>
    %106 = arith.mulf %104, %105 : vector<32x16x128xf32>
    %107 = vector.extract_strided_slice %61 {offsets = [6, 0], sizes = [1, 128], strides = [1, 1]} : vector<7x128xf32> to vector<1x128xf32>
    %108 = vector.shape_cast %107 : vector<1x128xf32> to vector<1x1x128xf32>
    %109 = vector.broadcast %108 : vector<1x1x128xf32> to vector<32x16x128xf32>
    %110 = arith.addf %106, %109 : vector<32x16x128xf32>
    %cst_33 = arith.constant 0.000000e+00 : f32
    %111 = vector.broadcast %cst_33 : f32 to vector<32x16x128xf32>
    %112 = arith.maximumf %110, %111 : vector<32x16x128xf32>
    %113 = vector.broadcast %3 : vector<32x16x1xf32> to vector<32x16x128xf32>
    %114 = arith.mulf %112, %113 : vector<32x16x128xf32>
    %cst_34 = arith.constant dense<0.000000e+00> : vector<32x128xf32>
    %115 = vector.multi_reduction <add>, %114, %cst_34 [1] : vector<32x16x128xf32> to vector<32x128xf32>
    %116 = arith.addf %59, %115 : vector<32x128xf32>
    %c0_35 = arith.constant 0 : index
    %c0_36 = arith.constant 0 : index
    %117 = vector.load %arg5[%c0_35, %c0_36] : memref<128x128xf32, #tpu.memory_space<vmem>>, vector<128x128xf32>
    %cst_37 = arith.constant dense<0.000000e+00> : vector<32x128xf32>
    %118 = tpu.matmul %116, %117, %cst_37 {dimension_numbers = #tpu.dot_dimension_numbers<[1], [0], [0], [1], [0, 0, 1, 1], [], []>} : vector<32x128xf32>, vector<128x128xf32>, vector<32x128xf32> -> vector<32x128xf32>
    %c0_38 = arith.constant 0 : index
    %c0_39 = arith.constant 0 : index
    %119 = vector.load %arg6[%c0_38, %c0_39] : memref<1x128xf32, #tpu.memory_space<vmem>>, vector<1x128xf32>
    %120 = vector.broadcast %119 : vector<1x128xf32> to vector<32x128xf32>
    %121 = arith.addf %118, %120 : vector<32x128xf32>
    %c0_40 = arith.constant 0 : index
    %c0_41 = arith.constant 0 : index
    %122 = vector.load %arg7[%c0_40, %c0_41] : memref<32x128xf32, #tpu.memory_space<vmem>>, vector<32x128xf32>
    tpu.vector_store %arg7[%c0_40, %c0_41], %121 {strides = array<i32>} : memref<32x128xf32, #tpu.memory_space<vmem>>, vector<32x128xf32>,
    return
  }
  func.func @transform_0(%arg0: i32) -> (i32, i32) {
    %c0_i32 = arith.constant 0 : i32
    %c0_i32_0 = arith.constant 0 : i32
    return %arg0, %c0_i32 : i32, i32
  }
  func.func @transform_1(%arg0: i32) -> (i32, i32) {
    %c0_i32 = arith.constant 0 : i32
    %c0_i32_0 = arith.constant 0 : i32
    return %arg0, %c0_i32 : i32, i32
  }
  func.func @transform_2(%arg0: i32) -> (i32, i32, i32) {
    %c0_i32 = arith.constant 0 : i32
    %c0_i32_0 = arith.constant 0 : i32
    %c0_i32_1 = arith.constant 0 : i32
    %c0_i32_2 = arith.constant 0 : i32
    return %c0_i32, %c0_i32_0, %c0_i32_1 : i32, i32, i32
  }
  func.func @transform_3(%arg0: i32) -> (i32, i32, i32, i32) {
    %c0_i32 = arith.constant 0 : i32
    %c0_i32_0 = arith.constant 0 : i32
    %c0_i32_1 = arith.constant 0 : i32
    %c0_i32_2 = arith.constant 0 : i32
    %c0_i32_3 = arith.constant 0 : i32
    return %c0_i32, %c0_i32_0, %c0_i32_1, %c0_i32_2 : i32, i32, i32, i32
  }
  func.func @transform_4(%arg0: i32) -> (i32, i32) {
    %c0_i32 = arith.constant 0 : i32
    %c0_i32_0 = arith.constant 0 : i32
    %c0_i32_1 = arith.constant 0 : i32
    return %c0_i32, %c0_i32_0 : i32, i32
  }
  func.func @transform_5(%arg0: i32) -> (i32, i32) {
    %c0_i32 = arith.constant 0 : i32
    %c0_i32_0 = arith.constant 0 : i32
    %c0_i32_1 = arith.constant 0 : i32
    return %c0_i32, %c0_i32_0 : i32, i32
  }
  func.func @transform_6(%arg0: i32) -> (i32, i32) {
    %c0_i32 = arith.constant 0 : i32
    %c0_i32_0 = arith.constant 0 : i32
    return %arg0, %c0_i32 : i32, i32
  }
}

</mosaic_0001>

<bundles_post_ra>
// kernel: tpu_custom_call.1
= control target key start
LH: loop header
LB: loop body
LE: loop exit
PB: predicated region body
PF: predicated region fallthrough
CT: control target
= control target key end

     0   :  { %11 = vsyncpa [#allocation3], 0  ;;  %s8532_s0 = inlined_call_operand.vmem [shape: f32[32,16], index: 0, kind: input, shape index: {}]   ;;  %s8533_s1 = inlined_call_operand.vmem [shape: f32[32,16], index: 1, kind: input, shape index: {}]   ;;  %s8534_s2 = inlined_call_operand.vmem [shape: f32[2,7,128], index: 2, kind: input, shape index: {}]   ;;  %s8535_s3 = inlined_call_operand.hbm [shape: f32[2,2,128,128], index: 3, kind: input, shape index: {}]   ;;  %s8536_s4 = inlined_call_operand.vmem [shape: f32[128,128], index: 4, kind: input, shape index: {}]   ;;  %s8537_s5 = inlined_call_operand.vmem [shape: f32[1,128], index: 5, kind: input, shape index: {}]   ;;  %s8538_s6 = inlined_call_operand.hbm [shape: f32[32,128], index: 6, kind: output, shape index: {}]  }
   0x1   :  { %12 = vsyncpa [#allocation4], 0  ;;  %s6012_s21 = smov [#allocation2]   ;;  %s5964_s25 = scalar_lea.hbm %s8535_s3, 8192 }
   0x2   :  { %s24_s22 = sshll.u32 %s6012_s21, 4  ;;  %p5965_p0 = scmp.ne.s32.totalorder %s8535_s3, %s5964_s25  ;;  %s25_s22 = int_to_ptr.vmem [resolvable:$true] %s24_s22 }
   0x3   :  { %p5968_p1 = scmp.lt.u32.totalorder %s5964_s25, %s8535_s3 }
   0x5   :  { %p5970_p2 = pnand %p5968_p1, %p5965_p0 }
   0x7   :  { %5973 = shalt.err (!%p5970_p2)
}
   0x8   :  { %s5974_s30 = scalar_lea.vmem %s25_s22, 8192  ;;  %p5979_p4 = scmp.lt.s32.totalorder %s25_s22, %s25_s22 }
   0x9   :  { %p5975_p3 = scmp.ne.s32.totalorder %s25_s22, %s5974_s30  ;;  %p5980_p5 = scmp.lt.s32.totalorder %s5974_s30, %s5974_s30 }
   0xb   :  { %p5981_p6 = por %p5980_p5, %p5979_p4 }
   0xd   :  { %p5982_p7 = pnand %p5981_p6, %p5975_p3 }
   0xf   :  { %5985 = shalt.err (!%p5982_p7)
}
  0x10   :  { %s6013_s7 = smov 128   ;;  %s6014_s8 = smov 8  }
  0x11   :  { %30 = dma.hbm_to_vmem [thread:$0]  %s8535_s3, 8192, %s25_s22, [#allocation3], %s6013_s7, %s6013_s7, %s6014_s8  }
  0x12   :  { %6008 = dma.done.wait [#allocation3], 8192  }
  0x13   :  { %6009 = vsyncadd [#allocation3], 4294959104  ;;  %v42_v0 = vlaneseq  ;;  %v6077_v4 = vld [vmem:[%s8532_s0] sm:$0xff]  ;;  %v1084_v11 = vld [vmem:[#allocation2 + $0x8] sm:$0xff]  ;;  %vm4743_vm0 = vcmask 1041409   ;;  %vm4745_vm1 = vcmask 1042434  }
  0x14   :  { %v6086_v7 = vld [vmem:[%s8533_s1] sm:$0xff]  ;;  %v1085_v12 = vld [vmem:[#allocation2 + $0x10] sm:$0xff]  ;;  %v1086_v13 = vld [vmem:[#allocation2 + $0x18] sm:$0xff]  ;;  %vm4747_vm2 = vcmask 1043459   ;;  %vm4749_vm3 = vcmask 1044484   ;;  %vm4751_vm4 = vcmask 1045509  }
  0x15   :  { %v6066_v1 = vshrl.u32 %v42_v0, 7  ;;  %v1083_v10 = vld [vmem:[#allocation2] sm:$0xff]  ;;  %v5784_v17 = vpack.c.bf16 %v1086_v13, %v1085_v12  ;;  %v1088_v19 = vld [vmem:[#allocation2 + $0x28] sm:$0xff]  ;;  %v1089_v22 = vld [vmem:[#allocation2 + $0x30] sm:$0xff]  ;;  %vm4753_vm5 = vcmask 1046534   ;;  %vm4755_vm6 = vcmask 1047559  }
  0x16   :  { %v5780_v16 = vpack.c.bf16 %v1084_v11, %v1083_v10  ;;  %v1087_v18 = vld [vmem:[#allocation2 + $0x20] sm:$0xff]  ;;  %v1090_v23 = vld [vmem:[#allocation2 + $0x38] sm:$0xff]  ;;  %v1092_v28 = vld [vmem:[#allocation2 + $0x48] sm:$0xff]  ;;  %s6015_s20 = smov [#allocation5]  }
  0x17   :  { %v6069_v2 = vsub.s32 1, %v6066_v1  ;;  %v6072_v3 = vsub.s32 0, %v6066_v1  ;;  %v6091_v9 = vsub.s32 2, %v6066_v1  ;;  %v6098_v20 = vsub.s32 3, %v6066_v1  ;;  %v1091_v27 = vld [vmem:[#allocation2 + $0x40] sm:$0xff]  ;;  %v1093_v31 = vld [vmem:[#allocation2 + $0x50] sm:$0xff] }
  0x18   :  { %5781 = vmatprep.subr.bf16.mxu0 %v5780_v16  ;;  %v5788_v21 = vpack.c.bf16 %v1088_v19, %v1087_v18  ;;  %v5792_v26 = vpack.c.bf16 %v1090_v23, %v1089_v22  ;;  %v6105_v29 = vsub.s32 4, %v6066_v1  ;;  %v5796_v30 = vpack.c.bf16 %v1092_v28, %v1091_v27  ;;  %v1094_v32 = vld [vmem:[#allocation2 + $0x58] sm:$0xff]  ;;  %v1095_v36 = vld [vmem:[#allocation2 + $0x60] sm:$0xff]  ;;  %v1096_v37 = vld [vmem:[#allocation2 + $0x68] sm:$0xff]  ;;  %s4876_s21 = sshll.u32 %s6015_s20, 4  ;;  %s4877_s21 = int_to_ptr.vmem [resolvable:$true] %s4876_s21 }
  0x19   :  { %v56_v5 = vrot.slane %v6077_v4, %v6069_v2  ;;  %v45_v6 = vrot.slane %v6077_v4, %v6072_v3  ;;  %v401_v8 = vrot.slane %v6086_v7, %v6072_v3  ;;  %8799 = vst [vmem:[#allocation8_spill] sm:$0xff] %v6091_v9  ;;  %v412_v14 = vrot.slane %v6086_v7, %v6069_v2  ;;  %v1097_v40 = vld [vmem:[#allocation2 + $0x70] sm:$0xff]  ;;  %v1098_v41 = vld [vmem:[#allocation2 + $0x78] sm:$0xff]  ;;  %v39_v51 = vld [vmem:[%s8532_s0 + $0x8] sm:$0xff]  ;;  %s5986_s22 = scalar_lea.vmem %s4877_s21, 512  ;;  %p5991_p9 = scmp.lt.s32.totalorder %s4877_s21, %s4877_s21 }
  0x1a   :  { %v67_v15 = vrot.slane %v6077_v4, %v6091_v9  ;;  %5783 = vmatpush3.bf16.msra.mxu0 %v5780_v16  ;;  %8800 = vst [vmem:[#allocation9_spill] sm:$0xff] %v6098_v20  ;;  %v423_v24 = vrot.slane %v6086_v7, %v6091_v9  ;;  %v78_v25 = vrot.slane %v6077_v4, %v6098_v20  ;;  %v6112_v38 = vsub.s32 5, %v6066_v1  ;;  %v395_v54 = vld [vmem:[%s8533_s1 + $0x8] sm:$0xff]  ;;  %v3037_v27 = vld [vmem:[#allocation2 + $0x100] sm:$0xff]  ;;  %p5987_p8 = scmp.ne.s32.totalorder %s4877_s21, %s5986_s22  ;;  %p5992_p10 = scmp.lt.s32.totalorder %s5986_s22, %s5986_s22 }
  0x1b   :  { %58 = vbcast.lane.b32.xlu1 %v56_v5, 256  ;;  %47 = vbcast.lane.b32.xlu0 %v45_v6, 256  ;;  %v434_v33 = vrot.slane %v6086_v7, %v6098_v20  ;;  %v89_v34 = vrot.slane %v6077_v4, %v6105_v29  ;;  %v5800_v35 = vpack.c.bf16 %v1094_v32, %v1093_v31  ;;  %v6119_v45 = vsub.s32 6, %v6066_v1  ;;  %v3038_v28 = vld [vmem:[#allocation2 + $0x108] sm:$0xff] }
  0x1c   :  { %5785 = vmatprep.subr.bf16.mxu0 %v5784_v17  ;;  %8801 = vst [vmem:[#allocation10_spill] sm:$0xff] %v6112_v38  ;;  %v5804_v39 = vpack.c.bf16 %v1096_v37, %v1095_v36  ;;  %v445_v42 = vrot.slane %v6086_v7, %v6105_v29  ;;  %v100_v43 = vrot.slane %v6077_v4, %v6112_v38  ;;  %v6126_v48 = vsub.s32 7, %v6066_v1  ;;  %p5993_p11 = por %p5992_p10, %p5991_p9 }
  0x1d   :  { %v5808_v44 = vpack.c.bf16 %v1098_v41, %v1097_v40  ;;  %8802 = vst [vmem:[#allocation11_spill] sm:$0xff] %v6119_v45  ;;  %v456_v46 = vrot.slane %v6086_v7, %v6112_v38  ;;  %v111_v47 = vrot.slane %v6077_v4, %v6119_v45  ;;  %v467_v49 = vrot.slane %v6086_v7, %v6119_v45 }
  0x1e   :  { %5787 = vmatpush3.bf16.msra.mxu0 %v5784_v17  ;;  %v122_v50 = vrot.slane %v6077_v4, %v6126_v48  ;;  %v478_v52 = vrot.slane %v6086_v7, %v6126_v48  ;;  %v133_v53 = vrot.slane %v39_v51, %v6072_v3  ;;  %v489_v55 = vrot.slane %v395_v54, %v6072_v3  ;;  %p5994_p12 = pnand %p5993_p11, %p5987_p8 }
  0x1f   :  { %403 = vbcast.lane.b32.xlu1 %v401_v8, 256  ;;  %51 = vbcast.lane.b32.xlu0 %v45_v6, 264  ;;  %v144_v56 = vrot.slane %v39_v51, %v6069_v2  ;;  %v500_v57 = vrot.slane %v395_v54, %v6069_v2  ;;  %v155_v58 = vrot.slane %v39_v51, %v6091_v9 }
  0x20   :  { %5789 = vmatprep.subr.bf16.mxu0 %v5788_v21  ;;  %v511_v59 = vrot.slane %v395_v54, %v6091_v9  ;;  %v166_v60 = vrot.slane %v39_v51, %v6098_v20  ;;  %v522_v61 = vrot.slane %v395_v54, %v6098_v20  ;;  %v177_v62 = vrot.slane %v39_v51, %v6105_v29 }
  0x21   :  { %v533_v63 = vrot.slane %v395_v54, %v6105_v29  ;;  %v188_v0 = vrot.slane %v39_v51, %v6112_v38  ;;  %v544_v1 = vrot.slane %v395_v54, %v6112_v38  ;;  %v199_v4 = vrot.slane %v39_v51, %v6119_v45 }
  0x22   :  { %5791 = vmatpush3.bf16.msra.mxu0 %v5788_v21  ;;  %v555_v7 = vrot.slane %v395_v54, %v6119_v45  ;;  %v566_v22 = vrot.slane %v395_v54, %v6126_v48  ;;  %v5844_v32 = vpack.c.bf16 %v3038_v28, %v3037_v27 }
  0x23   :  { %407 = vbcast.lane.b32.xlu1 %v401_v8, 264  ;;  %62 = vbcast.lane.b32.xlu0 %v56_v5, 264  ;;  %v750_v5 = vld [vmem:[%s8534_s2] sm:$0x7f]  ;;  %v210_v8 = vrot.slane %v39_v51, %v6126_v48 }
  0x24   :  { %5793 = vmatprep.subr.bf16.mxu0 %v5792_v26  ;;  %v6157_v6 = vrot.slane %v750_v5, %v6072_v3  ;;  %v6162_v10 = vrot.slane %v750_v5, %v6069_v2 }
  0x26   :  { %5795 = vmatpush3.bf16.msra.mxu0 %v5792_v26 }
  0x27   :  { %414 = vbcast.lane.b32.xlu1 %v412_v14, 256  ;;  %69 = vbcast.lane.b32.xlu0 %v67_v15, 256 }
  0x28   :  { %5797 = vmatprep.subr.bf16.mxu0 %v5796_v30 }
  0x2a   :  { %5799 = vmatpush3.bf16.msra.mxu0 %v5796_v30 }
  0x2b   :  { %418 = vbcast.lane.b32.xlu1 %v412_v14, 264  ;;  %73 = vbcast.lane.b32.xlu0 %v67_v15, 264  ;;  %v6171_v14 = vrot.slane %v750_v5, %v6105_v29  ;;  %v6176_v15 = vld [vmem:[%s8532_s0 + $0x10] sm:$0xff] }
  0x2c   :  { %5801 = vmatprep.subr.bf16.mxu0 %v5800_v35  ;;  %v221_v23 = vrot.slane %v6176_v15, %v6072_v3  ;;  %v3039_v5 = vld [vmem:[#allocation2 + $0x110] sm:$0xff] }
  0x2e   :  { %5803 = vmatpush3.bf16.msra.mxu0 %v5800_v35 }
  0x2f   :  { %425 = vbcast.lane.b32.xlu1 %v423_v24, 256  ;;  %80 = vbcast.lane.b32.xlu0 %v78_v25, 256 }
  0x30   :  { %5805 = vmatprep.subr.bf16.mxu0 %v5804_v39 }
  0x32   :  { %5807 = vmatpush3.bf16.msra.mxu0 %v5804_v39  ;;  %v6205_v39 = vld [vmem:[%s8533_s1 + $0x10] sm:$0xff] }
  0x33   :  { %429 = vbcast.lane.b32.xlu1 %v423_v24, 264  ;;  %84 = vbcast.lane.b32.xlu0 %v78_v25, 264 }
  0x34   :  { %5809 = vmatprep.subr.bf16.mxu0 %v5808_v44 }
  0x36   :  { %5811 = vmatpush3.bf16.msra.mxu0 %v5808_v44  ;;  %v577_v44 = vrot.slane %v6205_v39, %v6072_v3 }
  0x37   :  { %436 = vbcast.lane.b32.xlu1 %v434_v33, 256  ;;  %91 = vbcast.lane.b32.xlu0 %v89_v34, 256 }
  0x38   :  { %5845 = vmatprep.subr.bf16.mxu0 %v5844_v32 }
  0x3b   :  { %440 = vbcast.lane.b32.xlu1 %v434_v33, 264  ;;  %95 = vbcast.lane.b32.xlu0 %v89_v34, 264 }
  0x3f   :  { %447 = vbcast.lane.b32.xlu1 %v445_v42, 256  ;;  %102 = vbcast.lane.b32.xlu0 %v100_v43, 256 }
  0x43   :  { %451 = vbcast.lane.b32.xlu1 %v445_v42, 264  ;;  %106 = vbcast.lane.b32.xlu0 %v100_v43, 264 }
  0x47   :  { %458 = vbcast.lane.b32.xlu1 %v456_v46, 256  ;;  %113 = vbcast.lane.b32.xlu0 %v111_v47, 256 }
  0x4b   :  { %462 = vbcast.lane.b32.xlu1 %v456_v46, 264  ;;  %117 = vbcast.lane.b32.xlu0 %v111_v47, 264  ;;  %v232_v46 = vrot.slane %v6176_v15, %v6069_v2 }
  0x4f   :  { %469 = vbcast.lane.b32.xlu1 %v467_v49, 256  ;;  %124 = vbcast.lane.b32.xlu0 %v122_v50, 256 }
  0x53   :  { %473 = vbcast.lane.b32.xlu1 %v467_v49, 264  ;;  %128 = vbcast.lane.b32.xlu0 %v122_v50, 264 }
  0x57   :  { %480 = vbcast.lane.b32.xlu1 %v478_v52, 256  ;;  %135 = vbcast.lane.b32.xlu0 %v133_v53, 256 }
  0x5b   :  { %484 = vbcast.lane.b32.xlu1 %v478_v52, 264  ;;  %139 = vbcast.lane.b32.xlu0 %v133_v53, 264 }
  0x5f   :  { %491 = vbcast.lane.b32.xlu1 %v489_v55, 256  ;;  %146 = vbcast.lane.b32.xlu0 %v144_v56, 256 }
  0x63   :  { %495 = vbcast.lane.b32.xlu1 %v489_v55, 264  ;;  %150 = vbcast.lane.b32.xlu0 %v144_v56, 264 }
  0x67   :  { %502 = vbcast.lane.b32.xlu1 %v500_v57, 256  ;;  %157 = vbcast.lane.b32.xlu0 %v155_v58, 256 }
  0x6b   :  { %506 = vbcast.lane.b32.xlu1 %v500_v57, 264  ;;  %161 = vbcast.lane.b32.xlu0 %v155_v58, 264 }
  0x6f   :  { %513 = vbcast.lane.b32.xlu1 %v511_v59, 256  ;;  %168 = vbcast.lane.b32.xlu0 %v166_v60, 256 }
  0x73   :  { %517 = vbcast.lane.b32.xlu1 %v511_v59, 264  ;;  %172 = vbcast.lane.b32.xlu0 %v166_v60, 264 }
  0x77   :  { %524 = vbcast.lane.b32.xlu1 %v522_v61, 256  ;;  %179 = vbcast.lane.b32.xlu0 %v177_v62, 256 }
  0x7b   :  { %528 = vbcast.lane.b32.xlu1 %v522_v61, 264  ;;  %183 = vbcast.lane.b32.xlu0 %v177_v62, 264  ;;  %v588_v62 = vrot.slane %v6205_v39, %v6069_v2 }
  0x7f   :  { %535 = vbcast.lane.b32.xlu1 %v533_v63, 256  ;;  %190 = vbcast.lane.b32.xlu0 %v188_v0, 256 }
  0x83   :  { %539 = vbcast.lane.b32.xlu1 %v533_v63, 264  ;;  %194 = vbcast.lane.b32.xlu0 %v188_v0, 264  ;;  %v243_v63 = vrot.slane %v6176_v15, %v6091_v9 }
  0x87   :  { %546 = vbcast.lane.b32.xlu1 %v544_v1, 256  ;;  %201 = vbcast.lane.b32.xlu0 %v199_v4, 256 }
  0x8b   :  { %550 = vbcast.lane.b32.xlu1 %v544_v1, 264  ;;  %205 = vbcast.lane.b32.xlu0 %v199_v4, 264 }
  0x8d   :  { %v6164_v11 = vpop.permute.xlu1 %58  ;;  %v6166_v12 = vpop.permute.xlu0 %47 }
  0x8e   :  { %v755_v13 = vmul.f32 %v6157_v6, %v6166_v12  ;;  %v757_v24 = vmul.f32 %v6157_v6, %v6164_v11 }
  0x8f   :  { %557 = vbcast.lane.b32.xlu1 %v555_v7, 256  ;;  %212 = vbcast.lane.b32.xlu0 %v210_v8, 256 }
  0x90   :  { %v823_v16 = vadd.f32 %v6162_v10, %v755_v13  ;;  %v825_v35 = vadd.f32 %v6162_v10, %v757_v24 }
  0x91   :  { %v6179_v17 = vpop.permute.xlu1 %403  ;;  %v6181_v18 = vpop.permute.xlu0 %51 }
  0x92   :  { %8803 = vst [vmem:[#allocation12_spill] sm:$0xff] %v6179_v17  ;;  %v756_v19 = vmul.f32 %v6157_v6, %v6181_v18  ;;  %v887_v21 = vmul.f32 %v823_v16, %v6179_v17 }
  0x93   :  { %561 = vbcast.lane.b32.xlu1 %v555_v7, 264  ;;  %216 = vbcast.lane.b32.xlu0 %v210_v8, 264  ;;  %v3040_v7 = vld [vmem:[#allocation2 + $0x118] sm:$0xff] }
  0x94   :  { %v824_v25 = vadd.f32 %v6162_v10, %v756_v19  ;;  %v955_v26 = vadd.f32 %v6171_v14, %v887_v21  ;;  %v5848_v16 = vpack.c.bf16 %v3040_v7, %v3039_v5 }
  0x95   :  { %v6193_v30 = vpop.permute.xlu1 %407  ;;  %v6195_v31 = vpop.permute.xlu0 %62 }
  0x96   :  { %8804 = vst [vmem:[#allocation13_spill] sm:$0xff] %v6193_v30  ;;  %v1019_v33 = vmax.f32 %v955_v26, 0.0  ;;  %v888_v34 = vmul.f32 %v824_v25, %v6193_v30  ;;  %v758_v36 = vmul.f32 %v6157_v6, %v6195_v31 }
  0x97   :  { %568 = vbcast.lane.b32.xlu1 %v566_v22, 256  ;;  %223 = vbcast.lane.b32.xlu0 %v221_v23, 256 }
  0x98   :  { %5262 = vmatprep.mubr.f32.mxu0 %v1019_v33  ;;  %v956_v37 = vadd.f32 %v6171_v14, %v888_v34  ;;  %v826_v47 = vadd.f32 %v6162_v10, %v758_v36  ;;  %v254_v33 = vrot.slane %v6176_v15, %v6098_v20 }
  0x99   :  { %v6207_v40 = vpop.permute.xlu1 %414  ;;  %v6209_v41 = vpop.permute.xlu0 %69 }
  0x9a   :  { %8805 = vst [vmem:[#allocation14_spill] sm:$0xff] %v6207_v40  ;;  %v1020_v42 = vmax.f32 %v956_v37, 0.0  ;;  %v889_v43 = vmul.f32 %v825_v35, %v6207_v40  ;;  %v759_v49 = vmul.f32 %v6157_v6, %v6209_v41 }
  0x9b   :  { %572 = vbcast.lane.b32.xlu1 %v566_v22, 264  ;;  %227 = vbcast.lane.b32.xlu0 %v221_v23, 264 }
  0x9c   :  { %5263 = vmatmul.mubr.f32.vlgmr.msra.gmra.mrb[0].mxu0 %v1020_v42  ;;  %v957_v50 = vadd.f32 %v6171_v14, %v889_v43  ;;  %v827_v55 = vadd.f32 %v6162_v10, %v759_v49 }
  0x9d   :  { %v6220_v51 = vpop.permute.xlu1 %418  ;;  %v6222_v52 = vpop.permute.xlu0 %73  ;;  %5847 = vmatpush3.bf16.msra.mxu0 %v5844_v32  ;;  %v599_v32 = vrot.slane %v6205_v39, %v6091_v9 }
  0x9e   :  { %8806 = vst [vmem:[#allocation15_spill] sm:$0xff] %v6220_v51  ;;  %v1021_v53 = vmax.f32 %v957_v50, 0.0  ;;  %v890_v54 = vmul.f32 %v826_v47, %v6220_v51  ;;  %v760_v56 = vmul.f32 %v6157_v6, %v6222_v52  ;;  %5849 = vmatprep.subr.bf16.mxu0 %v5848_v16 }
  0x9f   :  { %579 = vbcast.lane.b32.xlu1 %v577_v44, 256  ;;  %234 = vbcast.lane.b32.xlu0 %v232_v46, 256 }
  0xa0   :  { %5265 = vmatprep.mubr.f32.mxu0 %v1021_v53  ;;  %v958_v57 = vadd.f32 %v6171_v14, %v890_v54  ;;  %v828_v0 = vadd.f32 %v6162_v10, %v760_v56  ;;  %v610_v56 = vrot.slane %v6205_v39, %v6098_v20 }
  0xa1   :  { %v6229_v58 = vpop.permute.xlu1 %425  ;;  %v6231_v59 = vpop.permute.xlu0 %80  ;;  %5851 = vmatpush3.bf16.msra.mxu0 %v5848_v16 }
  0xa2   :  { %8807 = vst [vmem:[#allocation16_spill] sm:$0xff] %v6229_v58  ;;  %v1022_v60 = vmax.f32 %v958_v57, 0.0  ;;  %v891_v61 = vmul.f32 %v827_v55, %v6229_v58  ;;  %v761_v1 = vmul.f32 %v6157_v6, %v6231_v59  ;;  %v265_v57 = vrot.slane %v6176_v15, %v6105_v29 }
  0xa3   :  { %583 = vbcast.lane.b32.xlu1 %v577_v44, 264  ;;  %238 = vbcast.lane.b32.xlu0 %v232_v46, 264 }
  0xa4   :  { %5266 = vmatmul.mubr.f32.gmra.mrb[2].mxu0 %v1022_v60  ;;  %v959_v4 = vadd.f32 %v6171_v14, %v891_v61  ;;  %v829_v22 = vadd.f32 %v6162_v10, %v761_v1 }
  0xa5   :  { %v6242_v8 = vpop.permute.xlu1 %429  ;;  %v6244_v13 = vpop.permute.xlu0 %84 }
  0xa6   :  { %8808 = vst [vmem:[#allocation17_spill] sm:$0xff] %v6242_v8  ;;  %v1023_v19 = vmax.f32 %v959_v4, 0.0  ;;  %v892_v21 = vmul.f32 %v828_v0, %v6242_v8  ;;  %v762_v23 = vmul.f32 %v6157_v6, %v6244_v13  ;;  %v3042_v0 = vld [vmem:[#allocation2 + $0x128] sm:$0xff] }
  0xa7   :  { %590 = vbcast.lane.b32.xlu1 %v588_v62, 256  ;;  %245 = vbcast.lane.b32.xlu0 %v243_v63, 256 }
  0xa8   :  { %5268 = vmatprep.mubr.f32.mxu0 %v1023_v19  ;;  %v960_v24 = vadd.f32 %v6171_v14, %v892_v21  ;;  %v830_v34 = vadd.f32 %v6162_v10, %v762_v23 }
  0xa9   :  { %v6251_v25 = vpop.permute.xlu1 %436  ;;  %v6253_v26 = vpop.permute.xlu0 %91 }
  0xaa   :  { %8809 = vst [vmem:[#allocation18_spill] sm:$0xff] %v6251_v25  ;;  %v1024_v27 = vmax.f32 %v960_v24, 0.0  ;;  %v893_v28 = vmul.f32 %v829_v22, %v6251_v25  ;;  %v763_v35 = vmul.f32 %v6157_v6, %v6253_v26 }
  0xab   :  { %594 = vbcast.lane.b32.xlu1 %v588_v62, 264  ;;  %249 = vbcast.lane.b32.xlu0 %v243_v63, 264  ;;  %v3041_v63 = vld [vmem:[#allocation2 + $0x120] sm:$0xff] }
  0xac   :  { %5269 = vmatmul.mubr.f32.gmra.mrb[4].mxu0 %v1024_v27  ;;  %v961_v36 = vadd.f32 %v6171_v14, %v893_v28  ;;  %v831_v46 = vadd.f32 %v6162_v10, %v763_v35  ;;  %v5852_v5 = vpack.c.bf16 %v3042_v0, %v3041_v63  ;;  %v287_v63 = vrot.slane %v6176_v15, %v6119_v45 }
  0xad   :  { %v6264_v37 = vpop.permute.xlu1 %440  ;;  %v6266_v42 = vpop.permute.xlu0 %95 }
  0xae   :  { %8810 = vst [vmem:[#allocation19_spill] sm:$0xff] %v6264_v37  ;;  %v1025_v43 = vmax.f32 %v961_v36, 0.0  ;;  %v894_v44 = vmul.f32 %v830_v34, %v6264_v37  ;;  %v764_v47 = vmul.f32 %v6157_v6, %v6266_v42  ;;  %5853 = vmatprep.subr.bf16.mxu0 %v5852_v5 }
  0xaf   :  { %601 = vbcast.lane.b32.xlu1 %v599_v32, 256  ;;  %256 = vbcast.lane.b32.xlu0 %v254_v33, 256 }
  0xb0   :  { %5271 = vmatprep.mubr.f32.mxu0 %v1025_v43  ;;  %v962_v49 = vadd.f32 %v6171_v14, %v894_v44  ;;  %v832_v60 = vadd.f32 %v6162_v10, %v764_v47  ;;  %5855 = vmatpush3.bf16.msra.mxu0 %v5852_v5 }
  0xb1   :  { %v6273_v50 = vpop.permute.xlu1 %447  ;;  %v6275_v53 = vpop.permute.xlu0 %102 }
  0xb2   :  { %8811 = vst [vmem:[#allocation20_spill] sm:$0xff] %v6273_v50  ;;  %v1026_v54 = vmax.f32 %v962_v49, 0.0  ;;  %v895_v55 = vmul.f32 %v831_v46, %v6273_v50  ;;  %v765_v61 = vmul.f32 %v6157_v6, %v6275_v53 }
  0xb3   :  { %605 = vbcast.lane.b32.xlu1 %v599_v32, 264  ;;  %260 = vbcast.lane.b32.xlu0 %v254_v33, 264  ;;  %v621_v32 = vrot.slane %v6205_v39, %v6105_v29  ;;  %v276_v33 = vrot.slane %v6176_v15, %v6112_v38 }
  0xb4   :  { %5272 = vmatmul.mubr.f32.gmra.mrb[6].mxu0 %v1026_v54  ;;  %v963_v62 = vadd.f32 %v6171_v14, %v895_v55  ;;  %v833_v19 = vadd.f32 %v6162_v10, %v765_v61 }
  0xb5   :  { %v6286_v1 = vpop.permute.xlu1 %451  ;;  %v6288_v4 = vpop.permute.xlu0 %106 }
  0xb6   :  { %8812 = vst [vmem:[#allocation21_spill] sm:$0xff] %v6286_v1  ;;  %v1027_v7 = vmax.f32 %v963_v62, 0.0  ;;  %v896_v16 = vmul.f32 %v832_v60, %v6286_v1  ;;  %v766_v21 = vmul.f32 %v6157_v6, %v6288_v4  ;;  %v632_v62 = vrot.slane %v6205_v39, %v6112_v38 }
  0xb7   :  { %612 = vbcast.lane.b32.xlu1 %v610_v56, 256  ;;  %267 = vbcast.lane.b32.xlu0 %v265_v57, 256 }
  0xb8   :  { %5274 = vmatprep.mubr.f32.mxu0 %v1027_v7  ;;  %v964_v22 = vadd.f32 %v6171_v14, %v896_v16  ;;  %v834_v34 = vadd.f32 %v6162_v10, %v766_v21  ;;  %v3043_v16 = vld [vmem:[#allocation2 + $0x130] sm:$0xff] }
  0xb9   :  { %v6295_v23 = vpop.permute.xlu1 %458  ;;  %v6297_v24 = vpop.permute.xlu0 %113 }
  0xba   :  { %8813 = vst [vmem:[#allocation22_spill] sm:$0xff] %v6295_v23  ;;  %v1028_v27 = vmax.f32 %v964_v22, 0.0  ;;  %v897_v28 = vmul.f32 %v833_v19, %v6295_v23  ;;  %v767_v35 = vmul.f32 %v6157_v6, %v6297_v24  ;;  %v3044_v19 = vld [vmem:[#allocation2 + $0x138] sm:$0xff] }
  0xbb   :  { %616 = vbcast.lane.b32.xlu1 %v610_v56, 264  ;;  %271 = vbcast.lane.b32.xlu0 %v265_v57, 264 }
  0xbc   :  { %5275 = vmatmul.mubr.f32.gmra.mrb[8].mxu0 %v1028_v27  ;;  %v965_v36 = vadd.f32 %v6171_v14, %v897_v28  ;;  %v835_v49 = vadd.f32 %v6162_v10, %v767_v35  ;;  %v5856_v27 = vpack.c.bf16 %v3044_v19, %v3043_v16 }
  0xbd   :  { %v6308_v43 = vpop.permute.xlu1 %462  ;;  %v6310_v44 = vpop.permute.xlu0 %117 }
  0xbe   :  { %8814 = vst [vmem:[#allocation23_spill] sm:$0xff] %v6308_v43  ;;  %v1029_v46 = vmax.f32 %v965_v36, 0.0  ;;  %v898_v47 = vmul.f32 %v834_v34, %v6308_v43  ;;  %v768_v54 = vmul.f32 %v6157_v6, %v6310_v44  ;;  %5857 = vmatprep.subr.bf16.mxu0 %v5856_v27 }
  0xbf   :  { %623 = vbcast.lane.b32.xlu1 %v621_v32, 256  ;;  %278 = vbcast.lane.b32.xlu0 %v276_v33, 256 }
  0xc0   :  { %5277 = vmatprep.mubr.f32.mxu0 %v1029_v46  ;;  %v966_v55 = vadd.f32 %v6171_v14, %v898_v47  ;;  %v836_v0 = vadd.f32 %v6162_v10, %v768_v54  ;;  %5859 = vmatpush3.bf16.msra.mxu0 %v5856_v27  ;;  %v643_v54 = vrot.slane %v6205_v39, %v6119_v45  ;;  %v6364_v27 = vld [vmem:[%s8532_s0 + $0x18] sm:$0xff] }
  0xc1   :  { %v6317_v56 = vpop.permute.xlu1 %469  ;;  %v6319_v57 = vpop.permute.xlu0 %124 }
  0xc2   :  { %8815 = vst [vmem:[#allocation24_spill] sm:$0xff] %v6317_v56  ;;  %v1030_v60 = vmax.f32 %v966_v55, 0.0  ;;  %v899_v61 = vmul.f32 %v835_v49, %v6317_v56  ;;  %v769_v5 = vmul.f32 %v6157_v6, %v6319_v57  ;;  %v298_v55 = vrot.slane %v6176_v15, %v6126_v48 }
  0xc3   :  { %627 = vbcast.lane.b32.xlu1 %v621_v32, 264  ;;  %282 = vbcast.lane.b32.xlu0 %v276_v33, 264 }
  0xc4   :  { %5278 = vmatmul.mubr.f32.gmra.mrb[10].mxu0 %v1030_v60  ;;  %v967_v7 = vadd.f32 %v6171_v14, %v899_v61  ;;  %v837_v33 = vadd.f32 %v6162_v10, %v769_v5 }
  0xc5   :  { %v6330_v21 = vpop.permute.xlu1 %473  ;;  %v6332_v22 = vpop.permute.xlu0 %128 }
  0xc6   :  { %8816 = vst [vmem:[#allocation25_spill] sm:$0xff] %v6330_v21  ;;  %v1031_v28 = vmax.f32 %v967_v7, 0.0  ;;  %v900_v32 = vmul.f32 %v836_v0, %v6330_v21  ;;  %v770_v34 = vmul.f32 %v6157_v6, %v6332_v22 }
  0xc7   :  { %634 = vbcast.lane.b32.xlu1 %v632_v62, 256  ;;  %289 = vbcast.lane.b32.xlu0 %v287_v63, 256 }
  0xc8   :  { %5280 = vmatprep.mubr.f32.mxu0 %v1031_v28  ;;  %v968_v35 = vadd.f32 %v6171_v14, %v900_v32  ;;  %v838_v60 = vadd.f32 %v6162_v10, %v770_v34 }
  0xc9   :  { %v6339_v36 = vpop.permute.xlu1 %480  ;;  %v6341_v46 = vpop.permute.xlu0 %135 }
  0xca   :  { %8817 = vst [vmem:[#allocation26_spill] sm:$0xff] %v6339_v36  ;;  %8818 = vst [vmem:[#allocation27_spill] sm:$0xff] %v6341_v46  ;;  %v1032_v47 = vmax.f32 %v968_v35, 0.0  ;;  %v901_v49 = vmul.f32 %v837_v33, %v6339_v36  ;;  %v771_v61 = vmul.f32 %v6157_v6, %v6341_v46  ;;  %v654_v35 = vrot.slane %v6205_v39, %v6126_v48 }
  0xcb   :  { %638 = vbcast.lane.b32.xlu1 %v632_v62, 264  ;;  %293 = vbcast.lane.b32.xlu0 %v287_v63, 264 }
  0xcc   :  { %5281 = vmatmul.mubr.f32.gmra.mrb[12].mxu0 %v1032_v47  ;;  %v969_v0 = vadd.f32 %v6171_v14, %v901_v49  ;;  %v839_v16 = vadd.f32 %v6162_v10, %v771_v61  ;;  %v309_v47 = vrot.slane %v6364_v27, %v6072_v3 }
  0xcd   :  { %v6352_v5 = vpop.permute.xlu1 %484  ;;  %v6354_v7 = vpop.permute.xlu0 %139 }
  0xce   :  { %8819 = vst [vmem:[#allocation28_spill] sm:$0xff] %v6352_v5  ;;  %8820 = vst [vmem:[#allocation29_spill] sm:$0xff] %v6354_v7  ;;  %v1033_v62 = vmax.f32 %v969_v0, 0.0  ;;  %v902_v63 = vmul.f32 %v838_v60, %v6352_v5  ;;  %v772_v15 = vmul.f32 %v6157_v6, %v6354_v7  ;;  %v3045_v0 = vld [vmem:[#allocation2 + $0x140] sm:$0xff]  ;;  %v6391_v5 = vld [vmem:[%s8533_s1 + $0x18] sm:$0xff] }
  0xcf   :  { %645 = vbcast.lane.b32.xlu1 %v643_v54, 256  ;;  %300 = vbcast.lane.b32.xlu0 %v298_v55, 256 }
  0xd0   :  { %5283 = vmatprep.mubr.f32.mxu0 %v1033_v62  ;;  %v970_v19 = vadd.f32 %v6171_v14, %v902_v63  ;;  %v840_v49 = vadd.f32 %v6162_v10, %v772_v15  ;;  %v3046_v62 = vld [vmem:[#allocation2 + $0x148] sm:$0xff] }
  0xd1   :  { %v6366_v28 = vpop.permute.xlu1 %491  ;;  %v6368_v32 = vpop.permute.xlu0 %146  ;;  %v1750_v15 = vld [vmem:[#allocation2 + $0x88] sm:$0xff] }
  0xd2   :  { %8821 = vst [vmem:[#allocation30_spill] sm:$0xff] %v6366_v28  ;;  %8822 = vst [vmem:[#allocation31_spill] sm:$0xff] %v6368_v32  ;;  %v1034_v33 = vmax.f32 %v970_v19, 0.0  ;;  %v903_v34 = vmul.f32 %v839_v16, %v6366_v28  ;;  %v773_v60 = vmul.f32 %v6157_v6, %v6368_v32  ;;  %v1749_v19 = vld [vmem:[#allocation2 + $0x80] sm:$0xff] }
  0xd3   :  { %649 = vbcast.lane.b32.xlu1 %v643_v54, 264  ;;  %304 = vbcast.lane.b32.xlu0 %v298_v55, 264  ;;  %v5860_v55 = vpack.c.bf16 %v3046_v62, %v3045_v0  ;;  %v5812_v0 = vpack.c.bf16 %v1750_v15, %v1749_v19 }
  0xd4   :  { %5284 = vmatmul.mubr.f32.gmra.mrb[14].mxu0 %v1034_v33  ;;  %v971_v61 = vadd.f32 %v6171_v14, %v903_v34  ;;  %v841_v28 = vadd.f32 %v6162_v10, %v773_v60 }
  0xd5   :  { %v6379_v63 = vpop.permute.xlu1 %495  ;;  %v6381_v54 = vpop.permute.xlu0 %150  ;;  %5861 = vmatprep.subr.bf16.mxu0 %v5860_v55  ;;  %5813 = vmatprep.subr.bf16.mxu1 %v5812_v0 }
  0xd6   :  { %8823 = vst [vmem:[#allocation32_spill] sm:$0xff] %v6379_v63  ;;  %8824 = vst [vmem:[#allocation33_spill] sm:$0xff] %v6381_v54  ;;  %v1035_v16 = vmax.f32 %v971_v61, 0.0  ;;  %v904_v39 = vmul.f32 %v840_v49, %v6379_v63  ;;  %v774_v33 = vmul.f32 %v6157_v6, %v6381_v54  ;;  %5863 = vmatpush3.bf16.msra.mxu0 %v5860_v55  ;;  %v1751_v63 = vld [vmem:[#allocation2 + $0x90] sm:$0xff]  ;;  %v1752_v54 = vld [vmem:[#allocation2 + $0x98] sm:$0xff]  ;;  %5815 = vmatpush3.bf16.msra.mxu1 %v5812_v0 }
  0xd7   :  { %656 = vbcast.lane.b32.xlu1 %v654_v35, 256  ;;  %311 = vbcast.lane.b32.xlu0 %v309_v47, 256 }
  0xd8   :  { %5286 = vmatprep.mubr.f32.mxu0 %v1035_v16  ;;  %v972_v34 = vadd.f32 %v6171_v14, %v904_v39  ;;  %v665_v16 = vrot.slane %v6391_v5, %v6072_v3  ;;  %v320_v39 = vrot.slane %v6364_v27, %v6069_v2  ;;  %v842_v32 = vadd.f32 %v6162_v10, %v774_v33  ;;  %v1754_v33 = vld [vmem:[#allocation2 + $0xa8] sm:$0xff] }
  0xd9   :  { %v6393_v61 = vpop.permute.xlu1 %502  ;;  %v6395_v49 = vpop.permute.xlu0 %157 }
  0xda   :  { %8825 = vst [vmem:[#allocation34_spill] sm:$0xff] %v6393_v61  ;;  %8826 = vst [vmem:[#allocation35_spill] sm:$0xff] %v6395_v49  ;;  %v1036_v62 = vmax.f32 %v972_v34, 0.0  ;;  %v905_v60 = vmul.f32 %v841_v28, %v6393_v61  ;;  %v775_v7 = vmul.f32 %v6157_v6, %v6395_v49  ;;  %v1753_v34 = vld [vmem:[#allocation2 + $0xa0] sm:$0xff] }
  0xdb   :  { %660 = vbcast.lane.b32.xlu1 %v654_v35, 264  ;;  %315 = vbcast.lane.b32.xlu0 %v309_v47, 264  ;;  %v5816_v47 = vpack.c.bf16 %v1752_v54, %v1751_v63  ;;  %v5820_v63 = vpack.c.bf16 %v1754_v33, %v1753_v34 }
  0xdc   :  { %5287 = vmatmul.mubr.f32.gmra.mrb[16].mxu0 %v1036_v62  ;;  %v973_v55 = vadd.f32 %v6171_v14, %v905_v60  ;;  %v843_v61 = vadd.f32 %v6162_v10, %v775_v7  ;;  %v676_v7 = vrot.slane %v6391_v5, %v6069_v2 }
  0xdd   :  { %v6406_v28 = vpop.permute.xlu1 %506  ;;  %v6408_v35 = vpop.permute.xlu0 %161  ;;  %5817 = vmatprep.subr.bf16.mxu1 %v5816_v47 }
  0xde   :  { %8827 = vst [vmem:[#allocation36_spill] sm:$0xff] %v6406_v28  ;;  %8828 = vst [vmem:[#allocation37_spill] sm:$0xff] %v6408_v35  ;;  %v1037_v19 = vmax.f32 %v973_v55, 0.0  ;;  %v906_v15 = vmul.f32 %v842_v32, %v6406_v28  ;;  %v776_v62 = vmul.f32 %v6157_v6, %v6408_v35  ;;  %5819 = vmatpush3.bf16.msra.mxu1 %v5816_v47 }
  0xdf   :  { %667 = vbcast.lane.b32.xlu1 %v665_v16, 256  ;;  %322 = vbcast.lane.b32.xlu0 %v320_v39, 256  ;;  %v331_v55 = vrot.slane %v6364_v27, %v6091_v9 }
  0xe0   :  { %5289 = vmatprep.mubr.f32.mxu0 %v1037_v19  ;;  %v974_v60 = vadd.f32 %v6171_v14, %v906_v15  ;;  %v1755_v19 = vld [vmem:[#allocation2 + $0xb0] sm:$0xff]  ;;  %v1756_v15 = vld [vmem:[#allocation2 + $0xb8] sm:$0xff]  ;;  %v844_v28 = vadd.f32 %v6162_v10, %v776_v62  ;;  %5821 = vmatprep.subr.bf16.mxu1 %v5820_v63  ;;  %v1757_v62 = vld [vmem:[#allocation2 + $0xc0] sm:$0xff] }
  0xe1   :  { %v6415_v49 = vpop.permute.xlu1 %513  ;;  %v6417_v0 = vpop.permute.xlu0 %168 }
  0xe2   :  { %8829 = vst [vmem:[#allocation38_spill] sm:$0xff] %v6415_v49  ;;  %8830 = vst [vmem:[#allocation39_spill] sm:$0xff] %v6417_v0  ;;  %v1038_v32 = vmax.f32 %v974_v60, 0.0  ;;  %v907_v54 = vmul.f32 %v843_v61, %v6415_v49  ;;  %v777_v35 = vmul.f32 %v6157_v6, %v6417_v0  ;;  %v3047_v61 = vld [vmem:[#allocation2 + $0x150] sm:$0xff]  ;;  %5823 = vmatpush3.bf16.msra.mxu1 %v5820_v63  ;;  %v1758_v0 = vld [vmem:[#allocation2 + $0xc8] sm:$0xff] }
  0xe3   :  { %671 = vbcast.lane.b32.xlu1 %v665_v16, 264  ;;  %326 = vbcast.lane.b32.xlu0 %v320_v39, 264  ;;  %v3048_v16 = vld [vmem:[#allocation2 + $0x158] sm:$0xff]  ;;  %v5824_v60 = vpack.c.bf16 %v1756_v15, %v1755_v19 }
  0xe4   :  { %5290 = vmatmul.mubr.f32.gmra.mrb[18].mxu0 %v1038_v32  ;;  %v975_v47 = vadd.f32 %v6171_v14, %v907_v54  ;;  %v5864_v33 = vpack.c.bf16 %v3048_v16, %v3047_v61  ;;  %v845_v32 = vadd.f32 %v6162_v10, %v777_v35  ;;  %v687_v35 = vrot.slane %v6391_v5, %v6091_v9 }
  0xe5   :  { %v6428_v39 = vpop.permute.xlu1 %517  ;;  %v6430_v34 = vpop.permute.xlu0 %172  ;;  %5825 = vmatprep.subr.bf16.mxu1 %v5824_v60 }
  0xe6   :  { %8831 = vst [vmem:[#allocation40_spill] sm:$0xff] %v6428_v39  ;;  %v1039_v49 = vmax.f32 %v975_v47, 0.0  ;;  %v908_v36 = vmul.f32 %v844_v28, %v6428_v39  ;;  %v778_v54 = vmul.f32 %v6157_v6, %v6430_v34  ;;  %5865 = vmatprep.subr.bf16.mxu0 %v5864_v33  ;;  %v5828_v28 = vpack.c.bf16 %v1758_v0, %v1757_v62  ;;  %v1760_v47 = vld [vmem:[#allocation2 + $0xd8] sm:$0xff]  ;;  %v1761_v62 = vld [vmem:[#allocation2 + $0xe0] sm:$0xff] }
  0xe7   :  { %678 = vbcast.lane.b32.xlu1 %v676_v7, 256  ;;  %333 = vbcast.lane.b32.xlu0 %v331_v55, 256 }
  0xe8   :  { %5292 = vmatprep.mubr.f32.mxu0 %v1039_v49  ;;  %v976_v21 = vadd.f32 %v6171_v14, %v908_v36  ;;  %5867 = vmatpush3.bf16.msra.mxu0 %v5864_v33  ;;  %v342_v36 = vrot.slane %v6364_v27, %v6098_v20  ;;  %v1759_v49 = vld [vmem:[#allocation2 + $0xd0] sm:$0xff]  ;;  %v846_v61 = vadd.f32 %v6162_v10, %v778_v54 }
  0xe9   :  { %v6437_v46 = vpop.permute.xlu1 %524  ;;  %v6439_v63 = vpop.permute.xlu0 %179  ;;  %5827 = vmatpush3.bf16.msra.mxu1 %v5824_v60 }
  0xea   :  { %8832 = vst [vmem:[#allocation41_spill] sm:$0xff] %v6437_v46  ;;  %v1040_v19 = vmax.f32 %v976_v21, 0.0  ;;  %v909_v15 = vmul.f32 %v845_v32, %v6437_v46  ;;  %v779_v16 = vmul.f32 %v6157_v6, %v6439_v63  ;;  %5829 = vmatprep.subr.bf16.mxu1 %v5828_v28  ;;  %v1762_v32 = vld [vmem:[#allocation2 + $0xe8] sm:$0xff] }
  0xeb   :  { %682 = vbcast.lane.b32.xlu1 %v676_v7, 264  ;;  %337 = vbcast.lane.b32.xlu0 %v331_v55, 264  ;;  %v5832_v55 = vpack.c.bf16 %v1760_v47, %v1759_v49  ;;  %v5836_v47 = vpack.c.bf16 %v1762_v32, %v1761_v62 }
  0xec   :  { %5293 = vmatmul.mubr.f32.gmra.mrb[20].mxu0 %v1040_v19  ;;  %v977_v21 = vadd.f32 %v6171_v14, %v909_v15  ;;  %v847_v54 = vadd.f32 %v6162_v10, %v779_v16  ;;  %v698_v16 = vrot.slane %v6391_v5, %v6098_v20 }
  0xed   :  { %v6450_v0 = vpop.permute.xlu1 %528  ;;  %v6452_v7 = vpop.permute.xlu0 %183  ;;  %5831 = vmatpush3.bf16.msra.mxu1 %v5828_v28 }
  0xee   :  { %8833 = vst [vmem:[#allocation42_spill] sm:$0xff] %v6450_v0  ;;  %8834 = vst [vmem:[#allocation43_spill] sm:$0xff] %v6452_v7  ;;  %v1041_v33 = vmax.f32 %v977_v21, 0.0  ;;  %v910_v60 = vmul.f32 %v846_v61, %v6450_v0  ;;  %v780_v19 = vmul.f32 %v6157_v6, %v6452_v7  ;;  %5833 = vmatprep.subr.bf16.mxu1 %v5832_v55 }
  0xef   :  { %689 = vbcast.lane.b32.xlu1 %v687_v35, 256  ;;  %344 = vbcast.lane.b32.xlu0 %v342_v36, 256  ;;  %v353_v21 = vrot.slane %v6364_v27, %v6105_v29 }
  0xf0   :  { %5295 = vmatprep.mubr.f32.mxu0 %v1041_v33  ;;  %v978_v15 = vadd.f32 %v6171_v14, %v910_v60  ;;  %v1763_v33 = vld [vmem:[#allocation2 + $0xf0] sm:$0xff]  ;;  %v1764_v60 = vld [vmem:[#allocation2 + $0xf8] sm:$0xff]  ;;  %v848_v0 = vadd.f32 %v6162_v10, %v780_v19 }
  0xf1   :  { %v6459_v46 = vpop.permute.xlu1 %535  ;;  %v6461_v49 = vpop.permute.xlu0 %190  ;;  %5835 = vmatpush3.bf16.msra.mxu1 %v5832_v55  ;;  %v3049_v55 = vld [vmem:[#allocation2 + $0x160] sm:$0xff] }
  0xf2   :  { %8835 = vst [vmem:[#allocation44_spill] sm:$0xff] %v6459_v46  ;;  %8836 = vst [vmem:[#allocation45_spill] sm:$0xff] %v6461_v49  ;;  %v1042_v61 = vmax.f32 %v978_v15, 0.0  ;;  %v911_v28 = vmul.f32 %v847_v54, %v6459_v46  ;;  %v781_v7 = vmul.f32 %v6157_v6, %v6461_v49  ;;  %5837 = vmatprep.subr.bf16.mxu1 %v5836_v47 }
  0xf3   :  { %693 = vbcast.lane.b32.xlu1 %v687_v35, 264  ;;  %348 = vbcast.lane.b32.xlu0 %v342_v36, 264  ;;  %v3050_v35 = vld [vmem:[#allocation2 + $0x168] sm:$0xff]  ;;  %v5840_v15 = vpack.c.bf16 %v1764_v60, %v1763_v33 }
  0xf4   :  { %5296 = vmatmul.mubr.f32.gmra.mrb[22].mxu0 %v1042_v61  ;;  %v979_v62 = vadd.f32 %v6171_v14, %v911_v28  ;;  %v5868_v54 = vpack.c.bf16 %v3050_v35, %v3049_v55  ;;  %v849_v19 = vadd.f32 %v6162_v10, %v781_v7  ;;  %v709_v7 = vrot.slane %v6391_v5, %v6105_v29 }
  0xf5   :  { %v6472_v36 = vpop.permute.xlu1 %539  ;;  %v6474_v32 = vpop.permute.xlu0 %194  ;;  %5839 = vmatpush3.bf16.msra.mxu1 %v5836_v47 }
  0xf6   :  { %8837 = vst [vmem:[#allocation46_spill] sm:$0xff] %v6472_v36  ;;  %v1043_v20 = vmax.f32 %v979_v62, 0.0  ;;  %v912_v46 = vmul.f32 %v848_v0, %v6472_v36  ;;  %v782_v61 = vmul.f32 %v6157_v6, %v6474_v32  ;;  %5869 = vmatprep.subr.bf16.mxu0 %v5868_v54  ;;  %5841 = vmatprep.subr.bf16.mxu1 %v5840_v15 }
  0xf7   :  { %700 = vbcast.lane.b32.xlu1 %v698_v16, 256  ;;  %355 = vbcast.lane.b32.xlu0 %v353_v21, 256 }
  0xf8   :  { %5298 = vmatprep.mubr.f32.mxu0 %v1043_v20  ;;  %v980_v28 = vadd.f32 %v6171_v14, %v912_v46  ;;  %5871 = vmatpush3.bf16.msra.mxu0 %v5868_v54  ;;  %v364_v20 = vrot.slane %v6364_v27, %v6112_v38  ;;  %v850_v46 = vadd.f32 %v6162_v10, %v782_v61 }
  0xf9   :  { %v6481_v49 = vpop.permute.xlu1 %546  ;;  %v6483_v39 = vpop.permute.xlu0 %201  ;;  %5843 = vmatpush3.bf16.msra.mxu1 %v5840_v15 }
  0xfa   :  { %8838 = vst [vmem:[#allocation47_spill] sm:$0xff] %v6481_v49  ;;  %v1044_v33 = vmax.f32 %v980_v28, 0.0  ;;  %v913_v0 = vmul.f32 %v849_v19, %v6481_v49  ;;  %v783_v47 = vmul.f32 %v6157_v6, %v6483_v39 }
  0xfb   :  { %704 = vbcast.lane.b32.xlu1 %v698_v16, 264  ;;  %359 = vbcast.lane.b32.xlu0 %v353_v21, 264 }
  0xfc   :  { %5299 = vmatmul.mubr.f32.gmra.mrb[24].mxu0 %v1044_v33  ;;  %v981_v60 = vadd.f32 %v6171_v14, %v913_v0  ;;  %v851_v35 = vadd.f32 %v6162_v10, %v783_v47  ;;  %v720_v0 = vrot.slane %v6391_v5, %v6112_v38 }
  0xfd   :  { %v6494_v62 = vpop.permute.xlu1 %550  ;;  %v6496_v55 = vpop.permute.xlu0 %205 }
  0xfe   :  { %8839 = vst [vmem:[#allocation48_spill] sm:$0xff] %v6494_v62  ;;  %8840 = vst [vmem:[#allocation49_spill] sm:$0xff] %v6496_v55  ;;  %v1045_v16 = vmax.f32 %v981_v60, 0.0  ;;  %v914_v21 = vmul.f32 %v850_v46, %v6494_v62  ;;  %v784_v54 = vmul.f32 %v6157_v6, %v6496_v55  ;;  %v375_v46 = vrot.slane %v6364_v27, %v6119_v45 }
  0xff   :  { %711 = vbcast.lane.b32.xlu1 %v709_v7, 256  ;;  %366 = vbcast.lane.b32.xlu0 %v364_v20, 256 }
 0x100   :  { %5301 = vmatprep.mubr.f32.mxu0 %v1045_v16  ;;  %v982_v15 = vadd.f32 %v6171_v14, %v914_v21  ;;  %v852_v47 = vadd.f32 %v6162_v10, %v784_v54  ;;  %v3051_v21 = vld [vmem:[#allocation2 + $0x170] sm:$0xff] }
 0x101   :  { %v6503_v19 = vpop.permute.xlu1 %557  ;;  %v6505_v61 = vpop.permute.xlu0 %212 }
 0x102   :  { %8841 = vst [vmem:[#allocation50_spill] sm:$0xff] %v6503_v19  ;;  %8842 = vst [vmem:[#allocation51_spill] sm:$0xff] %v6505_v61  ;;  %v1046_v28 = vmax.f32 %v982_v15, 0.0  ;;  %v915_v33 = vmul.f32 %v851_v35, %v6503_v19  ;;  %v785_v60 = vmul.f32 %v6157_v6, %v6505_v61  ;;  %v3052_v15 = vld [vmem:[#allocation2 + $0x178] sm:$0xff] }
 0x103   :  { %715 = vbcast.lane.b32.xlu1 %v709_v7, 264  ;;  %370 = vbcast.lane.b32.xlu0 %v364_v20, 264  ;;  %v5872_v20 = vpack.c.bf16 %v3052_v15, %v3051_v21 }
 0x104   :  { %5302 = vmatmul.mubr.f32.gmra.mrb[26].mxu0 %v1046_v28  ;;  %v983_v16 = vadd.f32 %v6171_v14, %v915_v33  ;;  %v853_v54 = vadd.f32 %v6162_v10, %v785_v60  ;;  %v386_v60 = vrot.slane %v6364_v27, %v6126_v48 }
 0x105   :  { %v6516_v62 = vpop.permute.xlu1 %561  ;;  %v6518_v7 = vpop.permute.xlu0 %216  ;;  %5873 = vmatprep.subr.bf16.mxu0 %v5872_v20 }
 0x106   :  { %8843 = vst [vmem:[#allocation52_spill] sm:$0xff] %v6516_v62  ;;  %v1047_v35 = vmax.f32 %v983_v16, 0.0  ;;  %v916_v19 = vmul.f32 %v852_v47, %v6516_v62  ;;  %v786_v61 = vmul.f32 %v6157_v6, %v6518_v7  ;;  %5875 = vmatpush3.bf16.msra.mxu0 %v5872_v20  ;;  %v731_v47 = vrot.slane %v6391_v5, %v6119_v45 }
 0x107   :  { %722 = vbcast.lane.b32.xlu1 %v720_v0, 256  ;;  %377 = vbcast.lane.b32.xlu0 %v375_v46, 256 }
 0x108   :  { %5304 = vmatprep.mubr.f32.mxu0 %v1047_v35  ;;  %v984_v28 = vadd.f32 %v6171_v14, %v916_v19  ;;  %v854_v15 = vadd.f32 %v6162_v10, %v786_v61 }
 0x109   :  { %v6525_v33 = vpop.permute.xlu1 %568  ;;  %v6527_v55 = vpop.permute.xlu0 %223 }
 0x10a   :  { %8844 = vst [vmem:[#allocation53_spill] sm:$0xff] %v6525_v33  ;;  %8845 = vst [vmem:[#allocation54_spill] sm:$0xff] %v6527_v55  ;;  %v1048_v21 = vmax.f32 %v984_v28, 0.0  ;;  %v917_v16 = vmul.f32 %v853_v54, %v6525_v33  ;;  %v787_v19 = vmul.f32 %v6157_v6, %v6527_v55 }
 0x10b   :  { %726 = vbcast.lane.b32.xlu1 %v720_v0, 264  ;;  %381 = vbcast.lane.b32.xlu0 %v375_v46, 264 }
 0x10c   :  { %5305 = vmatmul.mubr.f32.gmra.mrb[28].mxu0 %v1048_v21  ;;  %v985_v35 = vadd.f32 %v6171_v14, %v917_v16  ;;  %v855_v54 = vadd.f32 %v6162_v10, %v787_v19 }
 0x10d   :  { %v6538_v20 = vpop.permute.xlu1 %572  ;;  %v6540_v28 = vpop.permute.xlu0 %227 }
 0x10e   :  { %8846 = vst [vmem:[#allocation55_spill] sm:$0xff] %v6538_v20  ;;  %8847 = vst [vmem:[#allocation56_spill] sm:$0xff] %v6540_v28  ;;  %v1049_v0 = vmax.f32 %v985_v35, 0.0  ;;  %v918_v46 = vmul.f32 %v854_v15, %v6538_v20  ;;  %v788_v27 = vmul.f32 %v6157_v6, %v6540_v28  ;;  %v742_v15 = vrot.slane %v6391_v5, %v6126_v48 }
 0x10f   :  { %733 = vbcast.lane.b32.xlu1 %v731_v47, 256  ;;  %388 = vbcast.lane.b32.xlu0 %v386_v60, 256 }
 0x110   :  { %5307 = vmatprep.mubr.f32.mxu0 %v1049_v0  ;;  %v986_v61 = vadd.f32 %v6171_v14, %v918_v46  ;;  %v856_v19 = vadd.f32 %v6162_v10, %v788_v27 }
 0x111   :  { %v6547_v21 = vpop.permute.xlu1 %579  ;;  %v6549_v16 = vpop.permute.xlu0 %234 }
 0x112   :  { %8848 = vst [vmem:[#allocation57_spill] sm:$0xff] %v6547_v21  ;;  %8849 = vst [vmem:[#allocation58_spill] sm:$0xff] %v6549_v16  ;;  %v1050_v45 = vmax.f32 %v986_v61, 0.0  ;;  %v919_v33 = vmul.f32 %v855_v54, %v6547_v21  ;;  %v789_v35 = vmul.f32 %v6157_v6, %v6549_v16  ;;  %v3704_v16 = vld [vmem:[#allocation2 + $0x188] sm:$0xff] }
 0x113   :  { %737 = vbcast.lane.b32.xlu1 %v731_v47, 264  ;;  %392 = vbcast.lane.b32.xlu0 %v386_v60, 264 }
 0x114   :  { %5308 = vmatmul.mubr.f32.gmra.mrb[30].mxu0 %v1050_v45  ;;  %v987_v0 = vadd.f32 %v6171_v14, %v919_v33  ;;  %v857_v47 = vadd.f32 %v6162_v10, %v789_v35 }
 0x115   :  { %v6558_v46 = vpop.permute.xlu1 %583  ;;  %v6560_v20 = vpop.permute.xlu0 %238 }
 0x116   :  { %8850 = vst [vmem:[#allocation59_spill] sm:$0xff] %v6558_v46  ;;  %8851 = vst [vmem:[#allocation60_spill] sm:$0xff] %v6560_v20  ;;  %v1051_v61 = vmax.f32 %v987_v0, 0.0  ;;  %v920_v54 = vmul.f32 %v856_v19, %v6558_v46  ;;  %v790_v48 = vmul.f32 %v6157_v6, %v6560_v20 }
 0x117   :  { %748 = vbcast.lane.b32.xlu1 %v742_v15, 264  ;;  %744 = vbcast.lane.b32.xlu0 %v742_v15, 256 }
 0x118   :  { %5310 = vmatprep.mubr.f32.mxu0 %v1051_v61  ;;  %v988_v5 = vadd.f32 %v6171_v14, %v920_v54  ;;  %v858_v0 = vadd.f32 %v6162_v10, %v790_v48 }
 0x119   :  { %v6567_v45 = vpop.permute.xlu1 %590  ;;  %v6569_v33 = vpop.permute.xlu0 %245 }
 0x11a   :  { %8852 = vst [vmem:[#allocation61_spill] sm:$0xff] %v6567_v45  ;;  %8853 = vst [vmem:[#allocation62_spill] sm:$0xff] %v6569_v33  ;;  %v1052_v60 = vmax.f32 %v988_v5, 0.0  ;;  %v921_v27 = vmul.f32 %v857_v47, %v6567_v45  ;;  %v791_v15 = vmul.f32 %v6157_v6, %v6569_v33 }
 0x11c   :  { %5311 = vmatmul.mubr.f32.gmra.mrb[32].mxu0 %v1052_v60  ;;  %v989_v19 = vadd.f32 %v6171_v14, %v921_v27  ;;  %v859_v21 = vadd.f32 %v6162_v10, %v791_v15 }
 0x11d   :  { %v6576_v35 = vpop.permute.xlu1 %594  ;;  %v6578_v61 = vpop.permute.xlu0 %249 }
 0x11e   :  { %8854 = vst [vmem:[#allocation63_spill] sm:$0xff] %v6576_v35  ;;  %8855 = vst [vmem:[#allocation64_spill] sm:$0xff] %v6578_v61  ;;  %v1053_v54 = vmax.f32 %v989_v19, 0.0  ;;  %v922_v46 = vmul.f32 %v858_v0, %v6576_v35  ;;  %v792_v47 = vmul.f32 %v6157_v6, %v6578_v61 }
 0x120   :  { %5313 = vmatprep.mubr.f32.mxu0 %v1053_v54  ;;  %v990_v48 = vadd.f32 %v6171_v14, %v922_v46  ;;  %v860_v33 = vadd.f32 %v6162_v10, %v792_v47 }
 0x121   :  { %v6585_v5 = vpop.permute.xlu1 %601  ;;  %v6587_v60 = vpop.permute.xlu0 %256 }
 0x122   :  { %8856 = vst [vmem:[#allocation65_spill] sm:$0xff] %v6585_v5  ;;  %8857 = vst [vmem:[#allocation66_spill] sm:$0xff] %v6587_v60  ;;  %v1054_v27 = vmax.f32 %v990_v48, 0.0  ;;  %v923_v45 = vmul.f32 %v859_v21, %v6585_v5  ;;  %v793_v0 = vmul.f32 %v6157_v6, %v6587_v60 }
 0x124   :  { %5314 = vmatmul.mubr.f32.gmra.mrb[34].mxu0 %v1054_v27  ;;  %v991_v15 = vadd.f32 %v6171_v14, %v923_v45  ;;  %v861_v61 = vadd.f32 %v6162_v10, %v793_v0 }
 0x125   :  { %v6594_v19 = vpop.permute.xlu1 %605  ;;  %v6596_v54 = vpop.permute.xlu0 %260 }
 0x126   :  { %8858 = vst [vmem:[#allocation67_spill] sm:$0xff] %v6594_v19  ;;  %8859 = vst [vmem:[#allocation68_spill] sm:$0xff] %v6596_v54  ;;  %v1055_v46 = vmax.f32 %v991_v15, 0.0  ;;  %v924_v35 = vmul.f32 %v860_v33, %v6594_v19  ;;  %v794_v21 = vmul.f32 %v6157_v6, %v6596_v54 }
 0x128   :  { %5316 = vmatprep.mubr.f32.mxu0 %v1055_v46  ;;  %v992_v47 = vadd.f32 %v6171_v14, %v924_v35  ;;  %v862_v60 = vadd.f32 %v6162_v10, %v794_v21 }
 0x129   :  { %v6603_v48 = vpop.permute.xlu1 %612  ;;  %v6605_v27 = vpop.permute.xlu0 %267 }
 0x12a   :  { %8860 = vst [vmem:[#allocation69_spill] sm:$0xff] %v6603_v48  ;;  %8861 = vst [vmem:[#allocation70_spill] sm:$0xff] %v6605_v27  ;;  %v1056_v45 = vmax.f32 %v992_v47, 0.0  ;;  %v925_v5 = vmul.f32 %v861_v61, %v6603_v48  ;;  %v795_v33 = vmul.f32 %v6157_v6, %v6605_v27 }
 0x12c   :  { %5317 = vmatmul.mubr.f32.gmra.mrb[36].mxu0 %v1056_v45  ;;  %v993_v0 = vadd.f32 %v6171_v14, %v925_v5  ;;  %v863_v54 = vadd.f32 %v6162_v10, %v795_v33 }
 0x12d   :  { %v6612_v15 = vpop.permute.xlu1 %616  ;;  %v6614_v46 = vpop.permute.xlu0 %271 }
 0x12e   :  { %8862 = vst [vmem:[#allocation71_spill] sm:$0xff] %v6612_v15  ;;  %8863 = vst [vmem:[#allocation72_spill] sm:$0xff] %v6614_v46  ;;  %v1057_v35 = vmax.f32 %v993_v0, 0.0  ;;  %v926_v19 = vmul.f32 %v862_v60, %v6612_v15  ;;  %v796_v61 = vmul.f32 %v6157_v6, %v6614_v46 }
 0x130   :  { %5319 = vmatprep.mubr.f32.mxu0 %v1057_v35  ;;  %v994_v21 = vadd.f32 %v6171_v14, %v926_v19  ;;  %v864_v27 = vadd.f32 %v6162_v10, %v796_v61 }
 0x131   :  { %v6621_v47 = vpop.permute.xlu1 %623  ;;  %v6623_v45 = vpop.permute.xlu0 %278 }
 0x132   :  { %8864 = vst [vmem:[#allocation73_spill] sm:$0xff] %v6621_v47  ;;  %8865 = vst [vmem:[#allocation74_spill] sm:$0xff] %v6623_v45  ;;  %v1058_v5 = vmax.f32 %v994_v21, 0.0  ;;  %v927_v48 = vmul.f32 %v863_v54, %v6621_v47  ;;  %v797_v60 = vmul.f32 %v6157_v6, %v6623_v45 }
 0x134   :  { %5320 = vmatmul.mubr.f32.gmra.mrb[38].mxu0 %v1058_v5  ;;  %v995_v33 = vadd.f32 %v6171_v14, %v927_v48  ;;  %v865_v46 = vadd.f32 %v6162_v10, %v797_v60 }
 0x135   :  { %v6630_v0 = vpop.permute.xlu1 %627  ;;  %v6632_v35 = vpop.permute.xlu0 %282 }
 0x136   :  { %8866 = vst [vmem:[#allocation75_spill] sm:$0xff] %v6630_v0  ;;  %8867 = vst [vmem:[#allocation76_spill] sm:$0xff] %v6632_v35  ;;  %v1059_v19 = vmax.f32 %v995_v33, 0.0  ;;  %v928_v15 = vmul.f32 %v864_v27, %v6630_v0  ;;  %v798_v54 = vmul.f32 %v6157_v6, %v6632_v35 }
 0x138   :  { %5322 = vmatprep.mubr.f32.mxu0 %v1059_v19  ;;  %v996_v61 = vadd.f32 %v6171_v14, %v928_v15  ;;  %v866_v45 = vadd.f32 %v6162_v10, %v798_v54 }
 0x139   :  { %v6639_v21 = vpop.permute.xlu1 %634  ;;  %v6641_v5 = vpop.permute.xlu0 %289 }
 0x13a   :  { %8868 = vst [vmem:[#allocation77_spill] sm:$0xff] %v6639_v21  ;;  %8869 = vst [vmem:[#allocation78_spill] sm:$0xff] %v6641_v5  ;;  %v1060_v48 = vmax.f32 %v996_v61, 0.0  ;;  %v929_v47 = vmul.f32 %v865_v46, %v6639_v21  ;;  %v799_v27 = vmul.f32 %v6157_v6, %v6641_v5 }
 0x13c   :  { %5323 = vmatmul.mubr.f32.gmra.mrb[40].mxu0 %v1060_v48  ;;  %v997_v60 = vadd.f32 %v6171_v14, %v929_v47  ;;  %v867_v35 = vadd.f32 %v6162_v10, %v799_v27 }
 0x13d   :  { %v6648_v33 = vpop.permute.xlu1 %638  ;;  %v6650_v19 = vpop.permute.xlu0 %293 }
 0x13e   :  { %8870 = vst [vmem:[#allocation79_spill] sm:$0xff] %v6648_v33  ;;  %8871 = vst [vmem:[#allocation80_spill] sm:$0xff] %v6650_v19  ;;  %v1061_v15 = vmax.f32 %v997_v60, 0.0  ;;  %v930_v0 = vmul.f32 %v866_v45, %v6648_v33  ;;  %v800_v46 = vmul.f32 %v6157_v6, %v6650_v19 }
 0x140   :  { %5325 = vmatprep.mubr.f32.mxu0 %v1061_v15  ;;  %v998_v54 = vadd.f32 %v6171_v14, %v930_v0  ;;  %v868_v5 = vadd.f32 %v6162_v10, %v800_v46 }
 0x141   :  { %v6657_v61 = vpop.permute.xlu1 %645  ;;  %v6659_v48 = vpop.permute.xlu0 %300 }
 0x142   :  { %8872 = vst [vmem:[#allocation81_spill] sm:$0xff] %v6657_v61  ;;  %8873 = vst [vmem:[#allocation82_spill] sm:$0xff] %v6659_v48  ;;  %v1062_v47 = vmax.f32 %v998_v54, 0.0  ;;  %v931_v21 = vmul.f32 %v867_v35, %v6657_v61  ;;  %v801_v45 = vmul.f32 %v6157_v6, %v6659_v48 }
 0x144   :  { %5326 = vmatmul.mubr.f32.gmra.mrb[42].mxu0 %v1062_v47  ;;  %v999_v27 = vadd.f32 %v6171_v14, %v931_v21  ;;  %v869_v19 = vadd.f32 %v6162_v10, %v801_v45 }
 0x145   :  { %v6666_v60 = vpop.permute.xlu1 %649  ;;  %v6668_v15 = vpop.permute.xlu0 %304 }
 0x146   :  { %8874 = vst [vmem:[#allocation83_spill] sm:$0xff] %v6666_v60  ;;  %8875 = vst [vmem:[#allocation84_spill] sm:$0xff] %v6668_v15  ;;  %v1063_v0 = vmax.f32 %v999_v27, 0.0  ;;  %v932_v33 = vmul.f32 %v868_v5, %v6666_v60  ;;  %v802_v35 = vmul.f32 %v6157_v6, %v6668_v15 }
 0x148   :  { %5328 = vmatprep.mubr.f32.mxu0 %v1063_v0  ;;  %v1000_v46 = vadd.f32 %v6171_v14, %v932_v33  ;;  %v870_v48 = vadd.f32 %v6162_v10, %v802_v35 }
 0x149   :  { %v6675_v54 = vpop.permute.xlu1 %656  ;;  %v6677_v47 = vpop.permute.xlu0 %311 }
 0x14a   :  { %8876 = vst [vmem:[#allocation85_spill] sm:$0xff] %v6675_v54  ;;  %8877 = vst [vmem:[#allocation86_spill] sm:$0xff] %v6677_v47  ;;  %v1064_v21 = vmax.f32 %v1000_v46, 0.0  ;;  %v933_v61 = vmul.f32 %v869_v19, %v6675_v54  ;;  %v803_v5 = vmul.f32 %v6157_v6, %v6677_v47 }
 0x14c   :  { %5329 = vmatmul.mubr.f32.gmra.mrb[44].mxu0 %v1064_v21  ;;  %v1001_v45 = vadd.f32 %v6171_v14, %v933_v61  ;;  %v871_v15 = vadd.f32 %v6162_v10, %v803_v5 }
 0x14d   :  { %v6684_v27 = vpop.permute.xlu1 %660  ;;  %v6686_v0 = vpop.permute.xlu0 %315 }
 0x14e   :  { %8878 = vst [vmem:[#allocation87_spill] sm:$0xff] %v6684_v27  ;;  %8879 = vst [vmem:[#allocation88_spill] sm:$0xff] %v6686_v0  ;;  %v1065_v33 = vmax.f32 %v1001_v45, 0.0  ;;  %v934_v60 = vmul.f32 %v870_v48, %v6684_v27  ;;  %v804_v19 = vmul.f32 %v6157_v6, %v6686_v0 }
 0x150   :  { %5331 = vmatprep.mubr.f32.mxu0 %v1065_v33  ;;  %v1002_v35 = vadd.f32 %v6171_v14, %v934_v60  ;;  %v872_v47 = vadd.f32 %v6162_v10, %v804_v19 }
 0x151   :  { %v6693_v46 = vpop.permute.xlu1 %667  ;;  %v6695_v21 = vpop.permute.xlu0 %322 }
 0x152   :  { %8880 = vst [vmem:[#allocation89_spill] sm:$0xff] %v6693_v46  ;;  %8881 = vst [vmem:[#allocation90_spill] sm:$0xff] %v6695_v21  ;;  %v1066_v61 = vmax.f32 %v1002_v35, 0.0  ;;  %v935_v54 = vmul.f32 %v871_v15, %v6693_v46  ;;  %v805_v48 = vmul.f32 %v6157_v6, %v6695_v21 }
 0x154   :  { %5332 = vmatmul.mubr.f32.gmra.mrb[46].mxu0 %v1066_v61  ;;  %v1003_v5 = vadd.f32 %v6171_v14, %v935_v54  ;;  %v873_v0 = vadd.f32 %v6162_v10, %v805_v48 }
 0x155   :  { %v6702_v45 = vpop.permute.xlu1 %671  ;;  %v6704_v33 = vpop.permute.xlu0 %326 }
 0x156   :  { %8882 = vst [vmem:[#allocation91_spill] sm:$0xff] %v6702_v45  ;;  %8883 = vst [vmem:[#allocation92_spill] sm:$0xff] %v6704_v33  ;;  %v1067_v60 = vmax.f32 %v1003_v5, 0.0  ;;  %v936_v27 = vmul.f32 %v872_v47, %v6702_v45  ;;  %v806_v15 = vmul.f32 %v6157_v6, %v6704_v33 }
 0x158   :  { %5334 = vmatprep.mubr.f32.mxu0 %v1067_v60  ;;  %v1004_v19 = vadd.f32 %v6171_v14, %v936_v27  ;;  %v874_v21 = vadd.f32 %v6162_v10, %v806_v15 }
 0x159   :  { %v6711_v35 = vpop.permute.xlu1 %678  ;;  %v6713_v61 = vpop.permute.xlu0 %333 }
 0x15a   :  { %8884 = vst [vmem:[#allocation93_spill] sm:$0xff] %v6711_v35  ;;  %8885 = vst [vmem:[#allocation94_spill] sm:$0xff] %v6713_v61  ;;  %v1068_v54 = vmax.f32 %v1004_v19, 0.0  ;;  %v937_v46 = vmul.f32 %v873_v0, %v6711_v35  ;;  %v807_v47 = vmul.f32 %v6157_v6, %v6713_v61 }
 0x15c   :  { %5335 = vmatmul.mubr.f32.gmra.mrb[48].mxu0 %v1068_v54  ;;  %v1005_v48 = vadd.f32 %v6171_v14, %v937_v46  ;;  %v875_v33 = vadd.f32 %v6162_v10, %v807_v47 }
 0x15d   :  { %v6720_v5 = vpop.permute.xlu1 %682  ;;  %v6722_v60 = vpop.permute.xlu0 %337 }
 0x15e   :  { %8886 = vst [vmem:[#allocation95_spill] sm:$0xff] %v6720_v5  ;;  %8887 = vst [vmem:[#allocation96_spill] sm:$0xff] %v6722_v60  ;;  %v1069_v27 = vmax.f32 %v1005_v48, 0.0  ;;  %v938_v45 = vmul.f32 %v874_v21, %v6720_v5  ;;  %v808_v0 = vmul.f32 %v6157_v6, %v6722_v60 }
 0x160   :  { %5337 = vmatprep.mubr.f32.mxu0 %v1069_v27  ;;  %v1006_v15 = vadd.f32 %v6171_v14, %v938_v45  ;;  %v876_v61 = vadd.f32 %v6162_v10, %v808_v0 }
 0x161   :  { %v6729_v19 = vpop.permute.xlu1 %689  ;;  %v6731_v54 = vpop.permute.xlu0 %344 }
 0x162   :  { %8888 = vst [vmem:[#allocation97_spill] sm:$0xff] %v6729_v19  ;;  %8889 = vst [vmem:[#allocation98_spill] sm:$0xff] %v6731_v54  ;;  %v1070_v46 = vmax.f32 %v1006_v15, 0.0  ;;  %v939_v35 = vmul.f32 %v875_v33, %v6729_v19  ;;  %v809_v21 = vmul.f32 %v6157_v6, %v6731_v54 }
 0x164   :  { %5338 = vmatmul.mubr.f32.gmra.mrb[50].mxu0 %v1070_v46  ;;  %v1007_v47 = vadd.f32 %v6171_v14, %v939_v35  ;;  %v877_v60 = vadd.f32 %v6162_v10, %v809_v21 }
 0x165   :  { %v6738_v48 = vpop.permute.xlu1 %693  ;;  %v6740_v27 = vpop.permute.xlu0 %348 }
 0x166   :  { %8890 = vst [vmem:[#allocation99_spill] sm:$0xff] %v6738_v48  ;;  %8891 = vst [vmem:[#allocation100_spill] sm:$0xff] %v6740_v27  ;;  %v1071_v45 = vmax.f32 %v1007_v47, 0.0  ;;  %v940_v5 = vmul.f32 %v876_v61, %v6738_v48  ;;  %v810_v33 = vmul.f32 %v6157_v6, %v6740_v27  ;;  %v5960_v47 = vld [vmem:[%s8534_s2] sm:$0x7f] }
 0x167   :  { %v6756_v61 = vrot.slane %v5960_v47, %v6091_v9  ;;  %v6768_v54 = vrot.slane %v5960_v47, %v6112_v38 }
 0x168   :  { %5340 = vmatprep.mubr.f32.mxu0 %v1071_v45  ;;  %v1008_v0 = vadd.f32 %v6171_v14, %v940_v5  ;;  %v878_v21 = vadd.f32 %v6162_v10, %v810_v33 }
 0x169   :  { %v6747_v15 = vpop.permute.xlu1 %700  ;;  %v6749_v46 = vpop.permute.xlu0 %355 }
 0x16a   :  { %8892 = vst [vmem:[#allocation101_spill] sm:$0xff] %v6747_v15  ;;  %8893 = vst [vmem:[#allocation102_spill] sm:$0xff] %v6749_v46  ;;  %v1072_v35 = vmax.f32 %v1008_v0, 0.0  ;;  %v941_v19 = vmul.f32 %v877_v60, %v6747_v15  ;;  %v811_v5 = vmul.f32 %v6157_v6, %v6749_v46 }
 0x16c   :  { %5341 = vmatmul.mubr.f32.gmra.mrb[52].mxu0 %v1072_v35  ;;  %v1009_v45 = vadd.f32 %v6171_v14, %v941_v19  ;;  %v879_v46 = vadd.f32 %v6162_v10, %v811_v5 }
 0x16d   :  { %v6762_v48 = vpop.permute.xlu1 %704  ;;  %v6764_v0 = vpop.permute.xlu0 %359 }
 0x16e   :  { %8894 = vst [vmem:[#allocation103_spill] sm:$0xff] %v6762_v48  ;;  %8895 = vst [vmem:[#allocation104_spill] sm:$0xff] %v6764_v0  ;;  %v1073_v60 = vmax.f32 %v1009_v45, 0.0  ;;  %v942_v15 = vmul.f32 %v878_v21, %v6762_v48  ;;  %v812_v33 = vmul.f32 %v6157_v6, %v6764_v0 }
 0x16f   :  { %v5264_v27 = vpop.f32.mrb[0].mxu0 }
 0x170   :  { %v1489_v35 = vadd.f32 %v5264_v27, %v6756_v61  ;;  %v1165_v19 = vpop.f32.mrb[1].mxu0  ;;  %5343 = vmatprep.mubr.f32.mxu0 %v1073_v60  ;;  %v1010_v9 = vadd.f32 %v6171_v14, %v942_v15  ;;  %v3703_v27 = vld [vmem:[#allocation2 + $0x180] sm:$0xff]  ;;  %v6786_v15 = vld [vmem:[%s8534_s2 + $0x8] sm:$0x7f]  ;;  %v880_v5 = vadd.f32 %v6162_v10, %v812_v33 }
 0x171   :  { %v1488_v20 = vadd.f32 %v6756_v61, %v1165_v19  ;;  %v6776_v45 = vpop.permute.xlu1 %711  ;;  %v6778_v21 = vpop.permute.xlu0 %366  ;;  %v5876_v19 = vpack.c.bf16 %v3704_v16, %v3703_v27 }
 0x172   :  { %8896 = vst [vmem:[#allocation105_spill] sm:$0xff] %v6776_v45  ;;  %8897 = vst [vmem:[#allocation106_spill] sm:$0xff] %v6778_v21  ;;  %v1553_v47 = vmul.f32 %v1489_v35, %v6193_v30  ;;  %v1074_v38 = vmax.f32 %v1010_v9, 0.0  ;;  %v943_v48 = vmul.f32 %v879_v46, %v6776_v45  ;;  %v813_v9 = vmul.f32 %v6157_v6, %v6778_v21 }
 0x173   :  { %v1552_v0 = vmul.f32 %v1488_v20, %v6179_v17  ;;  %5877 = vmatprep.subr.bf16.mxu1 %v5876_v19 }
 0x174   :  { %5344 = vmatmul.mubr.f32.gmra.mrb[54].mxu0 %v1074_v38  ;;  %v1621_v60 = vadd.f32 %v6768_v54, %v1553_v47  ;;  %v1011_v20 = vadd.f32 %v6171_v14, %v943_v48  ;;  %v6801_v38 = vrot.slane %v6786_v15, %v6072_v3 }
 0x175   :  { %v6792_v35 = vpop.permute.xlu1 %715  ;;  %v6794_v46 = vpop.permute.xlu0 %370  ;;  %v1620_v45 = vadd.f32 %v6768_v54, %v1552_v0  ;;  %v881_v0 = vadd.f32 %v6162_v10, %v813_v9 }
 0x176   :  { %8898 = vst [vmem:[#allocation107_spill] sm:$0xff] %v6792_v35  ;;  %8899 = vst [vmem:[#allocation108_spill] sm:$0xff] %v6794_v46  ;;  %v944_v28 = vmul.f32 %v880_v5, %v6792_v35  ;;  %v1075_v16 = vmax.f32 %v1011_v20, 0.0  ;;  %v814_v27 = vmul.f32 %v6157_v6, %v6794_v46  ;;  %v1685_v55 = vmax.f32 %v1621_v60, 0.0 }
 0x177   :  { %v5267_v33 = vpop.f32.mrb[2].mxu0  ;;  %v1684_v47 = vmax.f32 %v1620_v45, 0.0 }
 0x178   :  { %v1491_v21 = vadd.f32 %v5267_v33, %v6756_v61  ;;  %v1175_v62 = vpop.f32.mrb[3].mxu0  ;;  %v1012_v48 = vadd.f32 %v6171_v14, %v944_v28  ;;  %5346 = vmatprep.mubr.f32.mxu0 %v1075_v16  ;;  %v6816_v33 = vrot.slane %v6786_v15, %v6069_v2  ;;  %v2708_v28 = vmul.f32 %v6801_v38, %v6166_v12 }
 0x179   :  { %v1490_v5 = vadd.f32 %v6756_v61, %v1175_v62  ;;  %v6809_v35 = vpop.permute.xlu1 %722  ;;  %5390 = vmatprep.mubr.f32.mxu1 %v1684_v47  ;;  %v6811_v3 = vpop.permute.xlu0 %377  ;;  %v882_v9 = vadd.f32 %v6162_v10, %v814_v27 }
 0x17a   :  { %8900 = vst [vmem:[#allocation109_spill] sm:$0xff] %v6809_v35  ;;  %8901 = vst [vmem:[#allocation110_spill] sm:$0xff] %v6811_v3  ;;  %v1555_v45 = vmul.f32 %v1491_v21, %v6220_v51  ;;  %5391 = vmatmul.mubr.f32.vlgmr.msra.gmra.mrb[0].mxu1 %v1685_v55  ;;  %v1076_v20 = vmax.f32 %v1012_v48, 0.0  ;;  %v945_v62 = vmul.f32 %v881_v0, %v6809_v35 }
 0x17b   :  { %v1554_v60 = vmul.f32 %v1490_v5, %v6207_v40  ;;  %5879 = vmatpush3.bf16.msra.mxu1 %v5876_v19  ;;  %v815_v55 = vmul.f32 %v6157_v6, %v6811_v3  ;;  %v2776_v19 = vadd.f32 %v6816_v33, %v2708_v28 }
 0x17c   :  { %5347 = vmatmul.mubr.f32.gmra.mrb[56].mxu0 %v1076_v20  ;;  %v1623_v16 = vadd.f32 %v6768_v54, %v1555_v45  ;;  %v1013_v47 = vadd.f32 %v6171_v14, %v945_v62  ;;  %v2709_v62 = vmul.f32 %v6801_v38, %v6181_v18 }
 0x17d   :  { %v6826_v21 = vpop.permute.xlu1 %726  ;;  %v6828_v2 = vpop.permute.xlu0 %381  ;;  %v1622_v12 = vadd.f32 %v6768_v54, %v1554_v60  ;;  %v883_v60 = vadd.f32 %v6162_v10, %v815_v55  ;;  %v3705_v55 = vld [vmem:[#allocation2 + $0x190] sm:$0xff] }
 0x17e   :  { %8902 = vst [vmem:[#allocation111_spill] sm:$0xff] %v6826_v21  ;;  %v946_v48 = vmul.f32 %v882_v9, %v6826_v21  ;;  %v1077_v27 = vmax.f32 %v1013_v47, 0.0  ;;  %v816_v45 = vmul.f32 %v6157_v6, %v6828_v2  ;;  %v1687_v3 = vmax.f32 %v1623_v16, 0.0 }
 0x17f   :  { %v5270_v0 = vpop.f32.mrb[4].mxu0  ;;  %v1686_v5 = vmax.f32 %v1622_v12, 0.0  ;;  %v2710_v12 = vmul.f32 %v6801_v38, %v6164_v11 }
 0x180   :  { %v1493_v20 = vadd.f32 %v5270_v0, %v6756_v61  ;;  %v1185_v35 = vpop.f32.mrb[5].mxu0  ;;  %v1014_v46 = vadd.f32 %v6171_v14, %v946_v48  ;;  %5349 = vmatprep.mubr.f32.mxu0 %v1077_v27  ;;  %v3706_v27 = vld [vmem:[#allocation2 + $0x198] sm:$0xff]  ;;  %v884_v21 = vadd.f32 %v6162_v10, %v816_v45 }
 0x181   :  { %v1492_v9 = vadd.f32 %v6756_v61, %v1185_v35  ;;  %v6842_v28 = vpop.permute.xlu1 %733  ;;  %5393 = vmatprep.mubr.f32.mxu1 %v1686_v5  ;;  %v6844_v47 = vpop.permute.xlu0 %388  ;;  %v6855_v5 = vrot.slane %v6786_v15, %v6105_v29  ;;  %v2778_v29 = vadd.f32 %v6816_v33, %v2710_v12  ;;  %v2711_v15 = vmul.f32 %v6801_v38, %v6195_v31 }
 0x182   :  { %8903 = vst [vmem:[#allocation112_spill] sm:$0xff] %v6842_v28  ;;  %8904 = vst [vmem:[#allocation113_spill] sm:$0xff] %v6844_v47  ;;  %v1557_v16 = vmul.f32 %v1493_v20, %v6242_v8  ;;  %5394 = vmatmul.mubr.f32.gmra.mrb[2].mxu1 %v1687_v3  ;;  %v1078_v48 = vmax.f32 %v1014_v46, 0.0  ;;  %v817_v18 = vmul.f32 %v6157_v6, %v6844_v47 }
 0x183   :  { %v1556_v0 = vmul.f32 %v1492_v9, %v6229_v58  ;;  %v947_v35 = vmul.f32 %v883_v60, %v6842_v28  ;;  %v5880_v3 = vpack.c.bf16 %v3706_v27, %v3705_v55  ;;  %v2777_v46 = vadd.f32 %v6816_v33, %v2709_v62 }
 0x184   :  { %5350 = vmatmul.mubr.f32.gmra.mrb[58].mxu0 %v1078_v48  ;;  %v1625_v11 = vadd.f32 %v6768_v54, %v1557_v16  ;;  %v2840_v47 = vmul.f32 %v2776_v19, %v6179_v17  ;;  %v2712_v16 = vmul.f32 %v6801_v38, %v6209_v41  ;;  %v885_v48 = vadd.f32 %v6162_v10, %v817_v18 }
 0x185   :  { %v6860_v20 = vpop.permute.xlu1 %737  ;;  %v6862_v9 = vpop.permute.xlu0 %392  ;;  %v1015_v60 = vadd.f32 %v6171_v14, %v947_v35  ;;  %v1624_v28 = vadd.f32 %v6768_v54, %v1556_v0  ;;  %5881 = vmatprep.subr.bf16.mxu1 %v5880_v3 }
 0x186   :  { %8905 = vst [vmem:[#allocation114_spill] sm:$0xff] %v6860_v20  ;;  %v818_v45 = vmul.f32 %v6157_v6, %v6862_v9  ;;  %v948_v62 = vmul.f32 %v884_v21, %v6860_v20  ;;  %5883 = vmatpush3.bf16.msra.mxu1 %v5880_v3  ;;  %v1689_v27 = vmax.f32 %v1625_v11, 0.0  ;;  %v2908_v18 = vadd.f32 %v6855_v5, %v2840_v47 }
 0x187   :  { %v5273_v35 = vpop.f32.mrb[6].mxu0  ;;  %v1079_v0 = vmax.f32 %v1015_v60, 0.0  ;;  %v1688_v55 = vmax.f32 %v1624_v28, 0.0  ;;  %v2841_v28 = vmul.f32 %v2777_v46, %v6193_v30  ;;  %v2713_v47 = vmul.f32 %v6801_v38, %v6222_v52 }
 0x188   :  { %v886_v19 = vadd.f32 %v6162_v10, %v818_v45  ;;  %v1495_v12 = vadd.f32 %v5273_v35, %v6756_v61  ;;  %v1195_v31 = vpop.f32.mrb[7].mxu0  ;;  %v1016_v6 = vadd.f32 %v6171_v14, %v948_v62  ;;  %v2779_v45 = vadd.f32 %v6816_v33, %v2711_v15 }
 0x189   :  { %v1494_v21 = vadd.f32 %v6756_v61, %v1195_v31  ;;  %5352 = vmatprep.mubr.f32.mxu0 %v1079_v0  ;;  %v6880_v17 = vpop.permute.xlu1 %748  ;;  %5396 = vmatprep.mubr.f32.mxu1 %v1688_v55  ;;  %v6882_v41 = vpop.permute.xlu0 %744  ;;  %v2780_v62 = vadd.f32 %v6816_v33, %v2712_v16  ;;  %v2842_v0 = vmul.f32 %v2778_v29, %v6207_v40 }
 0x18a   :  { %8906 = vst [vmem:[#allocation115_spill] sm:$0xff] %v6880_v17  ;;  %8907 = vst [vmem:[#allocation116_spill] sm:$0xff] %v6882_v41  ;;  %v1559_v10 = vmul.f32 %v1495_v12, %v6264_v37  ;;  %5397 = vmatmul.mubr.f32.gmra.mrb[4].mxu1 %v1689_v27  ;;  %v1080_v3 = vmax.f32 %v1016_v6, 0.0  ;;  %v949_v11 = vmul.f32 %v885_v48, %v6882_v41 }
 0x18b   :  { %v950_v60 = vmul.f32 %v886_v19, %v6880_v17  ;;  %v1558_v35 = vmul.f32 %v1494_v21, %v6251_v25  ;;  %v2714_v19 = vmul.f32 %v6801_v38, %v6231_v59  ;;  %v2909_v16 = vadd.f32 %v6855_v5, %v2841_v28 }
 0x18c   :  { %5353 = vmatmul.mubr.f32.gmra.mrb[60].mxu0 %v1080_v3  ;;  %v1017_v46 = vadd.f32 %v6171_v14, %v949_v11  ;;  %v1627_v48 = vadd.f32 %v6768_v54, %v1559_v10  ;;  %v2843_v29 = vmul.f32 %v2779_v45, %v6220_v51  ;;  %v2844_v52 = vmul.f32 %v2780_v62, %v6229_v58 }
 0x18d   :  { %v1018_v55 = vadd.f32 %v6171_v14, %v950_v60  ;;  %v1626_v15 = vadd.f32 %v6768_v54, %v1558_v35  ;;  %v2715_v27 = vmul.f32 %v6801_v38, %v6244_v13  ;;  %v2972_v21 = vmax.f32 %v2908_v18, 0.0 }
 0x18e   :  { %v1081_v12 = vmax.f32 %v1017_v46, 0.0  ;;  %v2781_v10 = vadd.f32 %v6816_v33, %v2713_v47  ;;  %v1691_v11 = vmax.f32 %v1627_v48, 0.0  ;;  %v2910_v28 = vadd.f32 %v6855_v5, %v2842_v0  ;;  %v3707_v48 = vld [vmem:[#allocation2 + $0x1a0] sm:$0xff] }
 0x18f   :  { %v1082_v31 = vmax.f32 %v1018_v55, 0.0  ;;  %v5276_v6 = vpop.f32.mrb[8].mxu0  ;;  %v1690_v14 = vmax.f32 %v1626_v15, 0.0  ;;  %v2782_v60 = vadd.f32 %v6816_v33, %v2714_v19  ;;  %v2716_v45 = vmul.f32 %v6801_v38, %v6253_v26  ;;  %v3708_v19 = vld [vmem:[#allocation2 + $0x1a8] sm:$0xff] }
 0x190   :  { %v1497_v59 = vadd.f32 %v5276_v6, %v6756_v61  ;;  %v1205_v3 = vpop.f32.mrb[9].mxu0  ;;  %5355 = vmatprep.mubr.f32.mxu0 %v1081_v12  ;;  %v2973_v18 = vmax.f32 %v2909_v16, 0.0  ;;  %v2911_v35 = vadd.f32 %v6855_v5, %v2843_v29  ;;  %v2912_v47 = vadd.f32 %v6855_v5, %v2844_v52 }
 0x191   :  { %v1496_v62 = vadd.f32 %v6756_v61, %v1205_v3  ;;  %5356 = vmatmul.mubr.f32.gmra.mrb[62].mxu0 %v1082_v31  ;;  %5399 = vmatprep.mubr.f32.mxu1 %v1690_v14  ;;  %v2783_v0 = vadd.f32 %v6816_v33, %v2715_v27  ;;  %v2845_v55 = vmul.f32 %v2781_v10, %v6242_v8  ;;  %v2974_v12 = vmax.f32 %v2910_v28, 0.0 }
 0x192   :  { %v1561_v13 = vmul.f32 %v1497_v59, %v6286_v1  ;;  %5400 = vmatmul.mubr.f32.gmra.mrb[6].mxu1 %v1691_v11  ;;  %5518 = vmatprep.mubr.f32.mxu0 %v2972_v21  ;;  %v2846_v26 = vmul.f32 %v2782_v60, %v6251_v25  ;;  %v2717_v15 = vmul.f32 %v6801_v38, %v6266_v42  ;;  %v2975_v14 = vmax.f32 %v2911_v35, 0.0 }
 0x193   :  { %v1560_v46 = vmul.f32 %v1496_v62, %v6273_v50  ;;  %v5884_v31 = vpack.c.bf16 %v3708_v19, %v3707_v48  ;;  %v2784_v29 = vadd.f32 %v6816_v33, %v2716_v45  ;;  %v2847_v27 = vmul.f32 %v2783_v0, %v6264_v37 }
 0x194   :  { %v1629_v16 = vadd.f32 %v6768_v54, %v1561_v13  ;;  %v2718_v6 = vmul.f32 %v6801_v38, %v6275_v53  ;;  %v2976_v21 = vmax.f32 %v2912_v47, 0.0  ;;  %v2913_v59 = vadd.f32 %v6855_v5, %v2845_v55 }
 0x195   :  { %5519 = vmatmul.mubr.f32.vlgmr.msra.gmra.mrb[64].mxu0 %v2973_v18  ;;  %v1628_v52 = vadd.f32 %v6768_v54, %v1560_v46  ;;  %5885 = vmatprep.subr.bf16.mxu1 %v5884_v31  ;;  %v2914_v3 = vadd.f32 %v6855_v5, %v2846_v26  ;;  %v2848_v11 = vmul.f32 %v2784_v29, %v6273_v50 }
 0x196   :  { %5521 = vmatprep.mubr.f32.mxu0 %v2974_v12  ;;  %5887 = vmatpush3.bf16.msra.mxu1 %v5884_v31  ;;  %v2785_v28 = vadd.f32 %v6816_v33, %v2717_v15  ;;  %v2719_v60 = vmul.f32 %v6801_v38, %v6288_v4  ;;  %v1693_v62 = vmax.f32 %v1629_v16, 0.0  ;;  %v2720_v13 = vmul.f32 %v6801_v38, %v6297_v24 }
 0x197   :  { %v5279_v10 = vpop.f32.mrb[10].mxu0  ;;  %v1692_v42 = vmax.f32 %v1628_v52, 0.0  ;;  %v2915_v35 = vadd.f32 %v6855_v5, %v2847_v27  ;;  %v2786_v47 = vadd.f32 %v6816_v33, %v2718_v6  ;;  %v2977_v55 = vmax.f32 %v2913_v59, 0.0 }
 0x198   :  { %v1499_v53 = vadd.f32 %v5279_v10, %v6756_v61  ;;  %v1215_v45 = vpop.f32.mrb[11].mxu0  ;;  %v2849_v4 = vmul.f32 %v2785_v28, %v6286_v1  ;;  %v2978_v26 = vmax.f32 %v2914_v3, 0.0  ;;  %v2916_v24 = vadd.f32 %v6855_v5, %v2848_v11 }
 0x199   :  { %v1498_v18 = vadd.f32 %v6756_v61, %v1215_v45  ;;  %5402 = vmatprep.mubr.f32.mxu1 %v1692_v42  ;;  %5522 = vmatmul.mubr.f32.gmra.mrb[66].mxu0 %v2975_v14  ;;  %v2787_v48 = vadd.f32 %v6816_v33, %v2719_v60  ;;  %v2721_v19 = vmul.f32 %v6801_v38, %v6310_v44  ;;  %v2979_v52 = vmax.f32 %v2915_v35, 0.0 }
 0x19a   :  { %v1563_v0 = vmul.f32 %v1499_v53, %v6308_v43  ;;  %5403 = vmatmul.mubr.f32.gmra.mrb[8].mxu1 %v1693_v62  ;;  %5524 = vmatprep.mubr.f32.mxu0 %v2976_v21  ;;  %v2850_v12 = vmul.f32 %v2786_v47, %v6295_v23  ;;  %v2788_v16 = vadd.f32 %v6816_v33, %v2720_v13  ;;  %v2980_v10 = vmax.f32 %v2916_v24, 0.0  ;;  %v8908_v53 = vld [vmem:[#allocation27_spill] sm:$0xff]  ;;  %v8909_v62 = vld [vmem:[#allocation25_spill] sm:$0xff]  ;;  %v3709_v24 = vld [vmem:[#allocation2 + $0x1b0] sm:$0xff] }
 0x19b   :  { %v1562_v46 = vmul.f32 %v1498_v18, %v6295_v23  ;;  %v2722_v31 = vmul.f32 %v6801_v38, %v6319_v57  ;;  %v2917_v27 = vadd.f32 %v6855_v5, %v2849_v4  ;;  %v2851_v6 = vmul.f32 %v2787_v48, %v6308_v43  ;;  %v3710_v48 = vld [vmem:[#allocation2 + $0x1b8] sm:$0xff] }
 0x19c   :  { %v1631_v15 = vadd.f32 %v6768_v54, %v1563_v0  ;;  %v2723_v44 = vmul.f32 %v6801_v38, %v6332_v22  ;;  %v2852_v42 = vmul.f32 %v2788_v16, %v6317_v56  ;;  %v2789_v59 = vadd.f32 %v6816_v33, %v2721_v19  ;;  %v8911_v19 = vld [vmem:[#allocation29_spill] sm:$0xff] }
 0x19d   :  { %5525 = vmatmul.mubr.f32.gmra.mrb[68].mxu0 %v2977_v55  ;;  %v1630_v29 = vadd.f32 %v6768_v54, %v1562_v46  ;;  %v2918_v28 = vadd.f32 %v6855_v5, %v2850_v12  ;;  %v2790_v60 = vadd.f32 %v6816_v33, %v2722_v31  ;;  %v2724_v45 = vmul.f32 %v6801_v38, %v8908_v53  ;;  %v8910_v55 = vld [vmem:[#allocation26_spill] sm:$0xff] }
 0x19e   :  { %5527 = vmatprep.mubr.f32.mxu0 %v2978_v26  ;;  %v1695_v11 = vmax.f32 %v1631_v15, 0.0  ;;  %v2981_v18 = vmax.f32 %v2917_v27, 0.0  ;;  %v2919_v35 = vadd.f32 %v6855_v5, %v2851_v6  ;;  %v2853_v47 = vmul.f32 %v2789_v59, %v8909_v62 }
 0x19f   :  { %v5282_v14 = vpop.f32.mrb[12].mxu0  ;;  %v1694_v21 = vmax.f32 %v1630_v29, 0.0  ;;  %v2791_v0 = vadd.f32 %v6816_v33, %v2723_v44  ;;  %v2920_v46 = vadd.f32 %v6855_v5, %v2852_v42  ;;  %v2854_v26 = vmul.f32 %v2790_v60, %v8910_v55  ;;  %v8913_v44 = vld [vmem:[#allocation28_spill] sm:$0xff]  ;;  %v8915_v60 = vld [vmem:[#allocation30_spill] sm:$0xff] }
 0x1a0   :  { %v1501_v57 = vadd.f32 %v5282_v14, %v6756_v61  ;;  %v1225_v3 = vpop.f32.mrb[13].mxu0  ;;  %v2725_v15 = vmul.f32 %v6801_v38, %v8911_v19  ;;  %v2982_v12 = vmax.f32 %v2918_v28, 0.0  ;;  %v5888_v31 = vpack.c.bf16 %v3710_v48, %v3709_v24  ;;  %v8917_v19 = vld [vmem:[#allocation32_spill] sm:$0xff] }
 0x1a1   :  { %v1500_v22 = vadd.f32 %v6756_v61, %v1225_v3  ;;  %5405 = vmatprep.mubr.f32.mxu1 %v1694_v21  ;;  %5528 = vmatmul.mubr.f32.gmra.mrb[70].mxu0 %v2979_v52  ;;  %v2792_v29 = vadd.f32 %v6816_v33, %v2724_v45  ;;  %v8912_v52 = vld [vmem:[#allocation31_spill] sm:$0xff]  ;;  %v2855_v14 = vmul.f32 %v2791_v0, %v8913_v44  ;;  %v8914_v21 = vld [vmem:[#allocation33_spill] sm:$0xff]  ;;  %v2983_v42 = vmax.f32 %v2919_v35, 0.0 }
 0x1a2   :  { %v1565_v13 = vmul.f32 %v1501_v57, %v8909_v62  ;;  %5406 = vmatmul.mubr.f32.gmra.mrb[10].mxu1 %v1695_v11  ;;  %5530 = vmatprep.mubr.f32.mxu0 %v2980_v10  ;;  %v2726_v27 = vmul.f32 %v6801_v38, %v8912_v52  ;;  %v2727_v10 = vmul.f32 %v6801_v38, %v8914_v21  ;;  %v2984_v11 = vmax.f32 %v2920_v46, 0.0  ;;  %v8972_v62 = vld [vmem:[#allocation89_spill] sm:$0xff] }
 0x1a3   :  { %v1564_v4 = vmul.f32 %v1500_v22, %v6317_v56  ;;  %v2921_v59 = vadd.f32 %v6855_v5, %v2853_v47  ;;  %5889 = vmatprep.subr.bf16.mxu1 %v5888_v31  ;;  %v2922_v28 = vadd.f32 %v6855_v5, %v2854_v26  ;;  %v2856_v53 = vmul.f32 %v2792_v29, %v8915_v60  ;;  %v8916_v22 = vld [vmem:[#allocation35_spill] sm:$0xff]  ;;  %v8918_v29 = vld [vmem:[#allocation34_spill] sm:$0xff] }
 0x1a4   :  { %v1633_v16 = vadd.f32 %v6768_v54, %v1565_v13  ;;  %5891 = vmatpush3.bf16.msra.mxu1 %v5888_v31  ;;  %v2793_v45 = vadd.f32 %v6816_v33, %v2725_v15  ;;  %v2728_v13 = vmul.f32 %v6801_v38, %v8916_v22  ;;  %v2794_v47 = vadd.f32 %v6816_v33, %v2726_v27 }
 0x1a5   :  { %5531 = vmatmul.mubr.f32.gmra.mrb[72].mxu0 %v2981_v18  ;;  %v1632_v6 = vadd.f32 %v6768_v54, %v1564_v4  ;;  %v2923_v46 = vadd.f32 %v6855_v5, %v2855_v14  ;;  %v2795_v26 = vadd.f32 %v6816_v33, %v2727_v10  ;;  %v2985_v48 = vmax.f32 %v2921_v59, 0.0  ;;  %v8920_v10 = vld [vmem:[#allocation36_spill] sm:$0xff] }
 0x1a6   :  { %5533 = vmatprep.mubr.f32.mxu0 %v2982_v12  ;;  %v1697_v35 = vmax.f32 %v1633_v16, 0.0  ;;  %v2857_v15 = vmul.f32 %v2793_v45, %v8917_v19  ;;  %v2986_v16 = vmax.f32 %v2922_v28, 0.0  ;;  %v2924_v31 = vadd.f32 %v6855_v5, %v2856_v53  ;;  %v8922_v53 = vld [vmem:[#allocation38_spill] sm:$0xff] }
 0x1a7   :  { %v5285_v57 = vpop.f32.mrb[14].mxu0  ;;  %v1696_v3 = vmax.f32 %v1632_v6, 0.0  ;;  %v2858_v52 = vmul.f32 %v2794_v47, %v8918_v29  ;;  %v2796_v27 = vadd.f32 %v6816_v33, %v2728_v13  ;;  %v8919_v6 = vld [vmem:[#allocation37_spill] sm:$0xff]  ;;  %v2731_v22 = vmul.f32 %v6801_v38, %v6430_v34 }
 0x1a8   :  { %v1503_v18 = vadd.f32 %v5285_v57, %v6756_v61  ;;  %v1235_v0 = vpop.f32.mrb[15].mxu0  ;;  %v2729_v14 = vmul.f32 %v6801_v38, %v8919_v6  ;;  %v8921_v57 = vld [vmem:[#allocation39_spill] sm:$0xff]  ;;  %v2925_v28 = vadd.f32 %v6855_v5, %v2857_v15  ;;  %v2732_v15 = vmul.f32 %v6801_v38, %v6439_v63 }
 0x1a9   :  { %v1502_v4 = vadd.f32 %v6756_v61, %v1235_v0  ;;  %5408 = vmatprep.mubr.f32.mxu1 %v1696_v3  ;;  %5534 = vmatmul.mubr.f32.gmra.mrb[74].mxu0 %v2983_v42  ;;  %v2859_v42 = vmul.f32 %v2795_v26, %v8920_v10  ;;  %v2730_v59 = vmul.f32 %v6801_v38, %v8921_v57  ;;  %v2988_v0 = vmax.f32 %v2924_v31, 0.0  ;;  %v3711_v57 = vld [vmem:[#allocation2 + $0x1c0] sm:$0xff] }
 0x1aa   :  { %v1567_v24 = vmul.f32 %v1503_v18, %v8913_v44  ;;  %5409 = vmatmul.mubr.f32.gmra.mrb[12].mxu1 %v1697_v35  ;;  %5536 = vmatprep.mubr.f32.mxu0 %v2984_v11  ;;  %v2987_v11 = vmax.f32 %v2923_v46, 0.0  ;;  %v2860_v45 = vmul.f32 %v2796_v27, %v8922_v53  ;;  %v2926_v35 = vadd.f32 %v6855_v5, %v2858_v52  ;;  %v8923_v52 = vld [vmem:[#allocation40_spill] sm:$0xff] }
 0x1ab   :  { %v1566_v12 = vmul.f32 %v1502_v4, %v8910_v55  ;;  %v2797_v47 = vadd.f32 %v6816_v33, %v2729_v14  ;;  %v2927_v46 = vadd.f32 %v6855_v5, %v2859_v42  ;;  %v2799_v6 = vadd.f32 %v6816_v33, %v2731_v22  ;;  %v8924_v14 = vld [vmem:[#allocation43_spill] sm:$0xff]  ;;  %v8955_v55 = vld [vmem:[#allocation73_spill] sm:$0xff] }
 0x1ac   :  { %v1635_v21 = vadd.f32 %v6768_v54, %v1567_v24  ;;  %v2928_v31 = vadd.f32 %v6855_v5, %v2860_v45  ;;  %v2990_v42 = vmax.f32 %v2926_v35, 0.0 }
 0x1ad   :  { %5537 = vmatmul.mubr.f32.gmra.mrb[76].mxu0 %v2985_v48  ;;  %v1634_v3 = vadd.f32 %v6768_v54, %v1566_v12  ;;  %v2798_v48 = vadd.f32 %v6816_v33, %v2730_v59  ;;  %v2861_v27 = vmul.f32 %v2797_v47, %v8923_v52  ;;  %v3712_v59 = vld [vmem:[#allocation2 + $0x1c8] sm:$0xff]  ;;  %v2991_v47 = vmax.f32 %v2927_v46, 0.0 }
 0x1ae   :  { %5539 = vmatprep.mubr.f32.mxu0 %v2986_v16  ;;  %v1699_v24 = vmax.f32 %v1635_v21, 0.0  ;;  %v2989_v16 = vmax.f32 %v2925_v28, 0.0  ;;  %v2733_v21 = vmul.f32 %v6801_v38, %v8924_v14  ;;  %v8926_v28 = vld [vmem:[#allocation41_spill] sm:$0xff]  ;;  %v5892_v45 = vpack.c.bf16 %v3712_v59, %v3711_v57  ;;  %v8928_v14 = vld [vmem:[#allocation44_spill] sm:$0xff] }
 0x1af   :  { %v5288_v13 = vpop.f32.mrb[16].mxu0  ;;  %v1698_v18 = vmax.f32 %v1634_v3, 0.0  ;;  %v8925_v3 = vld [vmem:[#allocation45_spill] sm:$0xff]  ;;  %v2992_v35 = vmax.f32 %v2928_v31, 0.0 }
 0x1b0   :  { %v1505_v4 = vadd.f32 %v5288_v13, %v6756_v61  ;;  %v1245_v26 = vpop.f32.mrb[17].mxu0  ;;  %5893 = vmatprep.subr.bf16.mxu1 %v5892_v45 }
 0x1b1   :  { %v1504_v34 = vadd.f32 %v6756_v61, %v1245_v26  ;;  %5411 = vmatprep.mubr.f32.mxu1 %v1698_v18  ;;  %5540 = vmatmul.mubr.f32.gmra.mrb[78].mxu0 %v2987_v11  ;;  %v2734_v11 = vmul.f32 %v6801_v38, %v8925_v3  ;;  %v2862_v18 = vmul.f32 %v2798_v48, %v8926_v28 }
 0x1b2   :  { %v1569_v12 = vmul.f32 %v1505_v4, %v8917_v19  ;;  %5412 = vmatmul.mubr.f32.gmra.mrb[14].mxu1 %v1699_v24  ;;  %5542 = vmatprep.mubr.f32.mxu0 %v2988_v0  ;;  %v2800_v0 = vadd.f32 %v6816_v33, %v2732_v15  ;;  %v2735_v4 = vmul.f32 %v6801_v38, %v6474_v32  ;;  %v8927_v24 = vld [vmem:[#allocation42_spill] sm:$0xff] }
 0x1b3   :  { %v1568_v63 = vmul.f32 %v1504_v34, %v8915_v60  ;;  %v2929_v26 = vadd.f32 %v6855_v5, %v2861_v27  ;;  %v2863_v34 = vmul.f32 %v2799_v6, %v8927_v24  ;;  %v2736_v48 = vmul.f32 %v6801_v38, %v6483_v39  ;;  %5895 = vmatpush3.bf16.msra.mxu1 %v5892_v45 }
 0x1b4   :  { %v1637_v13 = vadd.f32 %v6768_v54, %v1569_v12  ;;  %v2801_v12 = vadd.f32 %v6816_v33, %v2733_v21  ;;  %v2802_v46 = vadd.f32 %v6816_v33, %v2734_v11  ;;  %v2930_v27 = vadd.f32 %v6855_v5, %v2862_v18 }
 0x1b5   :  { %5543 = vmatmul.mubr.f32.gmra.mrb[80].mxu0 %v2989_v16  ;;  %v1636_v22 = vadd.f32 %v6768_v54, %v1568_v63  ;;  %v2864_v63 = vmul.f32 %v2800_v0, %v8928_v14  ;;  %v2803_v39 = vadd.f32 %v6816_v33, %v2735_v4  ;;  %v2993_v59 = vmax.f32 %v2929_v26, 0.0  ;;  %v8929_v0 = vld [vmem:[#allocation49_spill] sm:$0xff] }
 0x1b6   :  { %5545 = vmatprep.mubr.f32.mxu0 %v2990_v42  ;;  %v1701_v42 = vmax.f32 %v1637_v13, 0.0  ;;  %v2865_v21 = vmul.f32 %v2801_v12, %v6472_v36  ;;  %v2866_v3 = vmul.f32 %v2802_v46, %v6481_v49  ;;  %v2804_v11 = vadd.f32 %v6816_v33, %v2736_v48  ;;  %v8930_v12 = vld [vmem:[#allocation48_spill] sm:$0xff]  ;;  %v8932_v46 = vld [vmem:[#allocation50_spill] sm:$0xff] }
 0x1b7   :  { %v5291_v15 = vpop.f32.mrb[18].mxu0  ;;  %v1700_v16 = vmax.f32 %v1636_v22, 0.0  ;;  %v2931_v18 = vadd.f32 %v6855_v5, %v2863_v34  ;;  %v2932_v45 = vadd.f32 %v6855_v5, %v2864_v63  ;;  %v2737_v22 = vmul.f32 %v6801_v38, %v8929_v0 }
 0x1b8   :  { %v1507_v32 = vadd.f32 %v5291_v15, %v6756_v61  ;;  %v1255_v31 = vpop.f32.mrb[19].mxu0  ;;  %v2867_v15 = vmul.f32 %v2803_v39, %v8930_v12  ;;  %v2868_v34 = vmul.f32 %v2804_v11, %v8932_v46  ;;  %v2739_v63 = vmul.f32 %v6801_v38, %v6518_v7 }
 0x1b9   :  { %v1506_v6 = vadd.f32 %v6756_v61, %v1255_v31  ;;  %5414 = vmatprep.mubr.f32.mxu1 %v1700_v16  ;;  %5546 = vmatmul.mubr.f32.gmra.mrb[82].mxu0 %v2991_v47  ;;  %v2994_v47 = vmax.f32 %v2930_v27, 0.0  ;;  %v2933_v16 = vadd.f32 %v6855_v5, %v2865_v21  ;;  %v8933_v31 = vld [vmem:[#allocation54_spill] sm:$0xff]  ;;  %v2995_v39 = vmax.f32 %v2931_v18, 0.0 }
 0x1ba   :  { %v1571_v57 = vmul.f32 %v1507_v32, %v8920_v10  ;;  %5415 = vmatmul.mubr.f32.gmra.mrb[16].mxu1 %v1701_v42  ;;  %5548 = vmatprep.mubr.f32.mxu0 %v2992_v35  ;;  %v8931_v35 = vld [vmem:[#allocation51_spill] sm:$0xff]  ;;  %v2934_v32 = vadd.f32 %v6855_v5, %v2866_v3  ;;  %v2740_v42 = vmul.f32 %v6801_v38, %v8933_v31  ;;  %v8935_v31 = vld [vmem:[#allocation56_spill] sm:$0xff] }
 0x1bb   :  { %v1570_v13 = vmul.f32 %v1506_v6, %v8918_v29  ;;  %v2738_v26 = vmul.f32 %v6801_v38, %v8931_v35  ;;  %v2935_v11 = vadd.f32 %v6855_v5, %v2867_v15  ;;  %v2997_v3 = vmax.f32 %v2933_v16, 0.0 }
 0x1bc   :  { %v1639_v4 = vadd.f32 %v6768_v54, %v1571_v57  ;;  %v2996_v57 = vmax.f32 %v2932_v45, 0.0  ;;  %v2936_v35 = vadd.f32 %v6855_v5, %v2868_v34  ;;  %v2807_v18 = vadd.f32 %v6816_v33, %v2739_v63  ;;  %v3714_v34 = vld [vmem:[#allocation2 + $0x1d8] sm:$0xff] }
 0x1bd   :  { %5549 = vmatmul.mubr.f32.gmra.mrb[84].mxu0 %v2993_v59  ;;  %v1638_v48 = vadd.f32 %v6768_v54, %v1570_v13  ;;  %v2805_v59 = vadd.f32 %v6816_v33, %v2737_v22  ;;  %v2806_v7 = vadd.f32 %v6816_v33, %v2738_v26  ;;  %v2998_v22 = vmax.f32 %v2934_v32, 0.0 }
 0x1be   :  { %5551 = vmatprep.mubr.f32.mxu0 %v2994_v47  ;;  %v1703_v0 = vmax.f32 %v1639_v4, 0.0  ;;  %v2808_v15 = vadd.f32 %v6816_v33, %v2740_v42  ;;  %v2741_v26 = vmul.f32 %v6801_v38, %v8935_v31  ;;  %v2999_v29 = vmax.f32 %v2935_v11, 0.0 }
 0x1bf   :  { %v5294_v27 = vpop.f32.mrb[20].mxu0  ;;  %v1702_v6 = vmax.f32 %v1638_v48, 0.0  ;;  %v8934_v48 = vld [vmem:[#allocation52_spill] sm:$0xff] }
 0x1c0   :  { %v1509_v13 = vadd.f32 %v5294_v27, %v6756_v61  ;;  %v1265_v21 = vpop.f32.mrb[21].mxu0  ;;  %v2869_v4 = vmul.f32 %v2805_v59, %v8934_v48  ;;  %v8939_v59 = vld [vmem:[#allocation60_spill] sm:$0xff] }
 0x1c1   :  { %v1508_v47 = vadd.f32 %v6756_v61, %v1265_v21  ;;  %5417 = vmatprep.mubr.f32.mxu1 %v1702_v6  ;;  %5552 = vmatmul.mubr.f32.gmra.mrb[86].mxu0 %v2995_v39  ;;  %v8936_v6 = vld [vmem:[#allocation53_spill] sm:$0xff]  ;;  %v3713_v39 = vld [vmem:[#allocation2 + $0x1d0] sm:$0xff]  ;;  %v2743_v42 = vmul.f32 %v6801_v38, %v8939_v59 }
 0x1c2   :  { %v1573_v45 = vmul.f32 %v1509_v13, %v8923_v52  ;;  %5418 = vmatmul.mubr.f32.gmra.mrb[18].mxu1 %v1703_v0  ;;  %5554 = vmatprep.mubr.f32.mxu0 %v2996_v57  ;;  %v2870_v16 = vmul.f32 %v2806_v7, %v8936_v6  ;;  %v8937_v21 = vld [vmem:[#allocation58_spill] sm:$0xff]  ;;  %v8938_v57 = vld [vmem:[#allocation55_spill] sm:$0xff]  ;;  %v5896_v0 = vpack.c.bf16 %v3714_v34, %v3713_v39  ;;  %v8940_v52 = vld [vmem:[#allocation57_spill] sm:$0xff]  ;;  %v3000_v34 = vmax.f32 %v2936_v35, 0.0 }
 0x1c3   :  { %v1572_v27 = vmul.f32 %v1508_v47, %v8922_v53  ;;  %v2742_v63 = vmul.f32 %v6801_v38, %v8937_v21  ;;  %v2871_v32 = vmul.f32 %v2807_v18, %v8938_v57  ;;  %v2872_v47 = vmul.f32 %v2808_v15, %v8940_v52  ;;  %v8941_v53 = vld [vmem:[#allocation62_spill] sm:$0xff] }
 0x1c4   :  { %v1641_v13 = vadd.f32 %v6768_v54, %v1573_v45  ;;  %v2744_v7 = vmul.f32 %v6801_v38, %v8941_v53  ;;  %v2937_v21 = vadd.f32 %v6855_v5, %v2869_v4  ;;  %5897 = vmatprep.subr.bf16.mxu1 %v5896_v0  ;;  %v2809_v45 = vadd.f32 %v6816_v33, %v2741_v26 }
 0x1c5   :  { %5555 = vmatmul.mubr.f32.gmra.mrb[88].mxu0 %v2997_v3  ;;  %v1640_v31 = vadd.f32 %v6768_v54, %v1572_v27  ;;  %v2938_v59 = vadd.f32 %v6855_v5, %v2870_v16  ;;  %5899 = vmatpush3.bf16.msra.mxu1 %v5896_v0  ;;  %v2810_v3 = vadd.f32 %v6816_v33, %v2742_v63  ;;  %v8942_v63 = vld [vmem:[#allocation59_spill] sm:$0xff] }
 0x1c6   :  { %5557 = vmatprep.mubr.f32.mxu0 %v2998_v22  ;;  %v1705_v10 = vmax.f32 %v1641_v13, 0.0  ;;  %v2939_v53 = vadd.f32 %v6855_v5, %v2871_v32  ;;  %v2811_v11 = vadd.f32 %v6816_v33, %v2743_v42  ;;  %v2940_v4 = vadd.f32 %v6855_v5, %v2872_v47  ;;  %v8943_v13 = vld [vmem:[#allocation64_spill] sm:$0xff] }
 0x1c7   :  { %v5297_v18 = vpop.f32.mrb[22].mxu0  ;;  %v1704_v39 = vmax.f32 %v1640_v31, 0.0  ;;  %v2812_v35 = vadd.f32 %v6816_v33, %v2744_v7  ;;  %v3001_v16 = vmax.f32 %v2937_v21, 0.0  ;;  %v2873_v0 = vmul.f32 %v2809_v45, %v8942_v63  ;;  %v8944_v31 = vld [vmem:[#allocation61_spill] sm:$0xff]  ;;  %v8948_v21 = vld [vmem:[#allocation68_spill] sm:$0xff] }
 0x1c8   :  { %v1511_v15 = vadd.f32 %v5297_v18, %v6756_v61  ;;  %v1275_v27 = vpop.f32.mrb[23].mxu0  ;;  %v2745_v32 = vmul.f32 %v6801_v38, %v8943_v13  ;;  %v2874_v18 = vmul.f32 %v2810_v3, %v8944_v31  ;;  %v3002_v7 = vmax.f32 %v2938_v59, 0.0 }
 0x1c9   :  { %v1510_v22 = vadd.f32 %v6756_v61, %v1275_v27  ;;  %5420 = vmatprep.mubr.f32.mxu1 %v1704_v39  ;;  %5558 = vmatmul.mubr.f32.gmra.mrb[90].mxu0 %v2999_v29  ;;  %v8945_v39 = vld [vmem:[#allocation63_spill] sm:$0xff]  ;;  %v8946_v27 = vld [vmem:[#allocation66_spill] sm:$0xff]  ;;  %v2747_v45 = vmul.f32 %v6801_v38, %v8948_v21  ;;  %v3003_v3 = vmax.f32 %v2939_v53, 0.0 }
 0x1ca   :  { %v1575_v26 = vmul.f32 %v1511_v15, %v8927_v24  ;;  %5421 = vmatmul.mubr.f32.gmra.mrb[20].mxu1 %v1705_v10  ;;  %5560 = vmatprep.mubr.f32.mxu0 %v3000_v34  ;;  %v2875_v29 = vmul.f32 %v2811_v11, %v8945_v39  ;;  %v2746_v47 = vmul.f32 %v6801_v38, %v8946_v27  ;;  %v8947_v10 = vld [vmem:[#allocation65_spill] sm:$0xff]  ;;  %v8949_v24 = vld [vmem:[#allocation70_spill] sm:$0xff]  ;;  %v3004_v11 = vmax.f32 %v2940_v4, 0.0 }
 0x1cb   :  { %v1574_v42 = vmul.f32 %v1510_v22, %v8926_v28  ;;  %v2876_v34 = vmul.f32 %v2812_v35, %v8947_v10  ;;  %v2748_v22 = vmul.f32 %v6801_v38, %v8949_v24  ;;  %v2941_v28 = vadd.f32 %v6855_v5, %v2873_v0  ;;  %v8950_v0 = vld [vmem:[#allocation67_spill] sm:$0xff] }
 0x1cc   :  { %v1643_v15 = vadd.f32 %v6768_v54, %v1575_v26  ;;  %v2813_v59 = vadd.f32 %v6816_v33, %v2745_v32  ;;  %v2942_v35 = vadd.f32 %v6855_v5, %v2874_v18  ;;  %v2943_v60 = vadd.f32 %v6855_v5, %v2875_v29 }
 0x1cd   :  { %5561 = vmatmul.mubr.f32.gmra.mrb[92].mxu0 %v3001_v16  ;;  %v1642_v13 = vadd.f32 %v6768_v54, %v1574_v42  ;;  %v2814_v16 = vadd.f32 %v6816_v33, %v2746_v47  ;;  %v2944_v24 = vadd.f32 %v6855_v5, %v2876_v34  ;;  %v2815_v53 = vadd.f32 %v6816_v33, %v2747_v45 }
 0x1ce   :  { %5563 = vmatprep.mubr.f32.mxu0 %v3002_v7  ;;  %v1707_v19 = vmax.f32 %v1643_v15, 0.0  ;;  %v2877_v32 = vmul.f32 %v2813_v59, %v8950_v0  ;;  %v2816_v18 = vadd.f32 %v6816_v33, %v2748_v22  ;;  %v3005_v47 = vmax.f32 %v2941_v28, 0.0  ;;  %v8951_v7 = vld [vmem:[#allocation69_spill] sm:$0xff]  ;;  %v8952_v15 = vld [vmem:[#allocation72_spill] sm:$0xff] }
 0x1cf   :  { %v5300_v27 = vpop.f32.mrb[24].mxu0  ;;  %v1706_v26 = vmax.f32 %v1642_v13, 0.0  ;;  %v2878_v13 = vmul.f32 %v2814_v16, %v8951_v7  ;;  %v2749_v34 = vmul.f32 %v6801_v38, %v8952_v15  ;;  %v3006_v59 = vmax.f32 %v2942_v35, 0.0 }
 0x1d0   :  { %v1513_v42 = vadd.f32 %v5300_v27, %v6756_v61  ;;  %v1285_v21 = vpop.f32.mrb[25].mxu0  ;;  %v8953_v27 = vld [vmem:[#allocation74_spill] sm:$0xff]  ;;  %v3007_v28 = vmax.f32 %v2943_v60, 0.0  ;;  %v2945_v16 = vadd.f32 %v6855_v5, %v2877_v32 }
 0x1d1   :  { %v1512_v4 = vadd.f32 %v6756_v61, %v1285_v21  ;;  %5423 = vmatprep.mubr.f32.mxu1 %v1706_v26  ;;  %5564 = vmatmul.mubr.f32.gmra.mrb[94].mxu0 %v3003_v3  ;;  %v2750_v45 = vmul.f32 %v6801_v38, %v8953_v27  ;;  %v8954_v3 = vld [vmem:[#allocation71_spill] sm:$0xff]  ;;  %v2946_v15 = vadd.f32 %v6855_v5, %v2878_v13  ;;  %v8957_v32 = vld [vmem:[#allocation78_spill] sm:$0xff] }
 0x1d2   :  { %v1577_v29 = vmul.f32 %v1513_v42, %v6472_v36  ;;  %5424 = vmatmul.mubr.f32.gmra.mrb[22].mxu1 %v1707_v19  ;;  %5566 = vmatprep.mubr.f32.mxu0 %v3004_v11  ;;  %v2879_v21 = vmul.f32 %v2815_v53, %v8954_v3  ;;  %v2880_v42 = vmul.f32 %v2816_v18, %v8955_v55  ;;  %v3008_v11 = vmax.f32 %v2944_v24, 0.0  ;;  %v8961_v36 = vld [vmem:[#allocation82_spill] sm:$0xff] }
 0x1d3   :  { %v1576_v26 = vmul.f32 %v1512_v4, %v8928_v14  ;;  %v2817_v27 = vadd.f32 %v6816_v33, %v2749_v34  ;;  %v2818_v4 = vadd.f32 %v6816_v33, %v2750_v45  ;;  %v8956_v14 = vld [vmem:[#allocation76_spill] sm:$0xff]  ;;  %v2752_v13 = vmul.f32 %v6801_v38, %v8957_v32  ;;  %v8958_v45 = vld [vmem:[#allocation75_spill] sm:$0xff] }
 0x1d4   :  { %v1645_v22 = vadd.f32 %v6768_v54, %v1577_v29  ;;  %v2947_v29 = vadd.f32 %v6855_v5, %v2879_v21  ;;  %v2751_v18 = vmul.f32 %v6801_v38, %v8956_v14  ;;  %v2948_v24 = vadd.f32 %v6855_v5, %v2880_v42 }
 0x1d5   :  { %5567 = vmatmul.mubr.f32.gmra.mrb[96].mxu0 %v3005_v47  ;;  %v1644_v19 = vadd.f32 %v6768_v54, %v1576_v26  ;;  %v2754_v42 = vmul.f32 %v6801_v38, %v8961_v36  ;;  %v3009_v44 = vmax.f32 %v2945_v16, 0.0 }
 0x1d6   :  { %5569 = vmatprep.mubr.f32.mxu0 %v3006_v59  ;;  %v1709_v60 = vmax.f32 %v1645_v22, 0.0  ;;  %v2881_v59 = vmul.f32 %v2817_v27, %v8958_v45  ;;  %v2819_v27 = vadd.f32 %v6816_v33, %v2751_v18 }
 0x1d7   :  { %v5303_v53 = vpop.f32.mrb[26].mxu0  ;;  %v1708_v35 = vmax.f32 %v1644_v19, 0.0  ;;  %v8959_v19 = vld [vmem:[#allocation80_spill] sm:$0xff]  ;;  %v2822_v16 = vadd.f32 %v6816_v33, %v2754_v42 }
 0x1d8   :  { %v1515_v47 = vadd.f32 %v5303_v53, %v6756_v61  ;;  %v1295_v26 = vpop.f32.mrb[27].mxu0  ;;  %v2753_v21 = vmul.f32 %v6801_v38, %v8959_v19  ;;  %v8960_v53 = vld [vmem:[#allocation77_spill] sm:$0xff]  ;;  %v2949_v36 = vadd.f32 %v6855_v5, %v2881_v59  ;;  %v8966_v59 = vld [vmem:[#allocation86_spill] sm:$0xff] }
 0x1d9   :  { %v1514_v34 = vadd.f32 %v6756_v61, %v1295_v26  ;;  %5426 = vmatprep.mubr.f32.mxu1 %v1708_v35  ;;  %5570 = vmatmul.mubr.f32.gmra.mrb[98].mxu0 %v3007_v28  ;;  %v2882_v22 = vmul.f32 %v2818_v4, %v8960_v53  ;;  %v3010_v26 = vmax.f32 %v2946_v15, 0.0  ;;  %v2820_v35 = vadd.f32 %v6816_v33, %v2752_v13 }
 0x1da   :  { %v1579_v14 = vmul.f32 %v1515_v47, %v8930_v12  ;;  %5427 = vmatmul.mubr.f32.gmra.mrb[24].mxu1 %v1709_v60  ;;  %5572 = vmatprep.mubr.f32.mxu0 %v3008_v11  ;;  %v3011_v60 = vmax.f32 %v2947_v29, 0.0  ;;  %v2821_v11 = vadd.f32 %v6816_v33, %v2753_v21  ;;  %v3012_v4 = vmax.f32 %v2948_v24, 0.0  ;;  %v8965_v24 = vld [vmem:[#allocation83_spill] sm:$0xff] }
 0x1db   :  { %v1578_v32 = vmul.f32 %v1514_v34, %v6481_v49  ;;  %v2950_v34 = vadd.f32 %v6855_v5, %v2882_v22  ;;  %v8963_v49 = vld [vmem:[#allocation81_spill] sm:$0xff]  ;;  %v2756_v22 = vmul.f32 %v6801_v38, %v8966_v59 }
 0x1dc   :  { %v1647_v28 = vadd.f32 %v6768_v54, %v1579_v14  ;;  %v8962_v14 = vld [vmem:[#allocation79_spill] sm:$0xff]  ;;  %v2884_v13 = vmul.f32 %v2820_v35, %v8963_v49  ;;  %v2885_v12 = vmul.f32 %v2821_v11, %v8965_v24  ;;  %v8967_v35 = vld [vmem:[#allocation85_spill] sm:$0xff] }
 0x1dd   :  { %5573 = vmatmul.mubr.f32.gmra.mrb[100].mxu0 %v3009_v44  ;;  %v1646_v47 = vadd.f32 %v6768_v54, %v1578_v32  ;;  %v2883_v18 = vmul.f32 %v2819_v27, %v8962_v14  ;;  %v8964_v44 = vld [vmem:[#allocation84_spill] sm:$0xff]  ;;  %v3014_v56 = vmax.f32 %v2950_v34, 0.0 }
 0x1de   :  { %5575 = vmatprep.mubr.f32.mxu0 %v3010_v26  ;;  %v2755_v32 = vmul.f32 %v6801_v38, %v8964_v44  ;;  %v1711_v26 = vmax.f32 %v1647_v28, 0.0  ;;  %v3715_v34 = vld [vmem:[#allocation2 + $0x1e0] sm:$0xff] }
 0x1df   :  { %v5306_v15 = vpop.f32.mrb[28].mxu0  ;;  %v1710_v19 = vmax.f32 %v1646_v47, 0.0  ;;  %v2886_v47 = vmul.f32 %v2822_v16, %v8967_v35  ;;  %v2951_v28 = vadd.f32 %v6855_v5, %v2883_v18  ;;  %v8969_v16 = vld [vmem:[#allocation90_spill] sm:$0xff]  ;;  %v3716_v18 = vld [vmem:[#allocation2 + $0x1e8] sm:$0xff] }
 0x1e0   :  { %v1517_v29 = vadd.f32 %v5306_v15, %v6756_v61  ;;  %v1305_v21 = vpop.f32.mrb[29].mxu0  ;;  %v3013_v15 = vmax.f32 %v2949_v36, 0.0  ;;  %v2823_v11 = vadd.f32 %v6816_v33, %v2755_v32  ;;  %v8970_v32 = vld [vmem:[#allocation92_spill] sm:$0xff] }
 0x1e1   :  { %v1516_v42 = vadd.f32 %v6756_v61, %v1305_v21  ;;  %5429 = vmatprep.mubr.f32.mxu1 %v1710_v19  ;;  %5576 = vmatmul.mubr.f32.gmra.mrb[102].mxu0 %v3011_v60  ;;  %v2952_v21 = vadd.f32 %v6855_v5, %v2884_v13  ;;  %v2953_v60 = vadd.f32 %v6855_v5, %v2885_v12  ;;  %v8971_v12 = vld [vmem:[#allocation87_spill] sm:$0xff] }
 0x1e2   :  { %v1581_v27 = vmul.f32 %v1517_v29, %v8934_v48  ;;  %5430 = vmatmul.mubr.f32.gmra.mrb[26].mxu1 %v1711_v26  ;;  %5578 = vmatprep.mubr.f32.mxu0 %v3012_v4  ;;  %v2824_v19 = vadd.f32 %v6816_v33, %v2756_v22  ;;  %v8968_v29 = vld [vmem:[#allocation88_spill] sm:$0xff]  ;;  %v2758_v26 = vmul.f32 %v6801_v38, %v8969_v16  ;;  %v8973_v16 = vld [vmem:[#allocation94_spill] sm:$0xff] }
 0x1e3   :  { %v1580_v44 = vmul.f32 %v1516_v42, %v8932_v46  ;;  %v2757_v4 = vmul.f32 %v6801_v38, %v8968_v29  ;;  %v2759_v42 = vmul.f32 %v6801_v38, %v8970_v32  ;;  %v2954_v13 = vadd.f32 %v6855_v5, %v2886_v47 }
 0x1e4   :  { %v1649_v59 = vadd.f32 %v6768_v54, %v1581_v27  ;;  %v2887_v27 = vmul.f32 %v2823_v11, %v8971_v12  ;;  %v5900_v22 = vpack.c.bf16 %v3716_v18, %v3715_v34  ;;  %v3015_v29 = vmax.f32 %v2951_v28, 0.0  ;;  %v8974_v34 = vld [vmem:[#allocation91_spill] sm:$0xff]  ;;  %v8975_v18 = vld [vmem:[#allocation93_spill] sm:$0xff] }
 0x1e5   :  { %5579 = vmatmul.mubr.f32.gmra.mrb[104].mxu0 %v3013_v15  ;;  %v1648_v36 = vadd.f32 %v6768_v54, %v1580_v44  ;;  %v2888_v23 = vmul.f32 %v2824_v19, %v8972_v62  ;;  %v2760_v15 = vmul.f32 %v6801_v38, %v8973_v16  ;;  %v3016_v1 = vmax.f32 %v2952_v21, 0.0  ;;  %v3718_v16 = vld [vmem:[#allocation2 + $0x1f8] sm:$0xff] }
 0x1e6   :  { %5581 = vmatprep.mubr.f32.mxu0 %v3014_v56  ;;  %v1713_v50 = vmax.f32 %v1649_v59, 0.0  ;;  %5901 = vmatprep.subr.bf16.mxu1 %v5900_v22  ;;  %v2825_v56 = vadd.f32 %v6816_v33, %v2757_v4  ;;  %v2826_v47 = vadd.f32 %v6816_v33, %v2758_v26  ;;  %v3017_v28 = vmax.f32 %v2953_v60, 0.0  ;;  %v8976_v60 = vld [vmem:[#allocation96_spill] sm:$0xff] }
 0x1e7   :  { %v5309_v46 = vpop.f32.mrb[30].mxu0  ;;  %v1712_v48 = vmax.f32 %v1648_v36, 0.0  ;;  %v2827_v19 = vadd.f32 %v6816_v33, %v2759_v42  ;;  %v2955_v59 = vadd.f32 %v6855_v5, %v2887_v27  ;;  %v2956_v4 = vadd.f32 %v6855_v5, %v2888_v23  ;;  %5903 = vmatpush3.bf16.msra.mxu1 %v5900_v22 }
 0x1e8   :  { %v1519_v44 = vadd.f32 %v5309_v46, %v6756_v61  ;;  %v1315_v43 = vpop.f32.mrb[31].mxu0  ;;  %v3018_v46 = vmax.f32 %v2954_v13, 0.0  ;;  %v2889_v26 = vmul.f32 %v2825_v56, %v8974_v34  ;;  %v2761_v32 = vmul.f32 %v6801_v38, %v8976_v60  ;;  %v8978_v13 = vld [vmem:[#allocation98_spill] sm:$0xff]  ;;  %v8980_v56 = vld [vmem:[#allocation97_spill] sm:$0xff] }
 0x1e9   :  { %v1518_v11 = vadd.f32 %v6756_v61, %v1315_v43  ;;  %5432 = vmatprep.mubr.f32.mxu1 %v1712_v48  ;;  %5582 = vmatmul.mubr.f32.gmra.mrb[106].mxu0 %v3015_v29  ;;  %v2890_v43 = vmul.f32 %v2826_v47, %v8975_v18  ;;  %v2828_v48 = vadd.f32 %v6816_v33, %v2760_v15  ;;  %v3717_v29 = vld [vmem:[#allocation2 + $0x1f0] sm:$0xff]  ;;  %v3019_v15 = vmax.f32 %v2955_v59, 0.0 }
 0x1ea   :  { %v1583_v36 = vmul.f32 %v1519_v44, %v8938_v57  ;;  %5433 = vmatmul.mubr.f32.gmra.mrb[28].mxu1 %v1713_v50  ;;  %5584 = vmatprep.mubr.f32.mxu0 %v3016_v1  ;;  %v8977_v1 = vld [vmem:[#allocation95_spill] sm:$0xff]  ;;  %v2762_v27 = vmul.f32 %v6801_v38, %v8978_v13  ;;  %v8979_v44 = vld [vmem:[#allocation100_spill] sm:$0xff]  ;;  %v8981_v59 = vld [vmem:[#allocation102_spill] sm:$0xff] }
 0x1eb   :  { %v1582_v21 = vmul.f32 %v1518_v11, %v8936_v6  ;;  %v2891_v42 = vmul.f32 %v2827_v19, %v8977_v1  ;;  %v2763_v22 = vmul.f32 %v6801_v38, %v8979_v44  ;;  %v2892_v47 = vmul.f32 %v2828_v48, %v8980_v56 }
 0x1ec   :  { %v1651_v50 = vadd.f32 %v6768_v54, %v1583_v36  ;;  %v5904_v11 = vpack.c.bf16 %v3718_v16, %v3717_v29  ;;  %v3020_v6 = vmax.f32 %v2956_v4, 0.0  ;;  %v2957_v19 = vadd.f32 %v6855_v5, %v2889_v26  ;;  %v8983_v29 = vld [vmem:[#allocation101_spill] sm:$0xff] }
 0x1ed   :  { %5585 = vmatmul.mubr.f32.gmra.mrb[108].mxu0 %v3017_v28  ;;  %v1650_v23 = vadd.f32 %v6768_v54, %v1582_v21  ;;  %v2958_v13 = vadd.f32 %v6855_v5, %v2890_v43  ;;  %v2829_v28 = vadd.f32 %v6816_v33, %v2761_v32  ;;  %v2959_v44 = vadd.f32 %v6855_v5, %v2891_v42 }
 0x1ee   :  { %5587 = vmatprep.mubr.f32.mxu0 %v3018_v46  ;;  %v1715_v25 = vmax.f32 %v1651_v50, 0.0  ;;  %5905 = vmatprep.subr.bf16.mxu1 %v5904_v11  ;;  %v2830_v46 = vadd.f32 %v6816_v33, %v2762_v27  ;;  %v2764_v48 = vmul.f32 %v6801_v38, %v8981_v59  ;;  %v2831_v26 = vadd.f32 %v6816_v33, %v2763_v22 }
 0x1ef   :  { %v5312_v60 = vpop.f32.mrb[32].mxu0  ;;  %v1714_v36 = vmax.f32 %v1650_v23, 0.0  ;;  %v2960_v32 = vadd.f32 %v6855_v5, %v2892_v47  ;;  %v3021_v42 = vmax.f32 %v2957_v19, 0.0  ;;  %v8982_v23 = vld [vmem:[#allocation99_spill] sm:$0xff]  ;;  %5907 = vmatpush3.bf16.msra.mxu1 %v5904_v11 }
 0x1f0   :  { %v1521_v21 = vadd.f32 %v5312_v60, %v6756_v61  ;;  %v1325_v57 = vpop.f32.mrb[33].mxu0  ;;  %v2893_v27 = vmul.f32 %v2829_v28, %v8982_v23  ;;  %v2894_v16 = vmul.f32 %v2830_v46, %v8983_v29  ;;  %v8984_v60 = vld [vmem:[#allocation104_spill] sm:$0xff]  ;;  %v3023_v28 = vmax.f32 %v2959_v44, 0.0 }
 0x1f1   :  { %v1520_v4 = vadd.f32 %v6756_v61, %v1325_v57  ;;  %5435 = vmatprep.mubr.f32.mxu1 %v1714_v36  ;;  %5588 = vmatmul.mubr.f32.gmra.mrb[110].mxu0 %v3019_v15  ;;  %v2765_v57 = vmul.f32 %v6801_v38, %v8984_v60  ;;  %v3022_v15 = vmax.f32 %v2958_v13, 0.0  ;;  %v8985_v36 = vld [vmem:[#allocation103_spill] sm:$0xff]  ;;  %v3024_v46 = vmax.f32 %v2960_v32, 0.0  ;;  %v8988_v44 = vld [vmem:[#allocation108_spill] sm:$0xff] }
 0x1f2   :  { %v1585_v43 = vmul.f32 %v1521_v21, %v8942_v63  ;;  %5436 = vmatmul.mubr.f32.gmra.mrb[30].mxu1 %v1715_v25  ;;  %5590 = vmatprep.mubr.f32.mxu0 %v3020_v6  ;;  %v2895_v21 = vmul.f32 %v2831_v26, %v8985_v36  ;;  %v2832_v25 = vadd.f32 %v6816_v33, %v2764_v48  ;;  %v8986_v6 = vld [vmem:[#allocation106_spill] sm:$0xff] }
 0x1f3   :  { %v1584_v50 = vmul.f32 %v1520_v4, %v8940_v52  ;;  %v2766_v47 = vmul.f32 %v6801_v38, %v8986_v6  ;;  %v2961_v4 = vadd.f32 %v6855_v5, %v2893_v27  ;;  %v2962_v13 = vadd.f32 %v6855_v5, %v2894_v16  ;;  %v8989_v27 = vld [vmem:[#allocation110_spill] sm:$0xff] }
 0x1f4   :  { %v1653_v22 = vadd.f32 %v6768_v54, %v1585_v43  ;;  %v8987_v43 = vld [vmem:[#allocation105_spill] sm:$0xff]  ;;  %v2833_v26 = vadd.f32 %v6816_v33, %v2765_v57  ;;  %v2767_v32 = vmul.f32 %v6801_v38, %v8988_v44  ;;  %v2768_v16 = vmul.f32 %v6801_v38, %v8989_v27 }
 0x1f5   :  { %5591 = vmatmul.mubr.f32.gmra.mrb[112].mxu0 %v3021_v42  ;;  %v1652_v19 = vadd.f32 %v6768_v54, %v1584_v50  ;;  %v2896_v60 = vmul.f32 %v2832_v25, %v8987_v43  ;;  %v2963_v42 = vadd.f32 %v6855_v5, %v2895_v21  ;;  %v2834_v50 = vadd.f32 %v6816_v33, %v2766_v47  ;;  %v8990_v25 = vld [vmem:[#allocation107_spill] sm:$0xff] }
 0x1f6   :  { %5593 = vmatprep.mubr.f32.mxu0 %v3022_v15  ;;  %v1717_v6 = vmax.f32 %v1653_v22, 0.0  ;;  %v2897_v22 = vmul.f32 %v2833_v26, %v8990_v25  ;;  %v2769_v27 = vmul.f32 %v6801_v38, %v6828_v2  ;;  %v2836_v26 = vadd.f32 %v6816_v33, %v2768_v16 }
 0x1f7   :  { %v5315_v11 = vpop.f32.mrb[34].mxu0  ;;  %v1716_v59 = vmax.f32 %v1652_v19, 0.0  ;;  %v3025_v19 = vmax.f32 %v2961_v4, 0.0  ;;  %v2964_v47 = vadd.f32 %v6855_v5, %v2896_v60  ;;  %v3027_v60 = vmax.f32 %v2963_v42, 0.0 }
 0x1f8   :  { %v1523_v48 = vadd.f32 %v5315_v11, %v6756_v61  ;;  %v1335_v52 = vpop.f32.mrb[35].mxu0  ;;  %v3026_v11 = vmax.f32 %v2962_v13, 0.0  ;;  %v2965_v13 = vadd.f32 %v6855_v5, %v2897_v22  ;;  %v2837_v42 = vadd.f32 %v6816_v33, %v2769_v27 }
 0x1f9   :  { %v1522_v15 = vadd.f32 %v6756_v61, %v1335_v52  ;;  %5438 = vmatprep.mubr.f32.mxu1 %v1716_v59  ;;  %5594 = vmatmul.mubr.f32.gmra.mrb[114].mxu0 %v3023_v28  ;;  %v8991_v52 = vld [vmem:[#allocation109_spill] sm:$0xff]  ;;  %v2835_v28 = vadd.f32 %v6816_v33, %v2767_v32 }
 0x1fa   :  { %v1587_v57 = vmul.f32 %v1523_v48, %v8945_v39  ;;  %5439 = vmatmul.mubr.f32.gmra.mrb[32].mxu1 %v1717_v6  ;;  %5596 = vmatprep.mubr.f32.mxu0 %v3024_v46  ;;  %v2898_v59 = vmul.f32 %v2834_v50, %v8991_v52  ;;  %v8992_v48 = vld [vmem:[#allocation113_spill] sm:$0xff]  ;;  %v2771_v6 = vmul.f32 %v6801_v38, %v6862_v9  ;;  %v8994_v39 = vld [vmem:[#allocation112_spill] sm:$0xff] }
 0x1fb   :  { %v1586_v21 = vmul.f32 %v1522_v15, %v8944_v31  ;;  %v2770_v4 = vmul.f32 %v6801_v38, %v8992_v48  ;;  %v3028_v15 = vmax.f32 %v2964_v47, 0.0  ;;  %v2900_v48 = vmul.f32 %v2836_v26, %v8994_v39 }
 0x1fc   :  { %v1655_v44 = vadd.f32 %v6768_v54, %v1587_v57  ;;  %v8993_v57 = vld [vmem:[#allocation111_spill] sm:$0xff]  ;;  %v2966_v16 = vadd.f32 %v6855_v5, %v2898_v59  ;;  %v3029_v47 = vmax.f32 %v2965_v13, 0.0 }
 0x1fd   :  { %5597 = vmatmul.mubr.f32.gmra.mrb[116].mxu0 %v3025_v19  ;;  %v1654_v46 = vadd.f32 %v6768_v54, %v1586_v21  ;;  %v2899_v2 = vmul.f32 %v2835_v28, %v8993_v57  ;;  %v2838_v38 = vadd.f32 %v6816_v33, %v2770_v4  ;;  %v2901_v28 = vmul.f32 %v2837_v42, %v6860_v20 }
 0x1fe   :  { %5599 = vmatprep.mubr.f32.mxu0 %v3026_v11  ;;  %v1719_v31 = vmax.f32 %v1655_v44, 0.0  ;;  %v2839_v11 = vadd.f32 %v6816_v33, %v2771_v6  ;;  %v3030_v27 = vmax.f32 %v2966_v16, 0.0  ;;  %v2968_v26 = vadd.f32 %v6855_v5, %v2900_v48 }
 0x1ff   :  { %v5318_v50 = vpop.f32.mrb[36].mxu0  ;;  %v1718_v32 = vmax.f32 %v1654_v46, 0.0  ;;  %v2967_v59 = vadd.f32 %v6855_v5, %v2899_v2  ;;  %v2902_v4 = vmul.f32 %v2838_v38, %v6882_v41  ;;  %v2969_v6 = vadd.f32 %v6855_v5, %v2901_v28 }
 0x200   :  { %v1525_v19 = vadd.f32 %v5318_v50, %v6756_v61  ;;  %v1345_v21 = vpop.f32.mrb[37].mxu0  ;;  %v2903_v50 = vmul.f32 %v2839_v11, %v6880_v17 }
 0x201   :  { %v1524_v22 = vadd.f32 %v6756_v61, %v1345_v21  ;;  %5441 = vmatprep.mubr.f32.mxu1 %v1718_v32  ;;  %5600 = vmatmul.mubr.f32.gmra.mrb[118].mxu0 %v3027_v60  ;;  %v3031_v33 = vmax.f32 %v2967_v59, 0.0  ;;  %v2970_v21 = vadd.f32 %v6855_v5, %v2902_v4 }
 0x202   :  { %v1589_v9 = vmul.f32 %v1525_v19, %v8950_v0  ;;  %5442 = vmatmul.mubr.f32.gmra.mrb[34].mxu1 %v1719_v31  ;;  %5602 = vmatprep.mubr.f32.mxu0 %v3028_v15  ;;  %v3032_v19 = vmax.f32 %v2968_v26, 0.0  ;;  %v2971_v38 = vadd.f32 %v6855_v5, %v2903_v50 }
 0x203   :  { %v1588_v44 = vmul.f32 %v1524_v22, %v8947_v10  ;;  %v3033_v22 = vmax.f32 %v2969_v6, 0.0 }
 0x204   :  { %v1657_v46 = vadd.f32 %v6768_v54, %v1589_v9  ;;  %v3034_v9 = vmax.f32 %v2970_v21, 0.0  ;;  %v3035_v28 = vmax.f32 %v2971_v38, 0.0 }
 0x205   :  { %5603 = vmatmul.mubr.f32.gmra.mrb[120].mxu0 %v3029_v47  ;;  %v1656_v31 = vadd.f32 %v6768_v54, %v1588_v44 }
 0x206   :  { %5605 = vmatprep.mubr.f32.mxu0 %v3030_v27  ;;  %v1721_v2 = vmax.f32 %v1657_v46, 0.0 }
 0x207   :  { %v5321_v60 = vpop.f32.mrb[38].mxu0  ;;  %v1720_v13 = vmax.f32 %v1656_v31, 0.0 }
 0x208   :  { %v1527_v32 = vadd.f32 %v5321_v60, %v6756_v61  ;;  %v1355_v15 = vpop.f32.mrb[39].mxu0 }
 0x209   :  { %v1526_v16 = vadd.f32 %v6756_v61, %v1355_v15  ;;  %5444 = vmatprep.mubr.f32.mxu1 %v1720_v13  ;;  %5606 = vmatmul.mubr.f32.gmra.mrb[122].mxu0 %v3031_v33 }
 0x20a   :  { %v1591_v48 = vmul.f32 %v1527_v32, %v8954_v3  ;;  %5445 = vmatmul.mubr.f32.gmra.mrb[36].mxu1 %v1721_v2  ;;  %5608 = vmatprep.mubr.f32.mxu0 %v3032_v19 }
 0x20b   :  { %v1590_v42 = vmul.f32 %v1526_v16, %v8951_v7 }
 0x20c   :  { %v1659_v47 = vadd.f32 %v6768_v54, %v1591_v48 }
 0x20d   :  { %5609 = vmatmul.mubr.f32.gmra.mrb[124].mxu0 %v3033_v22  ;;  %v1658_v11 = vadd.f32 %v6768_v54, %v1590_v42 }
 0x20e   :  { %5611 = vmatprep.mubr.f32.mxu0 %v3034_v9  ;;  %v1723_v26 = vmax.f32 %v1659_v47, 0.0 }
 0x20f   :  { %v5324_v44 = vpop.f32.mrb[40].mxu0  ;;  %v1722_v59 = vmax.f32 %v1658_v11, 0.0 }
 0x210   :  { %v1529_v27 = vadd.f32 %v5324_v44, %v6756_v61  ;;  %v1365_v46 = vpop.f32.mrb[41].mxu0 }
 0x211   :  { %v1528_v4 = vadd.f32 %v6756_v61, %v1365_v46  ;;  %5447 = vmatprep.mubr.f32.mxu1 %v1722_v59  ;;  %5612 = vmatmul.mubr.f32.gmra.mrb[126].mxu0 %v3035_v28 }
 0x212   :  { %v1593_v5 = vmul.f32 %v1529_v27, %v8958_v45  ;;  %5448 = vmatmul.mubr.f32.gmra.mrb[38].mxu1 %v1723_v26 }
 0x213   :  { %v1592_v31 = vmul.f32 %v1528_v4, %v8955_v55 }
 0x214   :  { %v1661_v60 = vadd.f32 %v6768_v54, %v1593_v5 }
 0x215   :  { %v1660_v13 = vadd.f32 %v6768_v54, %v1592_v31 }
 0x216   :  { %v1725_v15 = vmax.f32 %v1661_v60, 0.0 }
 0x217   :  { %v5327_v33 = vpop.f32.mrb[42].mxu0  ;;  %v1724_v6 = vmax.f32 %v1660_v13, 0.0 }
 0x218   :  { %v1531_v50 = vadd.f32 %v5327_v33, %v6756_v61  ;;  %v1375_v32 = vpop.f32.mrb[43].mxu0 }
 0x219   :  { %v1530_v2 = vadd.f32 %v6756_v61, %v1375_v32  ;;  %5450 = vmatprep.mubr.f32.mxu1 %v1724_v6 }
 0x21a   :  { %v1595_v19 = vmul.f32 %v1531_v50, %v8962_v14  ;;  %5451 = vmatmul.mubr.f32.gmra.mrb[40].mxu1 %v1725_v15 }
 0x21b   :  { %v1594_v21 = vmul.f32 %v1530_v2, %v8960_v53 }
 0x21c   :  { %v1663_v16 = vadd.f32 %v6768_v54, %v1595_v19 }
 0x21d   :  { %v1662_v48 = vadd.f32 %v6768_v54, %v1594_v21 }
 0x21e   :  { %v1727_v47 = vmax.f32 %v1663_v16, 0.0 }
 0x21f   :  { %v5330_v42 = vpop.f32.mrb[44].mxu0  ;;  %v1726_v22 = vmax.f32 %v1662_v48, 0.0 }
 0x220   :  { %v1533_v38 = vadd.f32 %v5330_v42, %v6756_v61  ;;  %v1385_v9 = vpop.f32.mrb[45].mxu0 }
 0x221   :  { %v1532_v11 = vadd.f32 %v6756_v61, %v1385_v9  ;;  %5453 = vmatprep.mubr.f32.mxu1 %v1726_v22 }
 0x222   :  { %v1597_v44 = vmul.f32 %v1533_v38, %v8965_v24  ;;  %5454 = vmatmul.mubr.f32.gmra.mrb[42].mxu1 %v1727_v47 }
 0x223   :  { %v1596_v59 = vmul.f32 %v1532_v11, %v8963_v49 }
 0x224   :  { %v1665_v28 = vadd.f32 %v6768_v54, %v1597_v44 }
 0x225   :  { %v1664_v27 = vadd.f32 %v6768_v54, %v1596_v59 }
 0x226   :  { %v1729_v31 = vmax.f32 %v1665_v28, 0.0 }
 0x227   :  { %v5333_v46 = vpop.f32.mrb[46].mxu0  ;;  %v1728_v26 = vmax.f32 %v1664_v27, 0.0 }
 0x228   :  { %v1535_v4 = vadd.f32 %v5333_v46, %v6756_v61  ;;  %v1395_v5 = vpop.f32.mrb[47].mxu0 }
 0x229   :  { %v1534_v60 = vadd.f32 %v6756_v61, %v1395_v5  ;;  %5456 = vmatprep.mubr.f32.mxu1 %v1728_v26 }
 0x22a   :  { %v1599_v13 = vmul.f32 %v1535_v4, %v8971_v12  ;;  %5457 = vmatmul.mubr.f32.gmra.mrb[44].mxu1 %v1729_v31 }
 0x22b   :  { %v1598_v33 = vmul.f32 %v1534_v60, %v8967_v35 }
 0x22c   :  { %v1667_v6 = vadd.f32 %v6768_v54, %v1599_v13 }
 0x22d   :  { %v1666_v50 = vadd.f32 %v6768_v54, %v1598_v33 }
 0x22e   :  { %v1731_v21 = vmax.f32 %v1667_v6, 0.0 }
 0x22f   :  { %v5336_v32 = vpop.f32.mrb[48].mxu0  ;;  %v1730_v15 = vmax.f32 %v1666_v50, 0.0 }
 0x230   :  { %v1537_v2 = vadd.f32 %v5336_v32, %v6756_v61  ;;  %v1405_v19 = vpop.f32.mrb[49].mxu0 }
 0x231   :  { %v1536_v16 = vadd.f32 %v6756_v61, %v1405_v19  ;;  %5459 = vmatprep.mubr.f32.mxu1 %v1730_v15 }
 0x232   :  { %v1601_v48 = vmul.f32 %v1537_v2, %v8974_v34  ;;  %5460 = vmatmul.mubr.f32.gmra.mrb[46].mxu1 %v1731_v21 }
 0x233   :  { %v1600_v42 = vmul.f32 %v1536_v16, %v8972_v62 }
 0x234   :  { %v1669_v22 = vadd.f32 %v6768_v54, %v1601_v48 }
 0x235   :  { %v1668_v38 = vadd.f32 %v6768_v54, %v1600_v42 }
 0x236   :  { %v1733_v59 = vmax.f32 %v1669_v22, 0.0 }
 0x237   :  { %v5339_v9 = vpop.f32.mrb[50].mxu0  ;;  %v1732_v47 = vmax.f32 %v1668_v38, 0.0  ;;  %v5961_v38 = vld [vmem:[%s8534_s2] sm:$0x7f] }
 0x238   :  { %v1539_v11 = vadd.f32 %v5339_v9, %v6756_v61  ;;  %v1415_v44 = vpop.f32.mrb[51].mxu0  ;;  %v8995_v9 = vld [vmem:[#allocation9_spill] sm:$0xff] }
 0x239   :  { %v1538_v28 = vadd.f32 %v6756_v61, %v1415_v44  ;;  %5462 = vmatprep.mubr.f32.mxu1 %v1732_v47  ;;  %v7342_v47 = vrot.slane %v5961_v38, %v8995_v9 }
 0x23a   :  { %v1603_v27 = vmul.f32 %v1539_v11, %v8977_v1  ;;  %5463 = vmatmul.mubr.f32.gmra.mrb[48].mxu1 %v1733_v59 }
 0x23b   :  { %v1602_v46 = vmul.f32 %v1538_v28, %v8975_v18 }
 0x23c   :  { %v1671_v26 = vadd.f32 %v6768_v54, %v1603_v27 }
 0x23d   :  { %v1670_v4 = vadd.f32 %v6768_v54, %v1602_v46  ;;  %v8996_v46 = vld [vmem:[#allocation11_spill] sm:$0xff] }
 0x23e   :  { %v1735_v33 = vmax.f32 %v1671_v26, 0.0  ;;  %v7349_v26 = vrot.slane %v5961_v38, %v8996_v46 }
 0x23f   :  { %v5342_v5 = vpop.f32.mrb[52].mxu0  ;;  %v1734_v31 = vmax.f32 %v1670_v4, 0.0 }
 0x240   :  { %v1541_v60 = vadd.f32 %v5342_v5, %v6756_v61  ;;  %v1425_v13 = vpop.f32.mrb[53].mxu0 }
 0x241   :  { %v1540_v6 = vadd.f32 %v6756_v61, %v1425_v13  ;;  %5465 = vmatprep.mubr.f32.mxu1 %v1734_v31 }
 0x242   :  { %v1605_v50 = vmul.f32 %v1541_v60, %v8982_v23  ;;  %5466 = vmatmul.mubr.f32.gmra.mrb[50].mxu1 %v1735_v33 }
 0x243   :  { %v1604_v32 = vmul.f32 %v1540_v6, %v8980_v56 }
 0x244   :  { %v1673_v15 = vadd.f32 %v6768_v54, %v1605_v50 }
 0x245   :  { %v1672_v2 = vadd.f32 %v6768_v54, %v1604_v32 }
 0x246   :  { %v1737_v42 = vmax.f32 %v1673_v15, 0.0  ;;  %v8997_v15 = vld [vmem:[#allocation12_spill] sm:$0xff] }
 0x247   :  { %v5345_v19 = vpop.f32.mrb[54].mxu0  ;;  %v1736_v21 = vmax.f32 %v1672_v2, 0.0 }
 0x248   :  { %v1543_v16 = vadd.f32 %v5345_v19, %v6756_v61  ;;  %v1435_v48 = vpop.f32.mrb[55].mxu0 }
 0x249   :  { %v1542_v22 = vadd.f32 %v6756_v61, %v1435_v48  ;;  %5468 = vmatprep.mubr.f32.mxu1 %v1736_v21 }
 0x24a   :  { %v1607_v11 = vmul.f32 %v1543_v16, %v8985_v36  ;;  %5469 = vmatmul.mubr.f32.gmra.mrb[52].mxu1 %v1737_v42 }
 0x24b   :  { %v1606_v44 = vmul.f32 %v1542_v22, %v8983_v29 }
 0x24c   :  { %v1675_v59 = vadd.f32 %v6768_v54, %v1607_v11 }
 0x24d   :  { %v5392_v28 = vpop.f32.mrb[0].mxu1  ;;  %v1674_v27 = vadd.f32 %v6768_v54, %v1606_v44 }
 0x24e   :  { %v2155_v4 = vadd.f32 %v5392_v28, %v7342_v47  ;;  %v1831_v5 = vpop.f32.mrb[1].mxu1  ;;  %v1739_v32 = vmax.f32 %v1675_v59, 0.0 }
 0x24f   :  { %v2154_v31 = vadd.f32 %v7342_v47, %v1831_v5  ;;  %v5348_v60 = vpop.f32.mrb[56].mxu0  ;;  %v1738_v13 = vmax.f32 %v1674_v27, 0.0 }
 0x250   :  { %v2219_v33 = vmul.f32 %v2155_v4, %v6193_v30  ;;  %v1545_v6 = vadd.f32 %v5348_v60, %v6756_v61  ;;  %v1445_v50 = vpop.f32.mrb[57].mxu0 }
 0x251   :  { %v2218_v2 = vmul.f32 %v2154_v31, %v8997_v15  ;;  %v1544_v19 = vadd.f32 %v6756_v61, %v1445_v50  ;;  %5471 = vmatprep.mubr.f32.mxu1 %v1738_v13 }
 0x252   :  { %v2287_v21 = vadd.f32 %v7349_v26, %v2219_v33  ;;  %v1609_v16 = vmul.f32 %v1545_v6, %v8990_v25  ;;  %5472 = vmatmul.mubr.f32.gmra.mrb[54].mxu1 %v1739_v32 }
 0x253   :  { %v2286_v48 = vadd.f32 %v7349_v26, %v2218_v2  ;;  %v1608_v42 = vmul.f32 %v1544_v19, %v8987_v43 }
 0x254   :  { %v2351_v22 = vmax.f32 %v2287_v21, 0.0  ;;  %v1677_v38 = vadd.f32 %v6768_v54, %v1609_v16 }
 0x255   :  { %v2350_v11 = vmax.f32 %v2286_v48, 0.0  ;;  %v5395_v44 = vpop.f32.mrb[2].mxu1  ;;  %v1676_v59 = vadd.f32 %v6768_v54, %v1608_v42 }
 0x256   :  { %v2415_v28 = vmul.f32 %v2351_v22, %v6193_v30  ;;  %v2157_v27 = vadd.f32 %v5395_v44, %v7342_v47  ;;  %v1841_v4 = vpop.f32.mrb[3].mxu1  ;;  %v1741_v32 = vmax.f32 %v1677_v38, 0.0 }
 0x257   :  { %v2414_v5 = vmul.f32 %v2350_v11, %v8997_v15  ;;  %v2156_v31 = vadd.f32 %v7342_v47, %v1841_v4  ;;  %v5351_v60 = vpop.f32.mrb[58].mxu0  ;;  %v1740_v13 = vmax.f32 %v1676_v59, 0.0 }
 0x258   :  { %v2221_v33 = vmul.f32 %v2157_v27, %v6220_v51  ;;  %v1547_v6 = vadd.f32 %v5351_v60, %v6756_v61  ;;  %v1455_v50 = vpop.f32.mrb[59].mxu0 }
 0x259   :  { %v7369_v2 = vadd.f32 %v2415_v28, %v2414_v5  ;;  %v2220_v19 = vmul.f32 %v2156_v31, %v6207_v40  ;;  %v1546_v21 = vadd.f32 %v6756_v61, %v1455_v50  ;;  %5474 = vmatprep.mubr.f32.mxu1 %v1740_v13 }
 0x25a   :  { %v2289_v16 = vadd.f32 %v7349_v26, %v2221_v33  ;;  %v1611_v48 = vmul.f32 %v1547_v6, %v8993_v57  ;;  %5475 = vmatmul.mubr.f32.gmra.mrb[56].mxu1 %v1741_v32 }
 0x25b   :  { %8998 = vst [vmem:[#allocation27_spill] sm:$0xff] %v7369_v2  ;;  %v2288_v42 = vadd.f32 %v7349_v26, %v2220_v19  ;;  %v1610_v22 = vmul.f32 %v1546_v21, %v8991_v52 }
 0x25c   :  { %v2353_v11 = vmax.f32 %v2289_v16, 0.0  ;;  %v1679_v44 = vadd.f32 %v6768_v54, %v1611_v48 }
 0x25d   :  { %v2352_v38 = vmax.f32 %v2288_v42, 0.0  ;;  %v5398_v59 = vpop.f32.mrb[4].mxu1  ;;  %v1678_v28 = vadd.f32 %v6768_v54, %v1610_v22 }
 0x25e   :  { %v2417_v27 = vmul.f32 %v2353_v11, %v6220_v51  ;;  %v2159_v4 = vadd.f32 %v5398_v59, %v7342_v47  ;;  %v1851_v5 = vpop.f32.mrb[5].mxu1  ;;  %v1743_v19 = vmax.f32 %v1679_v44, 0.0  ;;  %v5962_v44 = vld [vmem:[%s8534_s2 + $0x8] sm:$0x7f] }
 0x25f   :  { %v2416_v31 = vmul.f32 %v2352_v38, %v6207_v40  ;;  %v2158_v60 = vadd.f32 %v7342_v47, %v1851_v5  ;;  %v5354_v13 = vpop.f32.mrb[60].mxu0  ;;  %v1742_v33 = vmax.f32 %v1678_v28, 0.0 }
 0x260   :  { %v2223_v6 = vmul.f32 %v2159_v4, %v6242_v8  ;;  %v1549_v50 = vadd.f32 %v5354_v13, %v6756_v61  ;;  %v1465_v32 = vpop.f32.mrb[61].mxu0 }
 0x261   :  { %v7385_v21 = vadd.f32 %v2417_v27, %v2416_v31  ;;  %v2222_v16 = vmul.f32 %v2158_v60, %v6229_v58  ;;  %v1548_v48 = vadd.f32 %v6756_v61, %v1465_v32  ;;  %5477 = vmatprep.mubr.f32.mxu1 %v1742_v33  ;;  %v9000_v27 = vld [vmem:[#allocation8_spill] sm:$0xff] }
 0x262   :  { %v2291_v42 = vadd.f32 %v7349_v26, %v2223_v6  ;;  %v1613_v22 = vmul.f32 %v1549_v50, %v6860_v20  ;;  %5478 = vmatmul.mubr.f32.gmra.mrb[58].mxu1 %v1743_v19  ;;  %v7397_v4 = vrot.slane %v5962_v44, %v9000_v27 }
 0x263   :  { %8999 = vst [vmem:[#allocation29_spill] sm:$0xff] %v7385_v21  ;;  %v2290_v11 = vadd.f32 %v7349_v26, %v2222_v16  ;;  %v1612_v38 = vmul.f32 %v1548_v48, %v8994_v39 }
 0x264   :  { %v2355_v59 = vmax.f32 %v2291_v42, 0.0  ;;  %v5357_v28 = vpop.f32.mrb[62].mxu0  ;;  %v1681_v33 = vadd.f32 %v6768_v54, %v1613_v22 }
 0x265   :  { %v2354_v5 = vmax.f32 %v2290_v11, 0.0  ;;  %v1551_v31 = vadd.f32 %v5357_v28, %v6756_v61  ;;  %v1475_v60 = vpop.f32.mrb[63].mxu0  ;;  %v5401_v13 = vpop.f32.mrb[6].mxu1  ;;  %v1680_v16 = vadd.f32 %v6768_v54, %v1612_v38 }
 0x266   :  { %v2419_v6 = vmul.f32 %v2355_v59, %v6242_v8  ;;  %v1550_v50 = vadd.f32 %v6756_v61, %v1475_v60  ;;  %v2161_v32 = vadd.f32 %v5401_v13, %v7342_v47  ;;  %v1861_v19 = vpop.f32.mrb[7].mxu1  ;;  %v9002_v61 = vld [vmem:[#allocation18_spill] sm:$0xff]  ;;  %v1745_v38 = vmax.f32 %v1681_v33, 0.0 }
 0x267   :  { %v2418_v48 = vmul.f32 %v2354_v5, %v6229_v58  ;;  %v1615_v42 = vmul.f32 %v1551_v31, %v6880_v17  ;;  %v2160_v11 = vadd.f32 %v7342_v47, %v1861_v19  ;;  %v1744_v46 = vmax.f32 %v1680_v16, 0.0  ;;  %v9034_v17 = vld [vmem:[#allocation53_spill] sm:$0xff] }
 0x268   :  { %v1614_v28 = vmul.f32 %v1550_v50, %v6882_v41  ;;  %v2225_v27 = vmul.f32 %v2161_v32, %v6264_v37  ;;  %v5520_v22 = vpop.f32.mrb[64].mxu0  ;;  %v9003_v32 = vld [vmem:[#allocation10_spill] sm:$0xff] }
 0x269   :  { %v7410_v59 = vadd.f32 %v2419_v6, %v2418_v48  ;;  %v2224_v60 = vmul.f32 %v2160_v11, %v9002_v61  ;;  %v3443_v13 = vadd.f32 %v5520_v22, %v7397_v4  ;;  %v3119_v9 = vpop.f32.mrb[65].mxu0  ;;  %5480 = vmatprep.mubr.f32.mxu1 %v1744_v46  ;;  %v1683_v50 = vadd.f32 %v6768_v54, %v1615_v42 }
 0x26a   :  { %v2293_v5 = vadd.f32 %v7349_v26, %v2225_v27  ;;  %v3442_v31 = vadd.f32 %v7397_v4, %v3119_v9  ;;  %v1682_v19 = vadd.f32 %v6768_v54, %v1614_v28  ;;  %v7419_v21 = vrot.slane %v5962_v44, %v9003_v32  ;;  %5481 = vmatmul.mubr.f32.gmra.mrb[60].mxu1 %v1745_v38 }
 0x26b   :  { %9001 = vst [vmem:[#allocation31_spill] sm:$0xff] %v7410_v59  ;;  %v2292_v6 = vadd.f32 %v7349_v26, %v2224_v60  ;;  %v3507_v16 = vmul.f32 %v3443_v13, %v6193_v30  ;;  %v1747_v59 = vmax.f32 %v1683_v50, 0.0  ;;  %v9019_v30 = vld [vmem:[#allocation34_spill] sm:$0xff] }
 0x26c   :  { %v2357_v48 = vmax.f32 %v2293_v5, 0.0  ;;  %v3506_v33 = vmul.f32 %v3442_v31, %v8997_v15  ;;  %v5523_v11 = vpop.f32.mrb[66].mxu0  ;;  %v1746_v27 = vmax.f32 %v1682_v19, 0.0  ;;  %v9004_v19 = vld [vmem:[#allocation21_spill] sm:$0xff] }
 0x26d   :  { %v2356_v46 = vmax.f32 %v2292_v6, 0.0  ;;  %v5404_v22 = vpop.f32.mrb[8].mxu1  ;;  %v3129_v9 = vpop.f32.mrb[67].mxu0  ;;  %v3445_v54 = vadd.f32 %v5523_v11, %v7397_v4  ;;  %v3575_v38 = vadd.f32 %v7419_v21, %v3507_v16 }
 0x26e   :  { %v2421_v28 = vmul.f32 %v2357_v48, %v6264_v37  ;;  %v2163_v44 = vadd.f32 %v5404_v22, %v7342_v47  ;;  %v3444_v42 = vadd.f32 %v7397_v4, %v3129_v9  ;;  %v1871_v60 = vpop.f32.mrb[9].mxu1  ;;  %5483 = vmatprep.mubr.f32.mxu1 %v1746_v27  ;;  %v3574_v48 = vadd.f32 %v7419_v21, %v3506_v33  ;;  %v9006_v22 = vld [vmem:[#allocation20_spill] sm:$0xff] }
 0x26f   :  { %v2420_v13 = vmul.f32 %v2356_v46, %v9002_v61  ;;  %v2162_v5 = vadd.f32 %v7342_v47, %v1871_v60  ;;  %5484 = vmatmul.mubr.f32.gmra.mrb[62].mxu1 %v1747_v59  ;;  %v3509_v31 = vmul.f32 %v3445_v54, %v6220_v51 }
 0x270   :  { %v2227_v50 = vmul.f32 %v2163_v44, %v9004_v19  ;;  %v3508_v32 = vmul.f32 %v3444_v42, %v6207_v40  ;;  %v5526_v6 = vpop.f32.mrb[68].mxu0  ;;  %v3638_v60 = vmax.f32 %v3574_v48, 0.0  ;;  %v3639_v44 = vmax.f32 %v3575_v38, 0.0 }
 0x271   :  { %v7435_v11 = vadd.f32 %v2421_v28, %v2420_v13  ;;  %v2226_v27 = vmul.f32 %v2162_v5, %v9006_v22  ;;  %v3447_v46 = vadd.f32 %v5526_v6, %v7397_v4  ;;  %v3139_v9 = vpop.f32.mrb[69].mxu0  ;;  %v3577_v6 = vadd.f32 %v7419_v21, %v3509_v31 }
 0x272   :  { %v2295_v16 = vadd.f32 %v7349_v26, %v2227_v50  ;;  %v3446_v59 = vadd.f32 %v7397_v4, %v3139_v9  ;;  %v3576_v54 = vadd.f32 %v7419_v21, %v3508_v32  ;;  %5646 = vmatprep.mubr.f32.mxu1 %v3638_v60 }
 0x273   :  { %9005 = vst [vmem:[#allocation33_spill] sm:$0xff] %v7435_v11  ;;  %v2294_v42 = vadd.f32 %v7349_v26, %v2226_v27  ;;  %v3511_v40 = vmul.f32 %v3447_v46, %v6242_v8  ;;  %5647 = vmatmul.mubr.f32.vlgmr.msra.gmra.mrb[64].mxu1 %v3639_v44  ;;  %v3641_v60 = vmax.f32 %v3577_v6, 0.0 }
 0x274   :  { %v2359_v33 = vmax.f32 %v2295_v16, 0.0  ;;  %v3510_v28 = vmul.f32 %v3446_v59, %v6229_v58  ;;  %v5529_v13 = vpop.f32.mrb[70].mxu0  ;;  %v3640_v5 = vmax.f32 %v3576_v54, 0.0  ;;  %v9007_v54 = vld [vmem:[#allocation23_spill] sm:$0xff] }
 0x275   :  { %v2358_v51 = vmax.f32 %v2294_v42, 0.0  ;;  %v3449_v50 = vadd.f32 %v5529_v13, %v7397_v4  ;;  %v5407_v48 = vpop.f32.mrb[10].mxu1  ;;  %v3149_v9 = vpop.f32.mrb[71].mxu0 }
 0x276   :  { %v2423_v38 = vmul.f32 %v2359_v33, %v9004_v19  ;;  %v2165_v32 = vadd.f32 %v5407_v48, %v7342_v47  ;;  %v3448_v27 = vadd.f32 %v7397_v4, %v3149_v9  ;;  %v1881_v46 = vpop.f32.mrb[11].mxu1  ;;  %5649 = vmatprep.mubr.f32.mxu1 %v3640_v5  ;;  %v3578_v33 = vadd.f32 %v7419_v21, %v3510_v28  ;;  %v9009_v9 = vld [vmem:[#allocation22_spill] sm:$0xff] }
 0x277   :  { %v2422_v16 = vmul.f32 %v2358_v51, %v9006_v22  ;;  %v3513_v59 = vmul.f32 %v3449_v50, %v6264_v37  ;;  %v2164_v31 = vadd.f32 %v7342_v47, %v1881_v46  ;;  %v3579_v48 = vadd.f32 %v7419_v21, %v3511_v40  ;;  %5650 = vmatmul.mubr.f32.gmra.mrb[66].mxu1 %v3641_v60 }
 0x278   :  { %v2229_v44 = vmul.f32 %v2165_v32, %v9007_v54  ;;  %v3512_v42 = vmul.f32 %v3448_v27, %v9002_v61  ;;  %v5532_v13 = vpop.f32.mrb[72].mxu0  ;;  %v3642_v32 = vmax.f32 %v3578_v33, 0.0 }
 0x279   :  { %v7457_v58 = vadd.f32 %v2423_v38, %v2422_v16  ;;  %v2228_v5 = vmul.f32 %v2164_v31, %v9009_v9  ;;  %v3451_v51 = vadd.f32 %v5532_v13, %v7397_v4  ;;  %v3159_v50 = vpop.f32.mrb[73].mxu0  ;;  %v3643_v61 = vmax.f32 %v3579_v48, 0.0 }
 0x27a   :  { %v2297_v46 = vadd.f32 %v7349_v26, %v2229_v44  ;;  %v3450_v6 = vadd.f32 %v7397_v4, %v3159_v50  ;;  %5652 = vmatprep.mubr.f32.mxu1 %v3642_v32  ;;  %v3580_v38 = vadd.f32 %v7419_v21, %v3512_v42  ;;  %v3581_v16 = vadd.f32 %v7419_v21, %v3513_v59  ;;  %v9010_v32 = vld [vmem:[#allocation25_spill] sm:$0xff] }
 0x27b   :  { %9008 = vst [vmem:[#allocation35_spill] sm:$0xff] %v7457_v58  ;;  %v2296_v27 = vadd.f32 %v7349_v26, %v2228_v5  ;;  %v3515_v60 = vmul.f32 %v3451_v51, %v9004_v19  ;;  %5653 = vmatmul.mubr.f32.gmra.mrb[68].mxu1 %v3643_v61 }
 0x27c   :  { %v2361_v37 = vmax.f32 %v2297_v46, 0.0  ;;  %v3514_v28 = vmul.f32 %v3450_v6, %v9006_v22  ;;  %v5535_v40 = vpop.f32.mrb[74].mxu0  ;;  %v3644_v6 = vmax.f32 %v3580_v38, 0.0  ;;  %v3645_v51 = vmax.f32 %v3581_v16, 0.0 }
 0x27d   :  { %v2360_v31 = vmax.f32 %v2296_v27, 0.0  ;;  %v3453_v44 = vadd.f32 %v5535_v40, %v7397_v4  ;;  %v5410_v13 = vpop.f32.mrb[12].mxu1  ;;  %v3169_v33 = vpop.f32.mrb[75].mxu0  ;;  %v3583_v16 = vadd.f32 %v7419_v21, %v3515_v60 }
 0x27e   :  { %v2425_v5 = vmul.f32 %v2361_v37, %v9007_v54  ;;  %v2167_v48 = vadd.f32 %v5410_v13, %v7342_v47  ;;  %v3452_v50 = vadd.f32 %v7397_v4, %v3169_v33  ;;  %v1891_v46 = vpop.f32.mrb[13].mxu1  ;;  %5655 = vmatprep.mubr.f32.mxu1 %v3644_v6  ;;  %v3582_v22 = vadd.f32 %v7419_v21, %v3514_v28  ;;  %v9012_v33 = vld [vmem:[#allocation24_spill] sm:$0xff] }
 0x27f   :  { %v2424_v42 = vmul.f32 %v2360_v31, %v9009_v9  ;;  %v2166_v59 = vadd.f32 %v7342_v47, %v1891_v46  ;;  %v3517_v13 = vmul.f32 %v3453_v44, %v9007_v54  ;;  %5656 = vmatmul.mubr.f32.gmra.mrb[70].mxu1 %v3645_v51  ;;  %v3647_v44 = vmax.f32 %v3583_v16, 0.0  ;;  %v9013_v16 = vld [vmem:[#allocation28_spill] sm:$0xff]  ;;  %v9014_v54 = vld [vmem:[#allocation26_spill] sm:$0xff] }
 0x280   :  { %v2231_v27 = vmul.f32 %v2167_v48, %v9010_v32  ;;  %v3516_v61 = vmul.f32 %v3452_v50, %v9009_v9  ;;  %v5538_v40 = vpop.f32.mrb[76].mxu0  ;;  %v3646_v50 = vmax.f32 %v3582_v22, 0.0 }
 0x281   :  { %v7477_v37 = vadd.f32 %v2425_v5, %v2424_v42  ;;  %v2230_v19 = vmul.f32 %v2166_v59, %v9012_v33  ;;  %v3455_v38 = vadd.f32 %v5538_v40, %v7397_v4  ;;  %v3179_v31 = vpop.f32.mrb[77].mxu0  ;;  %v3585_v22 = vadd.f32 %v7419_v21, %v3517_v13 }
 0x282   :  { %v2299_v46 = vadd.f32 %v7349_v26, %v2231_v27  ;;  %v3454_v48 = vadd.f32 %v7397_v4, %v3179_v31  ;;  %5658 = vmatprep.mubr.f32.mxu1 %v3646_v50  ;;  %v3584_v59 = vadd.f32 %v7419_v21, %v3516_v61 }
 0x283   :  { %9011 = vst [vmem:[#allocation37_spill] sm:$0xff] %v7477_v37  ;;  %v2298_v6 = vadd.f32 %v7349_v26, %v2230_v19  ;;  %v3519_v9 = vmul.f32 %v3455_v38, %v9010_v32  ;;  %5659 = vmatmul.mubr.f32.gmra.mrb[72].mxu1 %v3647_v44  ;;  %v3649_v13 = vmax.f32 %v3585_v22, 0.0 }
 0x284   :  { %v2363_v28 = vmax.f32 %v2299_v46, 0.0  ;;  %v3518_v5 = vmul.f32 %v3454_v48, %v9012_v33  ;;  %v5541_v42 = vpop.f32.mrb[78].mxu0  ;;  %v3648_v50 = vmax.f32 %v3584_v59, 0.0 }
 0x285   :  { %v2362_v40 = vmax.f32 %v2298_v6, 0.0  ;;  %v3457_v27 = vadd.f32 %v5541_v42, %v7397_v4  ;;  %v5413_v51 = vpop.f32.mrb[14].mxu1  ;;  %v3189_v31 = vpop.f32.mrb[79].mxu0 }
 0x286   :  { %v2427_v60 = vmul.f32 %v2363_v28, %v9010_v32  ;;  %v2169_v19 = vadd.f32 %v5413_v51, %v7342_v47  ;;  %v3456_v46 = vadd.f32 %v7397_v4, %v3189_v31  ;;  %v1901_v48 = vpop.f32.mrb[15].mxu1  ;;  %5661 = vmatprep.mubr.f32.mxu1 %v3648_v50  ;;  %v3586_v44 = vadd.f32 %v7419_v21, %v3518_v5  ;;  %v9016_v50 = vld [vmem:[#allocation32_spill] sm:$0xff] }
 0x287   :  { %v2426_v61 = vmul.f32 %v2362_v40, %v9012_v33  ;;  %v3521_v6 = vmul.f32 %v3457_v27, %v9013_v16  ;;  %v2168_v38 = vadd.f32 %v7342_v47, %v1901_v48  ;;  %5662 = vmatmul.mubr.f32.gmra.mrb[74].mxu1 %v3649_v13 }
 0x288   :  { %v2233_v42 = vmul.f32 %v2169_v19, %v9013_v16  ;;  %v3520_v8 = vmul.f32 %v3456_v46, %v9014_v54  ;;  %v5544_v28 = vpop.f32.mrb[80].mxu0  ;;  %v3650_v19 = vmax.f32 %v3586_v44, 0.0  ;;  %v3587_v46 = vadd.f32 %v7419_v21, %v3519_v9 }
 0x289   :  { %v7500_v51 = vadd.f32 %v2427_v60, %v2426_v61  ;;  %v2232_v31 = vmul.f32 %v2168_v38, %v9014_v54  ;;  %v3459_v59 = vadd.f32 %v5544_v28, %v7397_v4  ;;  %v3199_v40 = vpop.f32.mrb[81].mxu0  ;;  %v9017_v61 = vld [vmem:[#allocation30_spill] sm:$0xff] }
 0x28a   :  { %v2301_v27 = vadd.f32 %v7349_v26, %v2233_v42  ;;  %v3458_v48 = vadd.f32 %v7397_v4, %v3199_v40  ;;  %v3588_v5 = vadd.f32 %v7419_v21, %v3520_v8  ;;  %5664 = vmatprep.mubr.f32.mxu1 %v3650_v19  ;;  %v3651_v28 = vmax.f32 %v3587_v46, 0.0  ;;  %v9018_v19 = vld [vmem:[#allocation36_spill] sm:$0xff] }
 0x28b   :  { %9015 = vst [vmem:[#allocation39_spill] sm:$0xff] %v7500_v51  ;;  %v2300_v22 = vadd.f32 %v7349_v26, %v2232_v31  ;;  %v3523_v33 = vmul.f32 %v3459_v59, %v9016_v50  ;;  %v3589_v42 = vadd.f32 %v7419_v21, %v3521_v6 }
 0x28c   :  { %v2365_v60 = vmax.f32 %v2301_v27, 0.0  ;;  %v3522_v38 = vmul.f32 %v3458_v48, %v9017_v61  ;;  %v5547_v32 = vpop.f32.mrb[82].mxu0  ;;  %v3652_v9 = vmax.f32 %v3588_v5, 0.0  ;;  %5665 = vmatmul.mubr.f32.gmra.mrb[76].mxu1 %v3651_v28 }
 0x28d   :  { %v2364_v13 = vmax.f32 %v2300_v22, 0.0  ;;  %v3461_v40 = vadd.f32 %v5547_v32, %v7397_v4  ;;  %v5416_v44 = vpop.f32.mrb[16].mxu1  ;;  %v3209_v15 = vpop.f32.mrb[83].mxu0  ;;  %v3653_v22 = vmax.f32 %v3589_v42, 0.0  ;;  %v3591_v28 = vadd.f32 %v7419_v21, %v3523_v33 }
 0x28e   :  { %v2429_v31 = vmul.f32 %v2365_v60, %v9013_v16  ;;  %v2171_v59 = vadd.f32 %v5416_v44, %v7342_v47  ;;  %v3460_v8 = vadd.f32 %v7397_v4, %v3209_v15  ;;  %v1911_v27 = vpop.f32.mrb[17].mxu1  ;;  %5667 = vmatprep.mubr.f32.mxu1 %v3652_v9  ;;  %v3590_v60 = vadd.f32 %v7419_v21, %v3522_v38 }
 0x28f   :  { %v2428_v48 = vmul.f32 %v2364_v13, %v9014_v54  ;;  %v3525_v46 = vmul.f32 %v3461_v40, %v9018_v19  ;;  %v2170_v6 = vadd.f32 %v7342_v47, %v1911_v27 }
 0x290   :  { %v2235_v32 = vmul.f32 %v2171_v59, %v9016_v50  ;;  %v3524_v5 = vmul.f32 %v3460_v8, %v9019_v30  ;;  %v5550_v51 = vpop.f32.mrb[84].mxu0  ;;  %5668 = vmatmul.mubr.f32.gmra.mrb[78].mxu1 %v3653_v22  ;;  %v3654_v9 = vmax.f32 %v3590_v60, 0.0  ;;  %v9021_v8 = vld [vmem:[#allocation40_spill] sm:$0xff] }
 0x291   :  { %v7523_v44 = vadd.f32 %v2429_v31, %v2428_v48  ;;  %v2234_v15 = vmul.f32 %v2170_v6, %v9017_v61  ;;  %v3463_v13 = vadd.f32 %v5550_v51, %v7397_v4  ;;  %v3219_v40 = vpop.f32.mrb[85].mxu0  ;;  %v3593_v33 = vadd.f32 %v7419_v21, %v3525_v46  ;;  %v9022_v48 = vld [vmem:[#allocation38_spill] sm:$0xff] }
 0x292   :  { %v2303_v27 = vadd.f32 %v7349_v26, %v2235_v32  ;;  %v3462_v42 = vadd.f32 %v7397_v4, %v3219_v40  ;;  %v3592_v38 = vadd.f32 %v7419_v21, %v3524_v5  ;;  %5670 = vmatprep.mubr.f32.mxu1 %v3654_v9  ;;  %v3655_v51 = vmax.f32 %v3591_v28, 0.0 }
 0x293   :  { %9020 = vst [vmem:[#allocation43_spill] sm:$0xff] %v7523_v44  ;;  %v2302_v59 = vadd.f32 %v7349_v26, %v2234_v15  ;;  %v3527_v54 = vmul.f32 %v3463_v13, %v9021_v8  ;;  %v3657_v9 = vmax.f32 %v3593_v33, 0.0 }
 0x294   :  { %v2367_v31 = vmax.f32 %v2303_v27, 0.0  ;;  %v3526_v6 = vmul.f32 %v3462_v42, %v9022_v48  ;;  %v5553_v16 = vpop.f32.mrb[86].mxu0  ;;  %v3656_v60 = vmax.f32 %v3592_v38, 0.0  ;;  %5671 = vmatmul.mubr.f32.gmra.mrb[80].mxu1 %v3655_v51  ;;  %v9024_v51 = vld [vmem:[#allocation41_spill] sm:$0xff] }
 0x295   :  { %v2366_v44 = vmax.f32 %v2302_v59, 0.0  ;;  %v3465_v22 = vadd.f32 %v5553_v16, %v7397_v4  ;;  %v5419_v32 = vpop.f32.mrb[18].mxu1  ;;  %v3229_v40 = vpop.f32.mrb[87].mxu0  ;;  %v3595_v16 = vadd.f32 %v7419_v21, %v3527_v54  ;;  %v9023_v59 = vld [vmem:[#allocation42_spill] sm:$0xff] }
 0x296   :  { %v2431_v15 = vmul.f32 %v2367_v31, %v9016_v50  ;;  %v2173_v13 = vadd.f32 %v5419_v32, %v7342_v47  ;;  %v3464_v5 = vadd.f32 %v7397_v4, %v3229_v40  ;;  %v1921_v46 = vpop.f32.mrb[19].mxu1  ;;  %v3594_v27 = vadd.f32 %v7419_v21, %v3526_v6  ;;  %5673 = vmatprep.mubr.f32.mxu1 %v3656_v60 }
 0x297   :  { %v2430_v42 = vmul.f32 %v2366_v44, %v9017_v61  ;;  %v2172_v28 = vadd.f32 %v7342_v47, %v1921_v46  ;;  %v3529_v38 = vmul.f32 %v3465_v22, %v9023_v59  ;;  %v3659_v46 = vmax.f32 %v3595_v16, 0.0 }
 0x298   :  { %v2237_v31 = vmul.f32 %v2173_v13, %v9018_v19  ;;  %v3528_v50 = vmul.f32 %v3464_v5, %v9024_v51  ;;  %v5556_v32 = vpop.f32.mrb[88].mxu0  ;;  %v3658_v37 = vmax.f32 %v3594_v27, 0.0  ;;  %5674 = vmatmul.mubr.f32.gmra.mrb[82].mxu1 %v3657_v9  ;;  %v9026_v13 = vld [vmem:[#allocation46_spill] sm:$0xff]  ;;  %v9027_v27 = vld [vmem:[#allocation44_spill] sm:$0xff] }
 0x299   :  { %v7545_v40 = vadd.f32 %v2431_v15, %v2430_v42  ;;  %v2236_v6 = vmul.f32 %v2172_v28, %v9019_v30  ;;  %v3467_v44 = vadd.f32 %v5556_v32, %v7397_v4  ;;  %v3239_v61 = vpop.f32.mrb[89].mxu0  ;;  %v3597_v32 = vadd.f32 %v7419_v21, %v3529_v38 }
 0x29a   :  { %v2305_v60 = vadd.f32 %v7349_v26, %v2237_v31  ;;  %v3466_v54 = vadd.f32 %v7397_v4, %v3239_v61  ;;  %v3596_v33 = vadd.f32 %v7419_v21, %v3528_v50  ;;  %5676 = vmatprep.mubr.f32.mxu1 %v3658_v37 }
 0x29b   :  { %9025 = vst [vmem:[#allocation45_spill] sm:$0xff] %v7545_v40  ;;  %v2304_v22 = vadd.f32 %v7349_v26, %v2236_v6  ;;  %v3531_v5 = vmul.f32 %v3467_v44, %v9026_v13 }
 0x29c   :  { %v2369_v15 = vmax.f32 %v2305_v60, 0.0  ;;  %v3530_v42 = vmul.f32 %v3466_v54, %v9027_v27  ;;  %v5559_v28 = vpop.f32.mrb[90].mxu0  ;;  %v3660_v40 = vmax.f32 %v3596_v33, 0.0  ;;  %5677 = vmatmul.mubr.f32.gmra.mrb[84].mxu1 %v3659_v46  ;;  %v9028_v54 = vld [vmem:[#allocation48_spill] sm:$0xff] }
 0x29d   :  { %v2368_v58 = vmax.f32 %v2304_v22, 0.0  ;;  %v3469_v9 = vadd.f32 %v5559_v28, %v7397_v4  ;;  %v5422_v31 = vpop.f32.mrb[20].mxu1  ;;  %v3249_v61 = vpop.f32.mrb[91].mxu0  ;;  %v3599_v22 = vadd.f32 %v7419_v21, %v3531_v5 }
 0x29e   :  { %v2433_v50 = vmul.f32 %v2369_v15, %v9018_v19  ;;  %v2175_v6 = vadd.f32 %v5422_v31, %v7342_v47  ;;  %v3468_v37 = vadd.f32 %v7397_v4, %v3249_v61  ;;  %v1931_v16 = vpop.f32.mrb[21].mxu1  ;;  %v3598_v44 = vadd.f32 %v7419_v21, %v3530_v42  ;;  %5679 = vmatprep.mubr.f32.mxu1 %v3660_v40  ;;  %v9029_v15 = vld [vmem:[#allocation47_spill] sm:$0xff] }
 0x29f   :  { %v2432_v60 = vmul.f32 %v2368_v58, %v9019_v30  ;;  %v3533_v33 = vmul.f32 %v3469_v9, %v9028_v54  ;;  %v2174_v38 = vadd.f32 %v7342_v47, %v1931_v16  ;;  %v3661_v19 = vmax.f32 %v3597_v32, 0.0  ;;  %v9031_v16 = vld [vmem:[#allocation52_spill] sm:$0xff] }
 0x2a0   :  { %v2239_v28 = vmul.f32 %v2175_v6, %v9021_v8  ;;  %v3532_v46 = vmul.f32 %v3468_v37, %v9029_v15  ;;  %v5562_v31 = vpop.f32.mrb[92].mxu0  ;;  %v3662_v11 = vmax.f32 %v3598_v44, 0.0  ;;  %v3663_v32 = vmax.f32 %v3599_v22, 0.0 }
 0x2a1   :  { %v7567_v61 = vadd.f32 %v2433_v50, %v2432_v60  ;;  %v2238_v42 = vmul.f32 %v2174_v38, %v9022_v48  ;;  %v3471_v58 = vadd.f32 %v5562_v31, %v7397_v4  ;;  %v3259_v30 = vpop.f32.mrb[93].mxu0  ;;  %5680 = vmatmul.mubr.f32.gmra.mrb[86].mxu1 %v3661_v19  ;;  %v3601_v37 = vadd.f32 %v7419_v21, %v3533_v33  ;;  %v9032_v60 = vld [vmem:[#allocation50_spill] sm:$0xff] }
 0x2a2   :  { %v2307_v9 = vadd.f32 %v7349_v26, %v2239_v28  ;;  %v3470_v40 = vadd.f32 %v7397_v4, %v3259_v30  ;;  %v3600_v5 = vadd.f32 %v7419_v21, %v3532_v46  ;;  %5682 = vmatprep.mubr.f32.mxu1 %v3662_v11 }
 0x2a3   :  { %9030 = vst [vmem:[#allocation49_spill] sm:$0xff] %v7567_v61  ;;  %v2306_v6 = vadd.f32 %v7349_v26, %v2238_v42  ;;  %v3535_v44 = vmul.f32 %v3471_v58, %v9031_v16 }
 0x2a4   :  { %v2371_v50 = vmax.f32 %v2307_v9, 0.0  ;;  %v3534_v38 = vmul.f32 %v3470_v40, %v9032_v60  ;;  %v5565_v31 = vpop.f32.mrb[94].mxu0  ;;  %v3664_v61 = vmax.f32 %v3600_v5, 0.0  ;;  %v9033_v9 = vld [vmem:[#allocation55_spill] sm:$0xff] }
 0x2a5   :  { %v2370_v2 = vmax.f32 %v2306_v6, 0.0  ;;  %v3473_v19 = vadd.f32 %v5565_v31, %v7397_v4  ;;  %v5425_v28 = vpop.f32.mrb[22].mxu1  ;;  %v3269_v30 = vpop.f32.mrb[95].mxu0  ;;  %5683 = vmatmul.mubr.f32.gmra.mrb[88].mxu1 %v3663_v32  ;;  %v3665_v6 = vmax.f32 %v3601_v37, 0.0 }
 0x2a6   :  { %v2435_v46 = vmul.f32 %v2371_v50, %v9021_v8  ;;  %v2177_v11 = vadd.f32 %v5425_v28, %v7342_v47  ;;  %v3472_v22 = vadd.f32 %v7397_v4, %v3269_v30  ;;  %v1941_v33 = vpop.f32.mrb[23].mxu1  ;;  %v3602_v42 = vadd.f32 %v7419_v21, %v3534_v38  ;;  %5685 = vmatprep.mubr.f32.mxu1 %v3664_v61 }
 0x2a7   :  { %v2434_v58 = vmul.f32 %v2370_v2, %v9022_v48  ;;  %v3537_v40 = vmul.f32 %v3473_v19, %v9033_v9  ;;  %v2176_v5 = vadd.f32 %v7342_v47, %v1941_v33  ;;  %v3603_v28 = vadd.f32 %v7419_v21, %v3535_v44  ;;  %v9036_v33 = vld [vmem:[#allocation57_spill] sm:$0xff] }
 0x2a8   :  { %v2241_v31 = vmul.f32 %v2177_v11, %v9023_v59  ;;  %v3536_v50 = vmul.f32 %v3472_v22, %v9034_v17  ;;  %v5568_v32 = vpop.f32.mrb[96].mxu0  ;;  %v3666_v8 = vmax.f32 %v3602_v42, 0.0 }
 0x2a9   :  { %v7589_v30 = vadd.f32 %v2435_v46, %v2434_v58  ;;  %v2240_v38 = vmul.f32 %v2176_v5, %v9024_v51  ;;  %v3475_v2 = vadd.f32 %v5568_v32, %v7397_v4  ;;  %v3279_v48 = vpop.f32.mrb[97].mxu0  ;;  %5686 = vmatmul.mubr.f32.gmra.mrb[90].mxu1 %v3665_v6  ;;  %v3667_v44 = vmax.f32 %v3603_v28, 0.0 }
 0x2aa   :  { %v2309_v19 = vadd.f32 %v7349_v26, %v2241_v31  ;;  %v3474_v61 = vadd.f32 %v7397_v4, %v3279_v48  ;;  %v3604_v37 = vadd.f32 %v7419_v21, %v3536_v50  ;;  %5688 = vmatprep.mubr.f32.mxu1 %v3666_v8  ;;  %v3605_v32 = vadd.f32 %v7419_v21, %v3537_v40 }
 0x2ab   :  { %9035 = vst [vmem:[#allocation51_spill] sm:$0xff] %v7589_v30  ;;  %v2308_v11 = vadd.f32 %v7349_v26, %v2240_v38  ;;  %v3539_v22 = vmul.f32 %v3475_v2, %v8942_v63 }
 0x2ac   :  { %v2373_v46 = vmax.f32 %v2309_v19, 0.0  ;;  %v3538_v42 = vmul.f32 %v3474_v61, %v9036_v33  ;;  %v5571_v58 = vpop.f32.mrb[98].mxu0  ;;  %v3668_v5 = vmax.f32 %v3604_v37, 0.0  ;;  %v9037_v19 = vld [vmem:[#allocation63_spill] sm:$0xff]  ;;  %v3669_v40 = vmax.f32 %v3605_v32, 0.0 }
 0x2ad   :  { %v2372_v30 = vmax.f32 %v2308_v11, 0.0  ;;  %v3477_v6 = vadd.f32 %v5571_v58, %v7397_v4  ;;  %v5428_v31 = vpop.f32.mrb[24].mxu1  ;;  %v3289_v48 = vpop.f32.mrb[99].mxu0  ;;  %5689 = vmatmul.mubr.f32.gmra.mrb[92].mxu1 %v3667_v44  ;;  %v9038_v58 = vld [vmem:[#allocation61_spill] sm:$0xff] }
 0x2ae   :  { %v2437_v50 = vmul.f32 %v2373_v46, %v9023_v59  ;;  %v2179_v38 = vadd.f32 %v5428_v31, %v7342_v47  ;;  %v3476_v8 = vadd.f32 %v7397_v4, %v3289_v48  ;;  %v1951_v28 = vpop.f32.mrb[25].mxu1  ;;  %5691 = vmatprep.mubr.f32.mxu1 %v3668_v5  ;;  %v3606_v44 = vadd.f32 %v7419_v21, %v3538_v42 }
 0x2af   :  { %v2436_v2 = vmul.f32 %v2372_v30, %v9024_v51  ;;  %v3541_v61 = vmul.f32 %v3477_v6, %v9037_v19  ;;  %v2178_v37 = vadd.f32 %v7342_v47, %v1951_v28  ;;  %v3607_v46 = vadd.f32 %v7419_v21, %v3539_v22 }
 0x2b0   :  { %v2243_v11 = vmul.f32 %v2179_v38, %v9026_v13  ;;  %v3540_v41 = vmul.f32 %v3476_v8, %v9038_v58  ;;  %v5574_v20 = vpop.f32.mrb[100].mxu0  ;;  %v3670_v32 = vmax.f32 %v3606_v44, 0.0 }
 0x2b1   :  { %v7611_v31 = vadd.f32 %v2437_v50, %v2436_v2  ;;  %v2242_v48 = vmul.f32 %v2178_v37, %v9027_v27  ;;  %v3479_v30 = vadd.f32 %v5574_v20, %v7397_v4  ;;  %v3299_v6 = vpop.f32.mrb[101].mxu0  ;;  %5692 = vmatmul.mubr.f32.gmra.mrb[94].mxu1 %v3669_v40  ;;  %v3671_v8 = vmax.f32 %v3607_v46, 0.0 }
 0x2b2   :  { %v2311_v28 = vadd.f32 %v7349_v26, %v2243_v11  ;;  %v3478_v5 = vadd.f32 %v7397_v4, %v3299_v6  ;;  %5694 = vmatprep.mubr.f32.mxu1 %v3670_v32  ;;  %v3608_v50 = vadd.f32 %v7419_v21, %v3540_v41  ;;  %v3609_v2 = vadd.f32 %v7419_v21, %v3541_v61 }
 0x2b3   :  { %v2310_v38 = vadd.f32 %v7349_v26, %v2242_v48  ;;  %v3543_v37 = vmul.f32 %v3479_v30, %v8950_v0 }
 0x2b4   :  { %v2375_v51 = vmax.f32 %v2311_v28, 0.0  ;;  %v3542_v42 = vmul.f32 %v3478_v5, %v8947_v10  ;;  %v5577_v22 = vpop.f32.mrb[102].mxu0  ;;  %v3672_v28 = vmax.f32 %v3608_v50, 0.0 }
 0x2b5   :  { %v2374_v20 = vmax.f32 %v2310_v38, 0.0  ;;  %v5431_v11 = vpop.f32.mrb[26].mxu1  ;;  %v3309_v40 = vpop.f32.mrb[103].mxu0  ;;  %5695 = vmatmul.mubr.f32.gmra.mrb[96].mxu1 %v3671_v8  ;;  %v3481_v41 = vadd.f32 %v5577_v22, %v7397_v4  ;;  %v3673_v38 = vmax.f32 %v3609_v2, 0.0 }
 0x2b6   :  { %v2439_v6 = vmul.f32 %v2375_v51, %v9026_v13  ;;  %v2181_v44 = vadd.f32 %v5431_v11, %v7342_v47  ;;  %v3480_v46 = vadd.f32 %v7397_v4, %v3309_v40  ;;  %v1961_v48 = vpop.f32.mrb[27].mxu1  ;;  %5697 = vmatprep.mubr.f32.mxu1 %v3672_v28  ;;  %v3610_v8 = vadd.f32 %v7419_v21, %v3542_v42 }
 0x2b7   :  { %v2438_v5 = vmul.f32 %v2374_v20, %v9027_v27  ;;  %v2180_v61 = vadd.f32 %v7342_v47, %v1961_v48 }
 0x2b8   :  { %v2245_v32 = vmul.f32 %v2181_v44, %v9028_v54  ;;  %v3544_v30 = vmul.f32 %v3480_v46, %v8951_v7  ;;  %v5580_v51 = vpop.f32.mrb[104].mxu0  ;;  %v3674_v48 = vmax.f32 %v3610_v8, 0.0  ;;  %v3611_v44 = vadd.f32 %v7419_v21, %v3543_v37 }
 0x2b9   :  { %v7631_v11 = vadd.f32 %v2439_v6, %v2438_v5  ;;  %v2244_v40 = vmul.f32 %v2180_v61, %v9029_v15  ;;  %v3319_v50 = vpop.f32.mrb[105].mxu0  ;;  %5698 = vmatmul.mubr.f32.gmra.mrb[98].mxu1 %v3673_v38  ;;  %v3545_v46 = vmul.f32 %v3481_v41, %v8954_v3  ;;  %v3483_v28 = vadd.f32 %v5580_v51, %v7397_v4 }
 0x2ba   :  { %v2313_v20 = vadd.f32 %v7349_v26, %v2245_v32  ;;  %v3482_v22 = vadd.f32 %v7397_v4, %v3319_v50  ;;  %5700 = vmatprep.mubr.f32.mxu1 %v3674_v48  ;;  %v3675_v5 = vmax.f32 %v3611_v44, 0.0  ;;  %v3612_v32 = vadd.f32 %v7419_v21, %v3544_v30 }
 0x2bb   :  { %v2312_v2 = vadd.f32 %v7349_v26, %v2244_v40  ;;  %v2563_v59 = vrot.slane %v7631_v11, 4 }
 0x2bc   :  { %v2377_v42 = vmax.f32 %v2313_v20, 0.0  ;;  %v3546_v6 = vmul.f32 %v3482_v22, %v8955_v55  ;;  %v5583_v61 = vpop.f32.mrb[106].mxu0  ;;  %v3676_v51 = vmax.f32 %v3612_v32, 0.0  ;;  %v3547_v22 = vmul.f32 %v3483_v28, %v8958_v45 }
 0x2bd   :  { %v2376_v38 = vmax.f32 %v2312_v2, 0.0  ;;  %v5434_v27 = vpop.f32.mrb[28].mxu1  ;;  %v3329_v50 = vpop.f32.mrb[107].mxu0  ;;  %5701 = vmatmul.mubr.f32.gmra.mrb[100].mxu1 %v3675_v5  ;;  %v3485_v48 = vadd.f32 %v5583_v61, %v7397_v4 }
 0x2be   :  { %v2441_v8 = vmul.f32 %v2377_v42, %v9028_v54  ;;  %v2183_v37 = vadd.f32 %v5434_v27, %v7342_v47  ;;  %v3484_v41 = vadd.f32 %v7397_v4, %v3329_v50  ;;  %v1971_v40 = vpop.f32.mrb[29].mxu1  ;;  %5703 = vmatprep.mubr.f32.mxu1 %v3676_v51  ;;  %v3613_v42 = vadd.f32 %v7419_v21, %v3545_v46 }
 0x2bf   :  { %v2440_v20 = vmul.f32 %v2376_v38, %v9029_v15  ;;  %v2182_v30 = vadd.f32 %v7342_v47, %v1971_v40  ;;  %v3614_v5 = vadd.f32 %v7419_v21, %v3546_v6  ;;  %v3549_v46 = vmul.f32 %v3485_v48, %v8962_v14 }
 0x2c0   :  { %v2247_v44 = vmul.f32 %v2183_v37, %v9031_v16  ;;  %v3548_v2 = vmul.f32 %v3484_v41, %v8960_v53  ;;  %v5586_v27 = vpop.f32.mrb[108].mxu0  ;;  %v3677_v61 = vmax.f32 %v3613_v42, 0.0  ;;  %v3615_v6 = vadd.f32 %v7419_v21, %v3547_v22 }
 0x2c1   :  { %v7653_v50 = vadd.f32 %v2441_v8, %v2440_v20  ;;  %v2246_v32 = vmul.f32 %v2182_v30, %v9032_v60  ;;  %v3339_v38 = vpop.f32.mrb[109].mxu0  ;;  %v3678_v15 = vmax.f32 %v3614_v5, 0.0  ;;  %v3487_v41 = vadd.f32 %v5586_v27, %v7397_v4 }
 0x2c2   :  { %v2315_v28 = vadd.f32 %v7349_v26, %v2247_v44  ;;  %v3486_v40 = vadd.f32 %v7397_v4, %v3339_v38  ;;  %5704 = vmatmul.mubr.f32.gmra.mrb[102].mxu1 %v3677_v61  ;;  %v3616_v20 = vadd.f32 %v7419_v21, %v3548_v2 }
 0x2c3   :  { %v2314_v37 = vadd.f32 %v7349_v26, %v2246_v32  ;;  %5706 = vmatprep.mubr.f32.mxu1 %v3678_v15  ;;  %v3679_v32 = vmax.f32 %v3615_v6, 0.0 }
 0x2c4   :  { %v2379_v51 = vmax.f32 %v2315_v28, 0.0  ;;  %v5589_v8 = vpop.f32.mrb[110].mxu0  ;;  %v3550_v5 = vmul.f32 %v3486_v40, %v8963_v49  ;;  %v3551_v28 = vmul.f32 %v3487_v41, %v8965_v24  ;;  %v3617_v40 = vadd.f32 %v7419_v21, %v3549_v46 }
 0x2c5   :  { %v2378_v30 = vmax.f32 %v2314_v37, 0.0  ;;  %v5437_v44 = vpop.f32.mrb[30].mxu1  ;;  %v3349_v42 = vpop.f32.mrb[111].mxu0  ;;  %v3489_v22 = vadd.f32 %v5589_v8, %v7397_v4  ;;  %v3680_v37 = vmax.f32 %v3616_v20, 0.0 }
 0x2c6   :  { %v2443_v38 = vmul.f32 %v2379_v51, %v9031_v16  ;;  %v2185_v27 = vadd.f32 %v5437_v44, %v7342_v47  ;;  %v1981_v54 = vpop.f32.mrb[31].mxu1  ;;  %5707 = vmatmul.mubr.f32.gmra.mrb[104].mxu1 %v3679_v32  ;;  %v3488_v61 = vadd.f32 %v7397_v4, %v3349_v42  ;;  %v3681_v8 = vmax.f32 %v3617_v40, 0.0 }
 0x2c7   :  { %v2442_v48 = vmul.f32 %v2378_v30, %v9032_v60  ;;  %v2184_v2 = vadd.f32 %v7342_v47, %v1981_v54  ;;  %5709 = vmatprep.mubr.f32.mxu1 %v3680_v37  ;;  %v3618_v54 = vadd.f32 %v7419_v21, %v3550_v5  ;;  %v3553_v32 = vmul.f32 %v3489_v22, %v8971_v12 }
 0x2c8   :  { %v2249_v15 = vmul.f32 %v2185_v27, %v9033_v9  ;;  %v5592_v51 = vpop.f32.mrb[112].mxu0 }
 0x2c9   :  { %v7673_v6 = vadd.f32 %v2443_v38, %v2442_v48  ;;  %v2248_v44 = vmul.f32 %v2184_v2, %v9034_v17  ;;  %v3359_v30 = vpop.f32.mrb[113].mxu0  ;;  %v3491_v20 = vadd.f32 %v5592_v51, %v7397_v4  ;;  %v3552_v38 = vmul.f32 %v3488_v61, %v8967_v35 }
 0x2ca   :  { %v2317_v41 = vadd.f32 %v7349_v26, %v2249_v15  ;;  %v3490_v46 = vadd.f32 %v7397_v4, %v3359_v30  ;;  %5710 = vmatmul.mubr.f32.gmra.mrb[106].mxu1 %v3681_v8  ;;  %v3682_v48 = vmax.f32 %v3618_v54, 0.0  ;;  %v3619_v2 = vadd.f32 %v7419_v21, %v3551_v28 }
 0x2cb   :  { %v2316_v27 = vadd.f32 %v7349_v26, %v2248_v44  ;;  %v3555_v61 = vmul.f32 %v3491_v20, %v8974_v34 }
 0x2cc   :  { %v2381_v42 = vmax.f32 %v2317_v41, 0.0  ;;  %v5595_v15 = vpop.f32.mrb[114].mxu0  ;;  %5712 = vmatprep.mubr.f32.mxu1 %v3682_v48  ;;  %v3683_v22 = vmax.f32 %v3619_v2, 0.0  ;;  %v3554_v8 = vmul.f32 %v3490_v46, %v8972_v62  ;;  %v3621_v48 = vadd.f32 %v7419_v21, %v3553_v32 }
 0x2cd   :  { %v2380_v37 = vmax.f32 %v2316_v27, 0.0  ;;  %v5440_v40 = vpop.f32.mrb[32].mxu1  ;;  %v3369_v60 = vpop.f32.mrb[115].mxu0  ;;  %v3493_v54 = vadd.f32 %v5595_v15, %v7397_v4 }
 0x2ce   :  { %v2445_v5 = vmul.f32 %v2381_v42, %v9033_v9  ;;  %v2187_v44 = vadd.f32 %v5440_v40, %v7342_v47  ;;  %v3492_v51 = vadd.f32 %v7397_v4, %v3369_v60  ;;  %v1991_v30 = vpop.f32.mrb[33].mxu1  ;;  %5713 = vmatmul.mubr.f32.gmra.mrb[108].mxu1 %v3683_v22  ;;  %v3620_v42 = vadd.f32 %v7419_v21, %v3552_v38 }
 0x2cf   :  { %v2444_v41 = vmul.f32 %v2380_v37, %v9034_v17  ;;  %v2186_v28 = vadd.f32 %v7342_v47, %v1991_v30  ;;  %v3685_v38 = vmax.f32 %v3621_v48, 0.0  ;;  %v3557_v32 = vmul.f32 %v3493_v54, %v8977_v1 }
 0x2d0   :  { %v2251_v27 = vmul.f32 %v2187_v44, %v8942_v63  ;;  %v5598_v2 = vpop.f32.mrb[116].mxu0  ;;  %v3556_v37 = vmul.f32 %v3492_v51, %v8975_v18  ;;  %v3684_v30 = vmax.f32 %v3620_v42, 0.0  ;;  %v3623_v51 = vadd.f32 %v7419_v21, %v3555_v61 }
 0x2d1   :  { %v7695_v60 = vadd.f32 %v2445_v5, %v2444_v41  ;;  %v2250_v20 = vmul.f32 %v2186_v28, %v9036_v33  ;;  %v3495_v46 = vadd.f32 %v5598_v2, %v7397_v4  ;;  %v3379_v40 = vpop.f32.mrb[117].mxu0  ;;  %v3622_v5 = vadd.f32 %v7419_v21, %v3554_v8 }
 0x2d2   :  { %v2319_v22 = vadd.f32 %v7349_v26, %v2251_v27  ;;  %v3494_v15 = vadd.f32 %v7397_v4, %v3379_v40  ;;  %5715 = vmatprep.mubr.f32.mxu1 %v3684_v30  ;;  %v3624_v40 = vadd.f32 %v7419_v21, %v3556_v37  ;;  %v3687_v61 = vmax.f32 %v3623_v51, 0.0 }
 0x2d3   :  { %v2318_v44 = vadd.f32 %v7349_v26, %v2250_v20  ;;  %5716 = vmatmul.mubr.f32.gmra.mrb[110].mxu1 %v3685_v38  ;;  %v3559_v2 = vmul.f32 %v3495_v46, %v8982_v23  ;;  %v3686_v54 = vmax.f32 %v3622_v5, 0.0 }
 0x2d4   :  { %v2383_v17 = vmax.f32 %v2319_v22, 0.0  ;;  %v5601_v41 = vpop.f32.mrb[118].mxu0  ;;  %v3558_v48 = vmul.f32 %v3494_v15, %v8980_v56  ;;  %v3688_v9 = vmax.f32 %v3624_v40, 0.0 }
 0x2d5   :  { %v2382_v28 = vmax.f32 %v2318_v44, 0.0  ;;  %v5443_v27 = vpop.f32.mrb[34].mxu1  ;;  %v3389_v42 = vpop.f32.mrb[119].mxu0  ;;  %v3497_v44 = vadd.f32 %v5601_v41, %v7397_v4  ;;  %5718 = vmatprep.mubr.f32.mxu1 %v3686_v54 }
 0x2d6   :  { %v2447_v20 = vmul.f32 %v2383_v17, %v8942_v63  ;;  %v2189_v22 = vadd.f32 %v5443_v27, %v7342_v47  ;;  %v2001_v30 = vpop.f32.mrb[35].mxu1  ;;  %v3496_v38 = vadd.f32 %v7397_v4, %v3389_v42  ;;  %v3625_v17 = vadd.f32 %v7419_v21, %v3557_v32 }
 0x2d7   :  { %v2446_v8 = vmul.f32 %v2382_v28, %v9036_v33  ;;  %v2188_v37 = vadd.f32 %v7342_v47, %v2001_v30  ;;  %5719 = vmatmul.mubr.f32.gmra.mrb[112].mxu1 %v3687_v61  ;;  %v3626_v40 = vadd.f32 %v7419_v21, %v3558_v48  ;;  %v3627_v32 = vadd.f32 %v7419_v21, %v3559_v2 }
 0x2d8   :  { %v2253_v46 = vmul.f32 %v2189_v22, %v9037_v19  ;;  %v5604_v15 = vpop.f32.mrb[120].mxu0  ;;  %v3560_v27 = vmul.f32 %v3496_v38, %v8983_v29  ;;  %5721 = vmatprep.mubr.f32.mxu1 %v3688_v9  ;;  %v3689_v54 = vmax.f32 %v3625_v17, 0.0 }
 0x2d9   :  { %v7717_v5 = vadd.f32 %v2447_v20, %v2446_v8  ;;  %v3399_v28 = vpop.f32.mrb[121].mxu0  ;;  %v2252_v41 = vmul.f32 %v2188_v37, %v9038_v58  ;;  %v3499_v22 = vadd.f32 %v5604_v15, %v7397_v4  ;;  %v3561_v20 = vmul.f32 %v3497_v44, %v8985_v36 }
 0x2da   :  { %v2321_v51 = vadd.f32 %v7349_v26, %v2253_v46  ;;  %v3498_v42 = vadd.f32 %v7397_v4, %v3399_v28  ;;  %v3628_v38 = vadd.f32 %v7419_v21, %v3560_v27  ;;  %v3690_v46 = vmax.f32 %v3626_v40, 0.0 }
 0x2db   :  { %v2320_v8 = vadd.f32 %v7349_v26, %v2252_v41  ;;  %5722 = vmatmul.mubr.f32.gmra.mrb[114].mxu1 %v3689_v54  ;;  %v3691_v41 = vmax.f32 %v3627_v32, 0.0 }
 0x2dc   :  { %v2385_v30 = vmax.f32 %v2321_v51, 0.0  ;;  %v5607_v61 = vpop.f32.mrb[122].mxu0  ;;  %v3562_v9 = vmul.f32 %v3498_v42, %v8987_v43  ;;  %v3563_v51 = vmul.f32 %v3499_v22, %v8990_v25  ;;  %5724 = vmatprep.mubr.f32.mxu1 %v3690_v46  ;;  %v3692_v54 = vmax.f32 %v3628_v38, 0.0 }
 0x2dd   :  { %v5446_v37 = vpop.f32.mrb[36].mxu1  ;;  %v3409_v17 = vpop.f32.mrb[123].mxu0  ;;  %v2384_v28 = vmax.f32 %v2320_v8, 0.0  ;;  %v3501_v40 = vadd.f32 %v5607_v61, %v7397_v4 }
 0x2de   :  { %v2449_v15 = vmul.f32 %v2385_v30, %v9037_v19  ;;  %v2191_v48 = vadd.f32 %v5446_v37, %v7342_v47  ;;  %v3500_v2 = vadd.f32 %v7397_v4, %v3409_v17  ;;  %v2011_v44 = vpop.f32.mrb[37].mxu1  ;;  %v3629_v30 = vadd.f32 %v7419_v21, %v3561_v20  ;;  %v9055_v19 = vld [vmem:[#allocation51_spill] sm:$0xff] }
 0x2df   :  { %v2190_v27 = vadd.f32 %v7342_v47, %v2011_v44  ;;  %v2448_v42 = vmul.f32 %v2384_v28, %v9038_v58  ;;  %5725 = vmatmul.mubr.f32.gmra.mrb[116].mxu1 %v3691_v41  ;;  %v3630_v32 = vadd.f32 %v7419_v21, %v3562_v9  ;;  %v2549_v63 = vrot.slane %v9055_v19, 4 }
 0x2e0   :  { %v2255_v33 = vmul.f32 %v2191_v48, %v8950_v0  ;;  %v5610_v8 = vpop.f32.mrb[124].mxu0  ;;  %v3564_v37 = vmul.f32 %v3500_v2, %v8991_v52  ;;  %5727 = vmatprep.mubr.f32.mxu1 %v3692_v54  ;;  %v3693_v48 = vmax.f32 %v3629_v30, 0.0  ;;  %v3565_v2 = vmul.f32 %v3501_v40, %v8993_v57 }
 0x2e1   :  { %v2254_v17 = vmul.f32 %v2190_v27, %v8947_v10  ;;  %v3419_v22 = vpop.f32.mrb[125].mxu0  ;;  %v7742_v46 = vadd.f32 %v2449_v15, %v2448_v42  ;;  %v3503_v61 = vadd.f32 %v5610_v8, %v7397_v4  ;;  %v3694_v44 = vmax.f32 %v3630_v32, 0.0 }
 0x2e2   :  { %v2323_v38 = vadd.f32 %v7349_v26, %v2255_v33  ;;  %v3502_v28 = vadd.f32 %v7397_v4, %v3419_v22  ;;  %v3631_v27 = vadd.f32 %v7419_v21, %v3563_v51  ;;  %v3632_v42 = vadd.f32 %v7419_v21, %v3564_v37  ;;  %v9039_v22 = vld [vmem:[#allocation114_spill] sm:$0xff] }
 0x2e3   :  { %v2322_v20 = vadd.f32 %v7349_v26, %v2254_v17  ;;  %5728 = vmatmul.mubr.f32.gmra.mrb[118].mxu1 %v3693_v48  ;;  %v3567_v17 = vmul.f32 %v3503_v61, %v9039_v22  ;;  %v9040_v61 = vld [vmem:[#allocation116_spill] sm:$0xff] }
 0x2e4   :  { %v2387_v41 = vmax.f32 %v2323_v38, 0.0  ;;  %v5613_v58 = vpop.f32.mrb[126].mxu0  ;;  %v3566_v15 = vmul.f32 %v3502_v28, %v8994_v39  ;;  %5730 = vmatprep.mubr.f32.mxu1 %v3694_v44  ;;  %v3695_v38 = vmax.f32 %v3631_v27, 0.0  ;;  %v3696_v37 = vmax.f32 %v3632_v42, 0.0 }
 0x2e5   :  { %v2386_v9 = vmax.f32 %v2322_v20, 0.0  ;;  %v5449_v33 = vpop.f32.mrb[38].mxu1  ;;  %v3429_v54 = vpop.f32.mrb[127].mxu0  ;;  %v3505_v30 = vadd.f32 %v5613_v58, %v7397_v4 }
 0x2e6   :  { %v2451_v8 = vmul.f32 %v2387_v41, %v8950_v0  ;;  %v2193_v40 = vadd.f32 %v5449_v33, %v7342_v47  ;;  %v2021_v32 = vpop.f32.mrb[39].mxu1  ;;  %v3504_v20 = vadd.f32 %v7397_v4, %v3429_v54  ;;  %v3633_v41 = vadd.f32 %v7419_v21, %v3565_v2 }
 0x2e7   :  { %v2450_v51 = vmul.f32 %v2386_v9, %v8947_v10  ;;  %v2192_v28 = vadd.f32 %v7342_v47, %v2021_v32  ;;  %5731 = vmatmul.mubr.f32.gmra.mrb[120].mxu1 %v3695_v38  ;;  %v3634_v33 = vadd.f32 %v7419_v21, %v3566_v15  ;;  %v9041_v9 = vld [vmem:[#allocation115_spill] sm:$0xff]  ;;  %v3635_v2 = vadd.f32 %v7419_v21, %v3567_v17 }
 0x2e8   :  { %v2257_v48 = vmul.f32 %v2193_v40, %v8954_v3  ;;  %v3568_v58 = vmul.f32 %v3504_v20, %v9040_v61  ;;  %v3569_v27 = vmul.f32 %v3505_v30, %v9041_v9  ;;  %5733 = vmatprep.mubr.f32.mxu1 %v3696_v37  ;;  %v3697_v54 = vmax.f32 %v3633_v41, 0.0 }
 0x2e9   :  { %v7761_v0 = vadd.f32 %v2451_v8, %v2450_v51  ;;  %v2256_v44 = vmul.f32 %v2192_v28, %v8951_v7  ;;  %v3698_v42 = vmax.f32 %v3634_v33, 0.0  ;;  %v3699_v37 = vmax.f32 %v3635_v2, 0.0 }
 0x2ea   :  { %v2325_v4 = vadd.f32 %v7349_v26, %v2257_v48  ;;  %v3636_v8 = vadd.f32 %v7419_v21, %v3568_v58  ;;  %v3637_v17 = vadd.f32 %v7419_v21, %v3569_v27 }
 0x2eb   :  { %v2324_v40 = vadd.f32 %v7349_v26, %v2256_v44  ;;  %5734 = vmatmul.mubr.f32.gmra.mrb[122].mxu1 %v3697_v54  ;;  %v4688_v54 = vld [vmem:[%s8536_s4] sm:$0xff] }
 0x2ec   :  { %v2389_v32 = vmax.f32 %v2325_v4, 0.0  ;;  %5736 = vmatprep.mubr.f32.mxu1 %v3698_v42  ;;  %v3700_v28 = vmax.f32 %v3636_v8, 0.0  ;;  %v3701_v27 = vmax.f32 %v3637_v17, 0.0 }
 0x2ed   :  { %v2388_v51 = vmax.f32 %v2324_v40, 0.0  ;;  %v5452_v38 = vpop.f32.mrb[40].mxu1  ;;  %v4689_v40 = vld [vmem:[%s8536_s4 + $0x8] sm:$0xff] }
 0x2ee   :  { %v2453_v20 = vmul.f32 %v2389_v32, %v8954_v3  ;;  %v2195_v15 = vadd.f32 %v5452_v38, %v7342_v47  ;;  %v2031_v30 = vpop.f32.mrb[41].mxu1  ;;  %v5908_v42 = vpack.c.bf16 %v4689_v40, %v4688_v54 }
 0x2ef   :  { %v2452_v48 = vmul.f32 %v2388_v51, %v8951_v7  ;;  %v2194_v41 = vadd.f32 %v7342_v47, %v2031_v30  ;;  %5737 = vmatmul.mubr.f32.gmra.mrb[124].mxu1 %v3699_v37 }
 0x2f0   :  { %v2259_v58 = vmul.f32 %v2195_v15, %v8958_v45  ;;  %5739 = vmatprep.mubr.f32.mxu1 %v3700_v28  ;;  %5909 = vmatprep.subr.bf16.mxu0 %v5908_v42 }
 0x2f1   :  { %v7777_v44 = vadd.f32 %v2453_v20, %v2452_v48  ;;  %v2258_v33 = vmul.f32 %v2194_v41, %v8955_v55  ;;  %5940 = vmatprep.subr.bf16.mxu1 %v5908_v42  ;;  %5911 = vmatpush3.bf16.msra.mxu0 %v5908_v42 }
 0x2f2   :  { %v2327_v4 = vadd.f32 %v7349_v26, %v2259_v58  ;;  %5948 = vmatpush3.bf16.msra.mxu1 %v5908_v42 }
 0x2f3   :  { %v2326_v21 = vadd.f32 %v7349_v26, %v2258_v33  ;;  %5740 = vmatmul.mubr.f32.gmra.mrb[126].mxu1 %v3701_v27  ;;  %v9042_v27 = vld [vmem:[#allocation27_spill] sm:$0xff] }
 0x2f4   :  { %v2391_v2 = vmax.f32 %v2327_v4, 0.0  ;;  %v2479_v42 = vrot.slane %v9042_v27, 4 }
 0x2f5   :  { %v2390_v8 = vmax.f32 %v2326_v21, 0.0  ;;  %v5455_v32 = vpop.f32.mrb[42].mxu1 }
 0x2f6   :  { %v2455_v51 = vmul.f32 %v2391_v2, %v8958_v45  ;;  %v2197_v38 = vadd.f32 %v5455_v32, %v7342_v47  ;;  %v2041_v20 = vpop.f32.mrb[43].mxu1  ;;  %v9043_v32 = vld [vmem:[#allocation29_spill] sm:$0xff] }
 0x2f7   :  { %v2454_v15 = vmul.f32 %v2390_v8, %v8955_v55  ;;  %v2196_v30 = vadd.f32 %v7342_v47, %v2041_v20 }
 0x2f8   :  { %v2261_v28 = vmul.f32 %v2197_v38, %v8962_v14  ;;  %v9044_v38 = vld [vmem:[#allocation31_spill] sm:$0xff] }
 0x2f9   :  { %v7793_v48 = vadd.f32 %v2455_v51, %v2454_v15  ;;  %v2260_v37 = vmul.f32 %v2196_v30, %v8960_v53  ;;  %v2486_v51 = vrot.slane %v9043_v32, 4  ;;  %v2493_v20 = vrot.slane %v9044_v38, 4 }
 0x2fa   :  { %v2329_v41 = vadd.f32 %v7349_v26, %v2261_v28 }
 0x2fb   :  { %v2328_v17 = vadd.f32 %v7349_v26, %v2260_v37 }
 0x2fc   :  { %v2393_v58 = vmax.f32 %v2329_v41, 0.0  ;;  %v2480_v41 = vadd.f32 %v2479_v42, %v9042_v27  ;;  %v4690_v42 = vld [vmem:[%s8536_s4 + $0x10] sm:$0xff] }
 0x2fd   :  { %v2392_v33 = vmax.f32 %v2328_v17, 0.0  ;;  %v5458_v4 = vpop.f32.mrb[44].mxu1 }
 0x2fe   :  { %v2457_v54 = vmul.f32 %v2393_v58, %v8962_v14  ;;  %v2199_v40 = vadd.f32 %v5458_v4, %v7342_v47  ;;  %v2051_v21 = vpop.f32.mrb[45].mxu1  ;;  %v2487_v58 = vadd.f32 %v2486_v51, %v9043_v32  ;;  %v4691_v32 = vld [vmem:[%s8536_s4 + $0x18] sm:$0xff] }
 0x2ff   :  { %v2456_v2 = vmul.f32 %v2392_v33, %v8960_v53  ;;  %v2198_v8 = vadd.f32 %v7342_v47, %v2051_v21  ;;  %v2494_v33 = vadd.f32 %v2493_v20, %v9044_v38  ;;  %v9045_v21 = vld [vmem:[#allocation33_spill] sm:$0xff] }
 0x300   :  { %v2263_v15 = vmul.f32 %v2199_v40, %v8965_v24  ;;  %v2500_v53 = vrot.slane %v9045_v21, 4  ;;  %v2488_v51 = vrot.slane %v2487_v58, 2 }
 0x301   :  { %v7806_v30 = vadd.f32 %v2457_v54, %v2456_v2  ;;  %v2262_v28 = vmul.f32 %v2198_v8, %v8963_v49  ;;  %v2481_v8 = vrot.slane %v2480_v41, 2  ;;  %v2495_v38 = vrot.slane %v2494_v33, 2 }
 0x302   :  { %v2331_v37 = vadd.f32 %v7349_v26, %v2263_v15 }
 0x303   :  { %v2330_v17 = vadd.f32 %v7349_v26, %v2262_v28  ;;  %v5912_v28 = vpack.c.bf16 %v4691_v32, %v4690_v42 }
 0x304   :  { %v2395_v4 = vmax.f32 %v2331_v37, 0.0 }
 0x305   :  { %v2394_v14 = vmax.f32 %v2330_v17, 0.0  ;;  %v5461_v55 = vpop.f32.mrb[46].mxu1  ;;  %5913 = vmatprep.subr.bf16.mxu0 %v5912_v28  ;;  %5941 = vmatprep.subr.bf16.mxu1 %v5912_v28 }
 0x306   :  { %v2459_v54 = vmul.f32 %v2395_v4, %v8965_v24  ;;  %v2201_v40 = vadd.f32 %v5461_v55, %v7342_v47  ;;  %v2061_v2 = vpop.f32.mrb[47].mxu1  ;;  %v2501_v55 = vadd.f32 %v2500_v53, %v9045_v21  ;;  %v2482_v4 = vadd.f32 %v2481_v8, %v2480_v41  ;;  %5915 = vmatpush3.bf16.msra.mxu0 %v5912_v28  ;;  %v4693_v53 = vld [vmem:[%s8536_s4 + $0x28] sm:$0xff] }
 0x307   :  { %v2458_v15 = vmul.f32 %v2394_v14, %v8963_v49  ;;  %v2200_v27 = vadd.f32 %v7342_v47, %v2061_v2  ;;  %v9046_v2 = vld [vmem:[#allocation35_spill] sm:$0xff]  ;;  %5949 = vmatpush3.bf16.msra.mxu1 %v5912_v28  ;;  %v2489_v21 = vadd.f32 %v2488_v51, %v2487_v58  ;;  %v9047_v41 = vld [vmem:[#allocation37_spill] sm:$0xff] }
 0x308   :  { %v2265_v20 = vmul.f32 %v2201_v40, %v8971_v12  ;;  %v2507_v49 = vrot.slane %v9046_v2, 4  ;;  %v4692_v40 = vld [vmem:[%s8536_s4 + $0x20] sm:$0xff]  ;;  %v2502_v42 = vrot.slane %v2501_v55, 2  ;;  %v2514_v8 = vrot.slane %v9047_v41, 4 }
 0x309   :  { %v7827_v37 = vadd.f32 %v2459_v54, %v2458_v15  ;;  %v2264_v14 = vmul.f32 %v2200_v27, %v8967_v35  ;;  %v2496_v54 = vadd.f32 %v2495_v38, %v2494_v33  ;;  %v5916_v27 = vpack.c.bf16 %v4693_v53, %v4692_v40 }
 0x30a   :  { %v2333_v17 = vadd.f32 %v7349_v26, %v2265_v20  ;;  %v2483_v7 = vrot.slane %v2482_v4, 1  ;;  %v2508_v3 = vadd.f32 %v2507_v49, %v9046_v2  ;;  %v2490_v51 = vrot.slane %v2489_v21, 1  ;;  %v5963_v49 = vld [vmem:[%s8534_s2 + $0x8] sm:$0x7f] }
 0x30b   :  { %v2332_v24 = vadd.f32 %v7349_v26, %v2264_v14  ;;  %5917 = vmatprep.subr.bf16.mxu0 %v5916_v27  ;;  %5942 = vmatprep.subr.bf16.mxu1 %v5916_v27  ;;  %v2497_v38 = vrot.slane %v2496_v54, 1  ;;  %v2515_v40 = vadd.f32 %v2514_v8, %v9047_v41  ;;  %v9048_v2 = vld [vmem:[#allocation9_spill] sm:$0xff]  ;;  %v9051_v8 = vld [vmem:[#allocation39_spill] sm:$0xff] }
 0x30c   :  { %v2397_v15 = vmax.f32 %v2333_v17, 0.0  ;;  %5919 = vmatpush3.bf16.msra.mxu0 %v5916_v27  ;;  %5950 = vmatpush3.bf16.msra.mxu1 %v5916_v27  ;;  %v2503_v17 = vadd.f32 %v2502_v42, %v2501_v55  ;;  %v7861_v42 = vadd.f32 %v2483_v7, %v2482_v4  ;;  %v2509_v41 = vrot.slane %v2508_v3, 2 }
 0x30d   :  { %v2396_v32 = vmax.f32 %v2332_v24, 0.0  ;;  %v5464_v20 = vpop.f32.mrb[48].mxu1  ;;  %v2556_v4 = vrot.slane %v7611_v31, 4 }
 0x30e   :  { %v2461_v14 = vmul.f32 %v2397_v15, %v8971_v12  ;;  %v2203_v28 = vadd.f32 %v5464_v20, %v7342_v47  ;;  %v2071_v45 = vpop.f32.mrb[49].mxu1  ;;  %v9050_v20 = vld [vmem:[#allocation45_spill] sm:$0xff] }
 0x30f   :  { %v2460_v58 = vmul.f32 %v2396_v32, %v8967_v35  ;;  %v2202_v33 = vadd.f32 %v7342_v47, %v2071_v45  ;;  %v7854_v32 = vrot.slane %v5963_v49, %v9048_v2  ;;  %v9049_v45 = vld [vmem:[#allocation11_spill] sm:$0xff]  ;;  %v2535_v35 = vrot.slane %v9050_v20, 4  ;;  %v9054_v2 = vld [vmem:[#allocation49_spill] sm:$0xff] }
 0x310   :  { %v2267_v24 = vmul.f32 %v2203_v28, %v8974_v34  ;;  %v7857_v27 = vrot.slane %v5963_v49, %v9049_v45  ;;  %v2542_v12 = vrot.slane %v9054_v2, 4  ;;  %v2504_v49 = vrot.slane %v2503_v17, 1 }
 0x311   :  { %v7847_v53 = vadd.f32 %v2461_v14, %v2460_v58  ;;  %v2266_v15 = vmul.f32 %v2202_v33, %v8972_v62  ;;  %v2521_v14 = vrot.slane %v9051_v8, 4  ;;  %v7865_v58 = vadd.f32 %v2490_v51, %v2489_v21 }
 0x312   :  { %v2335_v55 = vadd.f32 %v7349_v26, %v2267_v24  ;;  %v7867_v33 = vadd.f32 %v2497_v38, %v2496_v54  ;;  %v2516_v45 = vrot.slane %v2515_v40, 2  ;;  %v2536_v7 = vadd.f32 %v2535_v35, %v9050_v20 }
 0x313   :  { %v2334_v28 = vadd.f32 %v7349_v26, %v2266_v15  ;;  %9052 = vst [vmem:[#allocation54_spill] sm:$0xff] %v7865_v58  ;;  %v2510_v54 = vadd.f32 %v2509_v41, %v2508_v3  ;;  %v7876_v38 = vadd.f32 %v2521_v14, %v9051_v8  ;;  %v2570_v35 = vrot.slane %v7653_v50, 4 }
 0x314   :  { %9053 = vst [vmem:[#allocation56_spill] sm:$0xff] %v7867_v33  ;;  %v2399_v10 = vmax.f32 %v2335_v55, 0.0  ;;  %v7888_v41 = vadd.f32 %v2504_v49, %v2503_v17  ;;  %v2557_v8 = vadd.f32 %v2556_v4, %v7611_v31  ;;  %v2577_v49 = vrot.slane %v7673_v6, 4 }
 0x315   :  { %v2398_v16 = vmax.f32 %v2334_v28, 0.0  ;;  %v5467_v24 = vpop.f32.mrb[50].mxu1  ;;  %v2543_v28 = vadd.f32 %v2542_v12, %v9054_v2  ;;  %v2511_v14 = vrot.slane %v2510_v54, 1 }
 0x316   :  { %v2463_v13 = vmul.f32 %v2399_v10, %v8974_v34  ;;  %v2205_v21 = vadd.f32 %v5467_v24, %v7342_v47  ;;  %v2081_v51 = vpop.f32.mrb[51].mxu1  ;;  %v2517_v10 = vadd.f32 %v2516_v45, %v2515_v40  ;;  %v2550_v24 = vadd.f32 %v2549_v63, %v9055_v19  ;;  %9056 = vst [vmem:[#allocation58_spill] sm:$0xff] %v7888_v41 }
 0x317   :  { %v2462_v15 = vmul.f32 %v2398_v16, %v8972_v62  ;;  %v2204_v55 = vadd.f32 %v7342_v47, %v2081_v51  ;;  %v2537_v16 = vrot.slane %v2536_v7, 2  ;;  %v9057_v51 = vld [vmem:[#allocation43_spill] sm:$0xff]  ;;  %v2544_v45 = vrot.slane %v2543_v28, 2 }
 0x318   :  { %v2269_v20 = vmul.f32 %v2205_v21, %v8977_v1  ;;  %v2528_v62 = vrot.slane %v9057_v51, 4  ;;  %v2564_v63 = vadd.f32 %v2563_v59, %v7631_v11  ;;  %v2551_v17 = vrot.slane %v2550_v24, 2 }
 0x319   :  { %v7885_v34 = vadd.f32 %v2463_v13, %v2462_v15  ;;  %v2268_v3 = vmul.f32 %v2204_v55, %v8975_v18  ;;  %v2571_v13 = vadd.f32 %v2570_v35, %v7653_v50  ;;  %v2518_v4 = vrot.slane %v2517_v10, 1 }
 0x31a   :  { %v2337_v12 = vadd.f32 %v7349_v26, %v2269_v20  ;;  %v2538_v15 = vadd.f32 %v2537_v16, %v2536_v7  ;;  %v2558_v55 = vrot.slane %v2557_v8, 2  ;;  %v2598_v59 = vrot.slane %v7742_v46, 4 }
 0x31b   :  { %v2336_v40 = vadd.f32 %v7349_v26, %v2268_v3  ;;  %v2591_v3 = vrot.slane %v7717_v5, 4  ;;  %v2545_v35 = vadd.f32 %v2544_v45, %v2543_v28  ;;  %v2552_v7 = vadd.f32 %v2551_v17, %v2550_v24 }
 0x31c   :  { %v2401_v19 = vmax.f32 %v2337_v12, 0.0  ;;  %v2565_v12 = vrot.slane %v2564_v63, 2  ;;  %v2578_v16 = vadd.f32 %v2577_v49, %v7673_v6  ;;  %v2559_v58 = vadd.f32 %v2558_v55, %v2557_v8 }
 0x31d   :  { %v2400_v21 = vmax.f32 %v2336_v40, 0.0  ;;  %v5470_v31 = vpop.f32.mrb[52].mxu1  ;;  %v2572_v40 = vrot.slane %v2571_v13, 2  ;;  %v2592_v28 = vadd.f32 %v2591_v3, %v7717_v5  ;;  %v2539_v6 = vrot.slane %v2538_v15, 1 }
 0x31e   :  { %v2465_v20 = vmul.f32 %v2401_v19, %v8977_v1  ;;  %v2207_v2 = vadd.f32 %v5470_v31, %v7342_v47  ;;  %v2091_v41 = vpop.f32.mrb[53].mxu1  ;;  %v7910_v1 = vadd.f32 %v2528_v62, %v9057_v51  ;;  %v2566_v45 = vadd.f32 %v2565_v12, %v2564_v63 }
 0x31f   :  { %v2464_v11 = vmul.f32 %v2400_v21, %v8975_v18  ;;  %v2206_v50 = vadd.f32 %v7342_v47, %v2091_v41  ;;  %v7913_v18 = vadd.f32 %v2511_v14, %v2510_v54  ;;  %v2599_v41 = vadd.f32 %v2598_v59, %v7742_v46 }
 0x320   :  { %v2271_v33 = vmul.f32 %v2207_v2, %v8982_v23  ;;  %v7918_v2 = vadd.f32 %v2518_v4, %v2517_v10  ;;  %v2573_v17 = vadd.f32 %v2572_v40, %v2571_v13  ;;  %v2553_v62 = vrot.slane %v2552_v7, 1 }
 0x321   :  { %v7906_v19 = vadd.f32 %v2465_v20, %v2464_v11  ;;  %v2270_v31 = vmul.f32 %v2206_v50, %v8980_v56  ;;  %v2546_v20 = vrot.slane %v2545_v35, 1  ;;  %v2579_v51 = vrot.slane %v2578_v16, 2 }
 0x322   :  { %v2339_v21 = vadd.f32 %v7349_v26, %v2271_v33  ;;  %v2560_v33 = vrot.slane %v2559_v58, 1  ;;  %v2584_v54 = vrot.slane %v7695_v60, 4  ;;  %v2593_v3 = vrot.slane %v2592_v28, 2 }
 0x323   :  { %v2338_v24 = vadd.f32 %v7349_v26, %v2270_v31  ;;  %v2600_v10 = vrot.slane %v2599_v41, 2  ;;  %v7925_v13 = vadd.f32 %v2539_v6, %v2538_v15  ;;  %v2567_v59 = vrot.slane %v2566_v45, 1 }
 0x324   :  { %v2403_v49 = vmax.f32 %v2339_v21, 0.0  ;;  %v2574_v11 = vrot.slane %v2573_v17, 1  ;;  %v7928_v12 = vadd.f32 %v2579_v51, %v2578_v16  ;;  %v2605_v40 = vrot.slane %v7761_v0, 4 }
 0x325   :  { %v2402_v8 = vmax.f32 %v2338_v24, 0.0  ;;  %v5473_v55 = vpop.f32.mrb[54].mxu1  ;;  %v7934_v24 = vadd.f32 %v2546_v20, %v2545_v35  ;;  %v7940_v6 = vadd.f32 %v2560_v33, %v2559_v58  ;;  %v7943_v51 = vadd.f32 %v2567_v59, %v2566_v45 }
 0x326   :  { %v2467_v5 = vmul.f32 %v2403_v49, %v8982_v23  ;;  %v2209_v46 = vadd.f32 %v5473_v55, %v7342_v47  ;;  %v2101_v14 = vpop.f32.mrb[55].mxu1  ;;  %v7936_v49 = vadd.f32 %v2553_v62, %v2552_v7  ;;  %v2594_v55 = vadd.f32 %v2593_v3, %v2592_v28 }
 0x327   :  { %v2466_v4 = vmul.f32 %v2402_v8, %v8980_v56  ;;  %v2208_v63 = vadd.f32 %v7342_v47, %v2101_v14  ;;  %v2585_v8 = vadd.f32 %v2584_v54, %v7695_v60  ;;  %v2619_v14 = vrot.slane %v7793_v48, 4 }
 0x328   :  { %v2273_v50 = vmul.f32 %v2209_v46, %v8985_v36  ;;  %v2601_v46 = vadd.f32 %v2600_v10, %v2599_v41  ;;  %v7947_v20 = vadd.f32 %v2574_v11, %v2573_v17  ;;  %v2581_v7 = vrot.slane %v7928_v12, 1 }
 0x329   :  { %v7931_v31 = vadd.f32 %v2467_v5, %v2466_v4  ;;  %v2272_v21 = vmul.f32 %v2208_v63, %v8983_v29  ;;  %v2612_v5 = vrot.slane %v7777_v44, 4  ;;  %v2606_v60 = vadd.f32 %v2605_v40, %v7761_v0  ;;  %v4694_v40 = vld [vmem:[%s8536_s4 + $0x30] sm:$0xff] }
 0x32a   :  { %v2341_v15 = vadd.f32 %v7349_v26, %v2273_v50  ;;  %v2586_v33 = vrot.slane %v2585_v8, 2  ;;  %v2626_v28 = vrot.slane %v7806_v30, 4  ;;  %v2595_v3 = vrot.slane %v2594_v55, 1 }
 0x32b   :  { %v2340_v16 = vadd.f32 %v7349_v26, %v2272_v21  ;;  %v2602_v10 = vrot.slane %v2601_v46, 1  ;;  %v2613_v63 = vadd.f32 %v2612_v5, %v7777_v44  ;;  %v2620_v0 = vadd.f32 %v2619_v14, %v7793_v48  ;;  %v4695_v21 = vld [vmem:[%s8536_s4 + $0x38] sm:$0xff] }
 0x32c   :  { %v2405_v35 = vmax.f32 %v2341_v15, 0.0  ;;  %v9058_v11 = vrot.slane %v7876_v38, 2  ;;  %v2607_v15 = vrot.slane %v2606_v60, 2  ;;  %v5920_v48 = vpack.c.bf16 %v4695_v21, %v4694_v40 }
 0x32d   :  { %v2404_v62 = vmax.f32 %v2340_v16, 0.0  ;;  %v5476_v58 = vpop.f32.mrb[56].mxu1  ;;  %v7973_v5 = vadd.f32 %v2586_v33, %v2585_v8  ;;  %v2627_v14 = vadd.f32 %v2626_v28, %v7806_v30  ;;  %v4696_v8 = vld [vmem:[%s8536_s4 + $0x40] sm:$0xff]  ;;  %v4697_v30 = vld [vmem:[%s8536_s4 + $0x48] sm:$0xff]  ;;  %v2614_v33 = vrot.slane %v2613_v63, 2 }
 0x32e   :  { %v2469_v41 = vmul.f32 %v2405_v35, %v8985_v36  ;;  %v2211_v45 = vadd.f32 %v5476_v58, %v7342_v47  ;;  %v2111_v54 = vpop.f32.mrb[57].mxu1  ;;  %v7962_v50 = vadd.f32 %v9058_v11, %v7876_v38  ;;  %v2633_v38 = vrot.slane %v7827_v37, 4  ;;  %5921 = vmatprep.subr.bf16.mxu0 %v5920_v48  ;;  %5943 = vmatprep.subr.bf16.mxu1 %v5920_v48 }
 0x32f   :  { %v2468_v4 = vmul.f32 %v2404_v62, %v8983_v29  ;;  %v2210_v17 = vadd.f32 %v7342_v47, %v2111_v54  ;;  %v7978_v62 = vadd.f32 %v2595_v3, %v2594_v55  ;;  %v7980_v58 = vadd.f32 %v2602_v10, %v2601_v46  ;;  %5923 = vmatpush3.bf16.msra.mxu0 %v5920_v48  ;;  %v4698_v54 = vld [vmem:[%s8536_s4 + $0x50] sm:$0xff]  ;;  %v4699_v3 = vld [vmem:[%s8536_s4 + $0x58] sm:$0xff] }
 0x330   :  { %v2275_v59 = vmul.f32 %v2211_v45, %v8990_v25  ;;  %v2621_v28 = vrot.slane %v2620_v0, 2  ;;  %5951 = vmatpush3.bf16.msra.mxu1 %v5920_v48  ;;  %v5924_v46 = vpack.c.bf16 %v4697_v30, %v4696_v8  ;;  %v2608_v10 = vadd.f32 %v2607_v15, %v2606_v60  ;;  %v4700_v8 = vld [vmem:[%s8536_s4 + $0x60] sm:$0xff]  ;;  %v4701_v60 = vld [vmem:[%s8536_s4 + $0x68] sm:$0xff] }
 0x331   :  { %v7970_v16 = vadd.f32 %v2469_v41, %v2468_v4  ;;  %v2274_v44 = vmul.f32 %v2210_v17, %v8987_v43  ;;  %v2530_v41 = vrot.slane %v7910_v1, 2  ;;  %v5928_v11 = vpack.c.bf16 %v4699_v3, %v4698_v54 }
 0x332   :  { %v2343_v35 = vadd.f32 %v7349_v26, %v2275_v59  ;;  %v2525_v59 = vrot.slane %v7962_v50, 1  ;;  %v2628_v40 = vrot.slane %v2627_v14, 2  ;;  %v2634_v21 = vadd.f32 %v2633_v38, %v7827_v37  ;;  %5925 = vmatprep.subr.bf16.mxu0 %v5924_v46  ;;  %5944 = vmatprep.subr.bf16.mxu1 %v5924_v46 }
 0x333   :  { %v2342_v45 = vadd.f32 %v7349_v26, %v2274_v44  ;;  %v2531_v37 = vadd.f32 %v2530_v41, %v7910_v1  ;;  %v8010_v38 = vadd.f32 %v2581_v7, %v7928_v12  ;;  %v2615_v30 = vadd.f32 %v2614_v33, %v2613_v63  ;;  %5927 = vmatpush3.bf16.msra.mxu0 %v5924_v46  ;;  %v4703_v41 = vld [vmem:[%s8536_s4 + $0x78] sm:$0xff] }
 0x334   :  { %v2407_v55 = vmax.f32 %v2343_v35, 0.0  ;;  %5952 = vmatpush3.bf16.msra.mxu1 %v5924_v46  ;;  %v2588_v3 = vrot.slane %v7973_v5, 1  ;;  %5929 = vmatprep.subr.bf16.mxu0 %v5928_v11  ;;  %v2609_v1 = vrot.slane %v2608_v10, 1  ;;  %v2629_v12 = vadd.f32 %v2628_v40, %v2627_v14 }
 0x335   :  { %v2406_v4 = vmax.f32 %v2342_v45, 0.0  ;;  %v5479_v17 = vpop.f32.mrb[58].mxu1  ;;  %5945 = vmatprep.subr.bf16.mxu1 %v5928_v11  ;;  %v2635_v7 = vrot.slane %v2634_v21, 2  ;;  %v2647_v33 = vrot.slane %v7885_v34, 4  ;;  %v8028_v46 = vadd.f32 %v2525_v59, %v7962_v50 }
 0x336   :  { %v2471_v44 = vmul.f32 %v2407_v55, %v8990_v25  ;;  %v2213_v48 = vadd.f32 %v5479_v17, %v7342_v47  ;;  %v2121_v35 = vpop.f32.mrb[59].mxu1  ;;  %v2622_v55 = vadd.f32 %v2621_v28, %v2620_v0  ;;  %v2640_v17 = vrot.slane %v7847_v53, 4  ;;  %v4702_v0 = vld [vmem:[%s8536_s4 + $0x70] sm:$0xff] }
 0x337   :  { %v2470_v15 = vmul.f32 %v2406_v4, %v8987_v43  ;;  %v2212_v45 = vadd.f32 %v7342_v47, %v2121_v35  ;;  %v5932_v35 = vpack.c.bf16 %v4701_v60, %v4700_v8  ;;  %v2616_v14 = vrot.slane %v2615_v30, 1  ;;  %5931 = vmatpush3.bf16.msra.mxu0 %v5928_v11 }
 0x338   :  { %v2277_v54 = vmul.f32 %v2213_v48, %v8993_v57  ;;  %v2623_v40 = vrot.slane %v2622_v55, 1  ;;  %v8031_v8 = vadd.f32 %v2588_v3, %v7973_v5  ;;  %5953 = vmatpush3.bf16.msra.mxu1 %v5928_v11  ;;  %v2641_v60 = vadd.f32 %v2640_v17, %v7847_v53 }
 0x339   :  { %v8015_v25 = vadd.f32 %v2471_v44, %v2470_v15  ;;  %v2276_v4 = vmul.f32 %v2212_v45, %v8991_v52  ;;  %v2532_v44 = vrot.slane %v2531_v37, 1  ;;  %v2654_v15 = vrot.slane %v7906_v19, 4  ;;  %5933 = vmatprep.subr.bf16.mxu0 %v5932_v35  ;;  %5946 = vmatprep.subr.bf16.mxu1 %v5932_v35 }
 0x33a   :  { %v2345_v63 = vadd.f32 %v7349_v26, %v2277_v54  ;;  %v5936_v54 = vpack.c.bf16 %v4703_v41, %v4702_v0  ;;  %v2630_v43 = vrot.slane %v2629_v12, 1  ;;  %v2648_v29 = vadd.f32 %v2647_v33, %v7885_v34 }
 0x33b   :  { %v2344_v28 = vadd.f32 %v7349_v26, %v2276_v4  ;;  %v8035_v4 = vadd.f32 %v2609_v1, %v2608_v10  ;;  %v8041_v3 = vadd.f32 %v2532_v44, %v2531_v37  ;;  %v8043_v17 = vadd.f32 %v2616_v14, %v2615_v30  ;;  %5935 = vmatpush3.bf16.msra.mxu0 %v5932_v35 }
 0x33c   :  { %v2409_v48 = vmax.f32 %v2345_v63, 0.0  ;;  %v2636_v63 = vadd.f32 %v2635_v7, %v2634_v21  ;;  %v2661_v0 = vrot.slane %v7931_v31, 4  ;;  %5954 = vmatpush3.bf16.msra.mxu1 %v5932_v35  ;;  %v8047_v1 = vadd.f32 %v2623_v40, %v2622_v55  ;;  %5937 = vmatprep.subr.bf16.mxu0 %v5936_v54 }
 0x33d   :  { %v2408_v45 = vmax.f32 %v2344_v28, 0.0  ;;  %v5482_v59 = vpop.f32.mrb[60].mxu1  ;;  %9059 = vst [vmem:[#allocation60_spill] sm:$0xff] %v8043_v17  ;;  %v2655_v21 = vadd.f32 %v2654_v15, %v7906_v19  ;;  %v2642_v41 = vrot.slane %v2641_v60, 2  ;;  %5947 = vmatprep.subr.bf16.mxu1 %v5936_v54  ;;  %v2668_v37 = vrot.slane %v7970_v16, 4 }
 0x33e   :  { %v2473_v50 = vmul.f32 %v2409_v48, %v8993_v57  ;;  %v2215_v11 = vadd.f32 %v5482_v59, %v7342_v47  ;;  %v2131_v53 = vpop.f32.mrb[61].mxu1  ;;  %9060 = vst [vmem:[#allocation62_spill] sm:$0xff] %v8047_v1  ;;  %v8053_v28 = vadd.f32 %v2630_v43, %v2629_v12  ;;  %v2637_v44 = vrot.slane %v2636_v63, 1  ;;  %v9095_v1 = vld [vmem:[#allocation42_spill] sm:$0xff] }
 0x33f   :  { %v2472_v5 = vmul.f32 %v2408_v45, %v8991_v52  ;;  %v2214_v10 = vadd.f32 %v7342_v47, %v2131_v53  ;;  %v2649_v14 = vrot.slane %v2648_v29, 2  ;;  %v2675_v55 = vrot.slane %v8015_v25, 4  ;;  %5939 = vmatpush3.bf16.msra.mxu0 %v5936_v54 }
 0x340   :  { %v2279_v7 = vmul.f32 %v2215_v11, %v9039_v22  ;;  %9061 = vst [vmem:[#allocation64_spill] sm:$0xff] %v8053_v28  ;;  %v2662_v48 = vadd.f32 %v2661_v0, %v7931_v31  ;;  %5955 = vmatpush3.bf16.msra.mxu1 %v5936_v54  ;;  %v2656_v43 = vrot.slane %v2655_v21, 2  ;;  %v2669_v11 = vadd.f32 %v2668_v37, %v7970_v16 }
 0x341   :  { %v2681_v34 = vadd.f32 %v2473_v50, %v2472_v5  ;;  %v2278_v30 = vmul.f32 %v2214_v10, %v8994_v39  ;;  %v2643_v5 = vadd.f32 %v2642_v41, %v2641_v60  ;;  %v2650_v31 = vadd.f32 %v2649_v14, %v2648_v29 }
 0x342   :  { %v5485_v33 = vpop.f32.mrb[62].mxu1  ;;  %v2347_v35 = vadd.f32 %v7349_v26, %v2279_v7  ;;  %v8064_v7 = vadd.f32 %v2637_v44, %v2636_v63  ;;  %v2676_v0 = vadd.f32 %v2675_v55, %v8015_v25  ;;  %v2663_v54 = vrot.slane %v2662_v48, 2 }
 0x343   :  { %v2217_v19 = vadd.f32 %v5485_v33, %v7342_v47  ;;  %v2141_v40 = vpop.f32.mrb[63].mxu1  ;;  %v2682_v15 = vrot.slane %v2681_v34, 4  ;;  %v2346_v45 = vadd.f32 %v7349_v26, %v2278_v30  ;;  %v2657_v16 = vadd.f32 %v2656_v43, %v2655_v21  ;;  %v9064_v43 = vld [vmem:[#allocation12_spill] sm:$0xff] }
 0x344   :  { %v2216_v50 = vadd.f32 %v7342_v47, %v2141_v40  ;;  %v2411_v12 = vmax.f32 %v2347_v35, 0.0  ;;  %9062 = vst [vmem:[#allocation66_spill] sm:$0xff] %v8064_v7  ;;  %v2644_v44 = vrot.slane %v2643_v5, 1  ;;  %v2670_v29 = vrot.slane %v2669_v11, 2 }
 0x345   :  { %v2281_v59 = vmul.f32 %v2217_v19, %v9041_v9  ;;  %v2410_v53 = vmax.f32 %v2346_v45, 0.0  ;;  %v2683_v33 = vadd.f32 %v2682_v15, %v2681_v34  ;;  %v2651_v40 = vrot.slane %v2650_v31, 1  ;;  %v9063_v15 = vld [vmem:[#allocation13_spill] sm:$0xff] }
 0x346   :  { %v2280_v10 = vmul.f32 %v2216_v50, %v9040_v61  ;;  %v2475_v30 = vmul.f32 %v2411_v12, %v9039_v22  ;;  %v5648_v41 = vpop.f32.mrb[64].mxu1  ;;  %v2677_v45 = vrot.slane %v2676_v0, 2  ;;  %v2664_v12 = vadd.f32 %v2663_v54, %v2662_v48 }
 0x347   :  { %v2349_v47 = vadd.f32 %v7349_v26, %v2281_v59  ;;  %v2474_v35 = vmul.f32 %v2410_v53, %v8994_v39  ;;  %v4109_v19 = vadd.f32 %v5648_v41, %v7854_v32  ;;  %v3785_v63 = vpop.f32.mrb[65].mxu1  ;;  %v2671_v41 = vadd.f32 %v2670_v29, %v2669_v11 }
 0x348   :  { %v2348_v60 = vadd.f32 %v7349_v26, %v2280_v10  ;;  %v4108_v55 = vadd.f32 %v7854_v32, %v3785_v63  ;;  %v2684_v26 = vrot.slane %v2683_v33, 2  ;;  %v2658_v10 = vrot.slane %v2657_v16, 1 }
 0x349   :  { %v2413_v37 = vmax.f32 %v2349_v47, 0.0  ;;  %v2688_v14 = vadd.f32 %v2475_v30, %v2474_v35  ;;  %v4173_v50 = vmul.f32 %v4109_v19, %v9063_v15  ;;  %v8085_v54 = vadd.f32 %v2651_v40, %v2650_v31 }
 0x34a   :  { %v2412_v25 = vmax.f32 %v2348_v60, 0.0  ;;  %v4172_v59 = vmul.f32 %v4108_v55, %v9064_v43  ;;  %v5651_v53 = vpop.f32.mrb[66].mxu1  ;;  %v8079_v60 = vadd.f32 %v2644_v44, %v2643_v5  ;;  %v2678_v19 = vadd.f32 %v2677_v45, %v2676_v0  ;;  %v9067_v55 = vld [vmem:[#allocation15_spill] sm:$0xff] }
 0x34b   :  { %v2477_v34 = vmul.f32 %v2413_v37, %v9041_v9  ;;  %v4241_v47 = vadd.f32 %v7857_v27, %v4173_v50  ;;  %v4111_v30 = vadd.f32 %v5651_v53, %v7854_v32  ;;  %v3795_v35 = vpop.f32.mrb[67].mxu1  ;;  %v2665_v9 = vrot.slane %v2664_v12, 1  ;;  %v9068_v53 = vld [vmem:[#allocation14_spill] sm:$0xff] }
 0x34c   :  { %v2476_v21 = vmul.f32 %v2412_v25, %v9040_v61  ;;  %9065 = vst [vmem:[#allocation68_spill] sm:$0xff] %v8079_v60  ;;  %v4240_v37 = vadd.f32 %v7857_v27, %v4172_v59  ;;  %v4110_v48 = vadd.f32 %v7854_v32, %v3795_v35  ;;  %v2685_v50 = vadd.f32 %v2684_v26, %v2683_v33  ;;  %v9070_v59 = vld [vmem:[#allocation17_spill] sm:$0xff] }
 0x34d   :  { %v4305_v25 = vmax.f32 %v4241_v47, 0.0  ;;  %v4175_v61 = vmul.f32 %v4111_v30, %v9067_v55  ;;  %v2689_v44 = vrot.slane %v2688_v14, 4  ;;  %v8092_v31 = vadd.f32 %v2658_v10, %v2657_v16 }
 0x34e   :  { %v8081_v63 = vadd.f32 %v2477_v34, %v2476_v21  ;;  %v4304_v7 = vmax.f32 %v4240_v37, 0.0  ;;  %v4174_v28 = vmul.f32 %v4110_v48, %v9068_v53  ;;  %v5654_v5 = vpop.f32.mrb[68].mxu1  ;;  %v2672_v0 = vrot.slane %v2671_v41, 1 }
 0x34f   :  { %v4369_v11 = vmul.f32 %v4305_v25, %v9063_v15  ;;  %v4243_v29 = vadd.f32 %v7857_v27, %v4175_v61  ;;  %v4113_v34 = vadd.f32 %v5654_v5, %v7854_v32  ;;  %v3805_v21 = vpop.f32.mrb[69].mxu1  ;;  %9069 = vst [vmem:[#allocation72_spill] sm:$0xff] %v8092_v31  ;;  %v2679_v33 = vrot.slane %v2678_v19, 1  ;;  %v9072_v25 = vld [vmem:[#allocation16_spill] sm:$0xff] }
 0x350   :  { %9066 = vst [vmem:[#allocation70_spill] sm:$0xff] %v8081_v63  ;;  %v4368_v40 = vmul.f32 %v4304_v7, %v9064_v43  ;;  %v4242_v45 = vadd.f32 %v7857_v27, %v4174_v28  ;;  %v4112_v30 = vadd.f32 %v7854_v32, %v3805_v21  ;;  %v8098_v35 = vadd.f32 %v2665_v9, %v2664_v12 }
 0x351   :  { %v4307_v26 = vmax.f32 %v4243_v29, 0.0  ;;  %v4177_v47 = vmul.f32 %v4113_v34, %v9070_v59  ;;  %v2686_v15 = vrot.slane %v2685_v50, 1  ;;  %v2690_v48 = vadd.f32 %v2689_v44, %v2688_v14 }
 0x352   :  { %9071 = vst [vmem:[#allocation74_spill] sm:$0xff] %v8098_v35  ;;  %v4432_v61 = vadd.f32 %v4369_v11, %v4368_v40  ;;  %v4306_v37 = vmax.f32 %v4242_v45, 0.0  ;;  %v4176_v7 = vmul.f32 %v4112_v30, %v9072_v25  ;;  %v5657_v43 = vpop.f32.mrb[70].mxu1  ;;  %v8103_v28 = vadd.f32 %v2672_v0, %v2671_v41  ;;  %v9076_v45 = vld [vmem:[#allocation19_spill] sm:$0xff] }
 0x353   :  { %v4371_v16 = vmul.f32 %v4307_v26, %v9067_v55  ;;  %v4245_v10 = vadd.f32 %v7857_v27, %v4177_v47  ;;  %v4115_v34 = vadd.f32 %v5657_v43, %v7854_v32  ;;  %v3815_v9 = vpop.f32.mrb[71].mxu1  ;;  %v8107_v12 = vadd.f32 %v2679_v33, %v2678_v19  ;;  %v9077_v47 = vld [vmem:[#allocation18_spill] sm:$0xff] }
 0x354   :  { %9073 = vst [vmem:[#allocation76_spill] sm:$0xff] %v8103_v28  ;;  %v4433_v5 = vrot.slane %v4432_v61, 4  ;;  %v4370_v29 = vmul.f32 %v4306_v37, %v9068_v53  ;;  %v4244_v14 = vadd.f32 %v7857_v27, %v4176_v7  ;;  %v4114_v55 = vadd.f32 %v7854_v32, %v3815_v9 }
 0x355   :  { %9074 = vst [vmem:[#allocation78_spill] sm:$0xff] %v8107_v12  ;;  %v4309_v11 = vmax.f32 %v4245_v10, 0.0  ;;  %v8111_v44 = vadd.f32 %v2686_v15, %v2685_v50  ;;  %v4179_v41 = vmul.f32 %v4115_v34, %v9076_v45  ;;  %v2691_v0 = vrot.slane %v2690_v48, 2  ;;  %v9078_v34 = vld [vmem:[#allocation21_spill] sm:$0xff] }
 0x356   :  { %v4434_v21 = vadd.f32 %v4433_v5, %v4432_v61  ;;  %v4439_v40 = vadd.f32 %v4371_v16, %v4370_v29  ;;  %v4308_v53 = vmax.f32 %v4244_v14, 0.0  ;;  %v4178_v30 = vmul.f32 %v4114_v55, %v9077_v47  ;;  %v5660_v37 = vpop.f32.mrb[72].mxu1 }
 0x357   :  { %9075 = vst [vmem:[#allocation80_spill] sm:$0xff] %v8111_v44  ;;  %v4373_v26 = vmul.f32 %v4309_v11, %v9070_v59  ;;  %v4247_v10 = vadd.f32 %v7857_v27, %v4179_v41  ;;  %v4117_v7 = vadd.f32 %v5660_v37, %v7854_v32  ;;  %v3825_v43 = vpop.f32.mrb[73].mxu1  ;;  %v8123_v11 = vadd.f32 %v2691_v0, %v2690_v48  ;;  %v9080_v41 = vld [vmem:[#allocation20_spill] sm:$0xff] }
 0x358   :  { %v4435_v19 = vrot.slane %v4434_v21, 2  ;;  %v4440_v33 = vrot.slane %v4439_v40, 4  ;;  %v4372_v15 = vmul.f32 %v4308_v53, %v9072_v25  ;;  %v4246_v61 = vadd.f32 %v7857_v27, %v4178_v30 }
 0x359   :  { %v4116_v16 = vadd.f32 %v7854_v32, %v3825_v43  ;;  %v4311_v29 = vmax.f32 %v4247_v10, 0.0  ;;  %v4181_v9 = vmul.f32 %v4117_v7, %v9078_v34  ;;  %9079 = vst [vmem:[#allocation82_spill] sm:$0xff] %v8123_v11 }
 0x35a   :  { %v4436_v59 = vadd.f32 %v4435_v19, %v4434_v21  ;;  %v4441_v5 = vadd.f32 %v4440_v33, %v4439_v40  ;;  %v4446_v14 = vadd.f32 %v4373_v26, %v4372_v15  ;;  %v4310_v55 = vmax.f32 %v4246_v61, 0.0  ;;  %v5663_v44 = vpop.f32.mrb[74].mxu1  ;;  %v9081_v61 = vld [vmem:[#allocation23_spill] sm:$0xff] }
 0x35b   :  { %v4180_v37 = vmul.f32 %v4116_v16, %v9080_v41  ;;  %v4375_v25 = vmul.f32 %v4311_v29, %v9076_v45  ;;  %v4249_v53 = vadd.f32 %v7857_v27, %v4181_v9  ;;  %v3835_v30 = vpop.f32.mrb[75].mxu1  ;;  %v4119_v48 = vadd.f32 %v5663_v44, %v7854_v32 }
 0x35c   :  { %v4437_v60 = vrot.slane %v4436_v59, 1  ;;  %v4442_v50 = vrot.slane %v4441_v5, 2  ;;  %v4447_v43 = vrot.slane %v4446_v14, 4  ;;  %v4374_v21 = vmul.f32 %v4310_v55, %v9077_v47  ;;  %v9082_v55 = vld [vmem:[#allocation22_spill] sm:$0xff] }
 0x35d   :  { %v4248_v40 = vadd.f32 %v7857_v27, %v4180_v37  ;;  %v4313_v19 = vmax.f32 %v4249_v53, 0.0  ;;  %v4118_v33 = vadd.f32 %v7854_v32, %v3835_v30  ;;  %v4183_v45 = vmul.f32 %v4119_v48, %v9081_v61  ;;  %v9083_v48 = vld [vmem:[#allocation54_spill] sm:$0xff] }
 0x35e   :  { %v4438_v0 = vadd.f32 %v4437_v60, %v4436_v59  ;;  %v4443_v26 = vadd.f32 %v4442_v50, %v4441_v5  ;;  %v4448_v10 = vadd.f32 %v4447_v43, %v4446_v14  ;;  %v4453_v7 = vadd.f32 %v4375_v25, %v4374_v21 }
 0x35f   :  { %v4312_v15 = vmax.f32 %v4248_v40, 0.0  ;;  %v5666_v16 = vpop.f32.mrb[76].mxu1  ;;  %v4377_v47 = vmul.f32 %v4313_v19, %v9078_v34  ;;  %v4182_v37 = vmul.f32 %v4118_v33, %v9082_v55  ;;  %v4251_v5 = vadd.f32 %v7857_v27, %v4183_v45  ;;  %v9084_v33 = vld [vmem:[#allocation25_spill] sm:$0xff] }
 0x360   :  { %v8134_v29 = vadd.f32 %v4438_v0, %v7861_v42  ;;  %v4444_v9 = vrot.slane %v4443_v26, 1  ;;  %v3845_v44 = vpop.f32.mrb[77].mxu1  ;;  %v4449_v60 = vrot.slane %v4448_v10, 2  ;;  %v4454_v50 = vrot.slane %v4453_v7, 4 }
 0x361   :  { %v4376_v59 = vmul.f32 %v4312_v15, %v9080_v41  ;;  %v4250_v25 = vadd.f32 %v7857_v27, %v4182_v37  ;;  %v4121_v53 = vadd.f32 %v5666_v16, %v7854_v32  ;;  %v4120_v42 = vadd.f32 %v7854_v32, %v3845_v44  ;;  %v9085_v15 = vld [vmem:[#allocation24_spill] sm:$0xff] }
 0x362   :  { %v4445_v14 = vadd.f32 %v4444_v9, %v4443_v26  ;;  %v4450_v30 = vadd.f32 %v4449_v60, %v4448_v10  ;;  %v4455_v43 = vadd.f32 %v4454_v50, %v4453_v7  ;;  %v4315_v34 = vmax.f32 %v4251_v5, 0.0 }
 0x363   :  { %v4460_v21 = vadd.f32 %v4377_v47, %v4376_v59  ;;  %v5669_v40 = vpop.f32.mrb[78].mxu1  ;;  %v4314_v19 = vmax.f32 %v4250_v25, 0.0  ;;  %v4185_v41 = vmul.f32 %v4121_v53, %v9084_v33  ;;  %v4184_v45 = vmul.f32 %v4120_v42, %v9085_v15 }
 0x364   :  { %v8144_v0 = vadd.f32 %v4445_v14, %v9083_v48  ;;  %v3855_v26 = vpop.f32.mrb[79].mxu1  ;;  %v4451_v9 = vrot.slane %v4450_v30, 1  ;;  %v4456_v37 = vrot.slane %v4455_v43, 2  ;;  %v4379_v16 = vmul.f32 %v4315_v34, %v9081_v61  ;;  %v9086_v48 = vld [vmem:[#allocation28_spill] sm:$0xff] }
 0x365   :  { %v4461_v63 = vrot.slane %v4460_v21, 4  ;;  %v4378_v10 = vmul.f32 %v4314_v19, %v9082_v55  ;;  %v4253_v7 = vadd.f32 %v7857_v27, %v4185_v41  ;;  %v4252_v47 = vadd.f32 %v7857_v27, %v4184_v45  ;;  %v9087_v34 = vld [vmem:[#allocation56_spill] sm:$0xff]  ;;  %v9088_v45 = vld [vmem:[#allocation26_spill] sm:$0xff] }
 0x366   :  { %v4123_v44 = vadd.f32 %v5669_v40, %v7854_v32  ;;  %v4452_v60 = vadd.f32 %v4451_v9, %v4450_v30  ;;  %v4457_v50 = vadd.f32 %v4456_v37, %v4455_v43  ;;  %v4122_v5 = vadd.f32 %v7854_v32, %v3855_v26 }
 0x367   :  { %v4462_v59 = vadd.f32 %v4461_v63, %v4460_v21  ;;  %v5672_v14 = vpop.f32.mrb[80].mxu1  ;;  %v4467_v25 = vadd.f32 %v4379_v16, %v4378_v10  ;;  %v4317_v53 = vmax.f32 %v4253_v7, 0.0  ;;  %v4316_v42 = vmax.f32 %v4252_v47, 0.0 }
 0x368   :  { %v4187_v11 = vmul.f32 %v4123_v44, %v9086_v48  ;;  %v3865_v61 = vpop.f32.mrb[81].mxu1  ;;  %v8156_v55 = vadd.f32 %v4452_v60, %v9087_v34  ;;  %v4458_v19 = vrot.slane %v4457_v50, 1  ;;  %v4186_v12 = vmul.f32 %v4122_v5, %v9088_v45 }
 0x369   :  { %v4463_v41 = vrot.slane %v4462_v59, 2  ;;  %v4468_v40 = vrot.slane %v4467_v25, 4  ;;  %v4381_v30 = vmul.f32 %v4317_v53, %v9084_v33  ;;  %v4380_v63 = vmul.f32 %v4316_v42, %v9085_v15  ;;  %v9089_v53 = vld [vmem:[#allocation32_spill] sm:$0xff] }
 0x36a   :  { %v4255_v43 = vadd.f32 %v7857_v27, %v4187_v11  ;;  %v8162_v21 = vadd.f32 %v4458_v19, %v4457_v50  ;;  %v4254_v9 = vadd.f32 %v7857_v27, %v4186_v12  ;;  %v4125_v37 = vadd.f32 %v5672_v14, %v7854_v32  ;;  %v9090_v12 = vld [vmem:[#allocation30_spill] sm:$0xff]  ;;  %v9091_v19 = vld [vmem:[#allocation36_spill] sm:$0xff] }
 0x36b   :  { %v4464_v26 = vadd.f32 %v4463_v41, %v4462_v59  ;;  %v5675_v16 = vpop.f32.mrb[82].mxu1  ;;  %v4469_v10 = vadd.f32 %v4468_v40, %v4467_v25  ;;  %v4474_v7 = vadd.f32 %v4381_v30, %v4380_v63  ;;  %v4124_v44 = vadd.f32 %v7854_v32, %v3865_v61 }
 0x36c   :  { %v4319_v47 = vmax.f32 %v4255_v43, 0.0  ;;  %v3875_v60 = vpop.f32.mrb[83].mxu1  ;;  %v4318_v33 = vmax.f32 %v4254_v9, 0.0  ;;  %v4189_v15 = vmul.f32 %v4125_v37, %v9089_v53  ;;  %v4127_v11 = vadd.f32 %v5675_v16, %v7854_v32 }
 0x36d   :  { %v4465_v5 = vrot.slane %v4464_v26, 1  ;;  %v4470_v50 = vrot.slane %v4469_v10, 2  ;;  %v4475_v42 = vrot.slane %v4474_v7, 4  ;;  %v4188_v34 = vmul.f32 %v4124_v44, %v9090_v12 }
 0x36e   :  { %v4383_v59 = vmul.f32 %v4319_v47, %v9086_v48  ;;  %v4382_v14 = vmul.f32 %v4318_v33, %v9088_v45  ;;  %v4257_v25 = vadd.f32 %v7857_v27, %v4189_v15  ;;  %v4191_v41 = vmul.f32 %v4127_v11, %v9091_v19  ;;  %v9092_v45 = vld [vmem:[#allocation34_spill] sm:$0xff]  ;;  %v9093_v11 = vld [vmem:[#allocation40_spill] sm:$0xff] }
 0x36f   :  { %v4126_v61 = vadd.f32 %v7854_v32, %v3875_v60  ;;  %v5678_v40 = vpop.f32.mrb[84].mxu1  ;;  %v4471_v30 = vadd.f32 %v4470_v50, %v4469_v10  ;;  %v8175_v63 = vadd.f32 %v4475_v42, %v4474_v7  ;;  %v4256_v43 = vadd.f32 %v7857_v27, %v4188_v34 }
 0x370   :  { %v4129_v9 = vadd.f32 %v5678_v40, %v7854_v32  ;;  %v3885_v37 = vpop.f32.mrb[85].mxu1  ;;  %v4481_v48 = vadd.f32 %v4383_v59, %v4382_v14  ;;  %v4321_v16 = vmax.f32 %v4257_v25, 0.0  ;;  %v4259_v47 = vadd.f32 %v7857_v27, %v4191_v41  ;;  %v9094_v25 = vld [vmem:[#allocation38_spill] sm:$0xff] }
 0x371   :  { %v4190_v44 = vmul.f32 %v4126_v61, %v9092_v45  ;;  %v4320_v15 = vmax.f32 %v4256_v43, 0.0  ;;  %v4128_v10 = vadd.f32 %v7854_v32, %v3885_v37 }
 0x372   :  { %v4193_v60 = vmul.f32 %v4129_v9, %v9093_v11  ;;  %v4482_v7 = vrot.slane %v4481_v48, 4  ;;  %v4385_v50 = vmul.f32 %v4321_v16, %v9089_v53  ;;  %v4323_v42 = vmax.f32 %v4259_v47, 0.0 }
 0x373   :  { %v4258_v34 = vadd.f32 %v7857_v27, %v4190_v44  ;;  %v4384_v59 = vmul.f32 %v4320_v15, %v9090_v12  ;;  %v4192_v41 = vmul.f32 %v4128_v10, %v9094_v25 }
 0x374   :  { %v5681_v40 = vpop.f32.mrb[86].mxu1  ;;  %v4261_v14 = vadd.f32 %v7857_v27, %v4193_v60  ;;  %v8190_v33 = vadd.f32 %v4482_v7, %v4481_v48  ;;  %v4387_v9 = vmul.f32 %v4323_v42, %v9091_v19  ;;  %v9096_v60 = vld [vmem:[#allocation41_spill] sm:$0xff]  ;;  %v4472_v48 = vrot.slane %v4471_v30, 1 }
 0x375   :  { %v4131_v61 = vadd.f32 %v5681_v40, %v7854_v32  ;;  %v3895_v43 = vpop.f32.mrb[87].mxu1  ;;  %v4322_v37 = vmax.f32 %v4258_v34, 0.0  ;;  %v4488_v16 = vadd.f32 %v4385_v50, %v4384_v59  ;;  %v4260_v44 = vadd.f32 %v7857_v27, %v4192_v41 }
 0x376   :  { %v4130_v53 = vadd.f32 %v7854_v32, %v3895_v43  ;;  %v4325_v47 = vmax.f32 %v4261_v14, 0.0  ;;  %v8198_v40 = vadd.f32 %v4465_v5, %v4464_v26  ;;  %v8206_v5 = vadd.f32 %v4472_v48, %v4471_v30 }
 0x377   :  { %v4195_v12 = vmul.f32 %v4131_v61, %v9095_v1  ;;  %v4386_v15 = vmul.f32 %v4322_v37, %v9092_v45  ;;  %v4489_v7 = vrot.slane %v4488_v16, 4  ;;  %v4324_v42 = vmax.f32 %v4260_v44, 0.0  ;;  %v9098_v44 = vld [vmem:[#allocation44_spill] sm:$0xff] }
 0x378   :  { %v4194_v10 = vmul.f32 %v4130_v53, %v9096_v60  ;;  %v5684_v28 = vpop.f32.mrb[88].mxu1  ;;  %v4389_v19 = vmul.f32 %v4325_v47, %v9093_v11  ;;  %v9097_v11 = vld [vmem:[#allocation46_spill] sm:$0xff] }
 0x379   :  { %v4263_v34 = vadd.f32 %v7857_v27, %v4195_v12  ;;  %v3905_v50 = vpop.f32.mrb[89].mxu1  ;;  %v4495_v59 = vadd.f32 %v4387_v9, %v4386_v15  ;;  %v4133_v41 = vadd.f32 %v5684_v28, %v7854_v32  ;;  %v4490_v61 = vadd.f32 %v4489_v7, %v4488_v16 }
 0x37a   :  { %v4262_v14 = vadd.f32 %v7857_v27, %v4194_v10  ;;  %v4132_v45 = vadd.f32 %v7854_v32, %v3905_v50  ;;  %v4388_v43 = vmul.f32 %v4324_v42, %v9094_v25 }
 0x37b   :  { %v4327_v26 = vmax.f32 %v4263_v34, 0.0  ;;  %v4496_v37 = vrot.slane %v4495_v59, 4  ;;  %v4197_v47 = vmul.f32 %v4133_v41, %v9097_v11  ;;  %v4491_v9 = vrot.slane %v4490_v61, 2  ;;  %v9099_v34 = vld [vmem:[#allocation48_spill] sm:$0xff] }
 0x37c   :  { %v4326_v53 = vmax.f32 %v4262_v14, 0.0  ;;  %v4196_v12 = vmul.f32 %v4132_v45, %v9098_v44  ;;  %v5687_v17 = vpop.f32.mrb[90].mxu1  ;;  %v4502_v15 = vadd.f32 %v4389_v19, %v4388_v43 }
 0x37d   :  { %v4391_v10 = vmul.f32 %v4327_v26, %v9095_v1  ;;  %v4135_v28 = vadd.f32 %v5687_v17, %v7854_v32  ;;  %v3915_v50 = vpop.f32.mrb[91].mxu1  ;;  %v4497_v16 = vadd.f32 %v4496_v37, %v4495_v59  ;;  %v4265_v30 = vadd.f32 %v7857_v27, %v4197_v47 }
 0x37e   :  { %v4390_v25 = vmul.f32 %v4326_v53, %v9096_v60  ;;  %v4264_v48 = vadd.f32 %v7857_v27, %v4196_v12  ;;  %v4492_v7 = vadd.f32 %v4491_v9, %v4490_v61  ;;  %v4503_v42 = vrot.slane %v4502_v15, 4  ;;  %v9100_v60 = vld [vmem:[#allocation47_spill] sm:$0xff] }
 0x37f   :  { %v4199_v14 = vmul.f32 %v4135_v28, %v9099_v34  ;;  %v4134_v41 = vadd.f32 %v7854_v32, %v3915_v50  ;;  %v4498_v45 = vrot.slane %v4497_v16, 2  ;;  %v4329_v43 = vmax.f32 %v4265_v30, 0.0 }
 0x380   :  { %v4509_v19 = vadd.f32 %v4391_v10, %v4390_v25  ;;  %v4328_v1 = vmax.f32 %v4264_v48, 0.0  ;;  %v5690_v26 = vpop.f32.mrb[92].mxu1  ;;  %v4493_v17 = vrot.slane %v4492_v7, 1  ;;  %v4504_v35 = vadd.f32 %v4503_v42, %v4502_v15 }
 0x381   :  { %v4267_v59 = vadd.f32 %v7857_v27, %v4199_v14  ;;  %v4198_v37 = vmul.f32 %v4134_v41, %v9100_v60  ;;  %v3925_v53 = vpop.f32.mrb[93].mxu1  ;;  %v4499_v47 = vadd.f32 %v4498_v45, %v4497_v16  ;;  %v4393_v61 = vmul.f32 %v4329_v43, %v9097_v11 }
 0x382   :  { %v4510_v12 = vrot.slane %v4509_v19, 4  ;;  %v4392_v9 = vmul.f32 %v4328_v1, %v9098_v44  ;;  %v4494_v28 = vadd.f32 %v4493_v17, %v4492_v7  ;;  %v4505_v50 = vrot.slane %v4504_v35, 2  ;;  %v9101_v1 = vld [vmem:[#allocation52_spill] sm:$0xff] }
 0x383   :  { %v4331_v31 = vmax.f32 %v4267_v59, 0.0  ;;  %v4266_v10 = vadd.f32 %v7857_v27, %v4198_v37  ;;  %v4500_v25 = vrot.slane %v4499_v47, 1  ;;  %v4137_v15 = vadd.f32 %v5690_v26, %v7854_v32 }
 0x384   :  { %v4511_v30 = vadd.f32 %v4510_v12, %v4509_v19  ;;  %v4516_v48 = vadd.f32 %v4393_v61, %v4392_v9  ;;  %v5693_v42 = vpop.f32.mrb[94].mxu1  ;;  %v8224_v14 = vadd.f32 %v4494_v28, %v7925_v13  ;;  %v4506_v16 = vadd.f32 %v4505_v50, %v4504_v35  ;;  %v9103_v28 = vld [vmem:[#allocation50_spill] sm:$0xff] }
 0x385   :  { %v4395_v11 = vmul.f32 %v4331_v31, %v9099_v34  ;;  %v4330_v41 = vmax.f32 %v4266_v10, 0.0  ;;  %v3935_v44 = vpop.f32.mrb[95].mxu1  ;;  %v4501_v7 = vadd.f32 %v4500_v25, %v4499_v47  ;;  %v4201_v17 = vmul.f32 %v4137_v15, %v9101_v1 }
 0x386   :  { %v4512_v45 = vrot.slane %v4511_v30, 2  ;;  %v4517_v43 = vrot.slane %v4516_v48, 4  ;;  %v4507_v19 = vrot.slane %v4506_v16, 1  ;;  %v4136_v59 = vadd.f32 %v7854_v32, %v3925_v53 }
 0x387   :  { %v4394_v26 = vmul.f32 %v4330_v41, %v9100_v60  ;;  %v9102_v13 = vrot.slane %v8175_v63, 2  ;;  %v8234_v31 = vadd.f32 %v4501_v7, %v7934_v24  ;;  %v4269_v47 = vadd.f32 %v7857_v27, %v4201_v17 }
 0x388   :  { %v4513_v34 = vadd.f32 %v4512_v45, %v4511_v30  ;;  %v4518_v37 = vadd.f32 %v4517_v43, %v4516_v48  ;;  %v5696_v12 = vpop.f32.mrb[96].mxu1  ;;  %v4508_v61 = vadd.f32 %v4507_v19, %v4506_v16  ;;  %v4200_v60 = vmul.f32 %v4136_v59, %v9103_v28 }
 0x389   :  { %v4478_v35 = vadd.f32 %v9102_v13, %v8175_v63  ;;  %v4523_v9 = vadd.f32 %v4395_v11, %v4394_v26  ;;  %v3945_v53 = vpop.f32.mrb[97].mxu1  ;;  %v4333_v63 = vmax.f32 %v4269_v47, 0.0  ;;  %v4484_v15 = vrot.slane %v8190_v33, 2  ;;  %v9104_v26 = vld [vmem:[#allocation58_spill] sm:$0xff] }
 0x38a   :  { %v4514_v10 = vrot.slane %v4513_v34, 1  ;;  %v4519_v25 = vrot.slane %v4518_v37, 2  ;;  %v8240_v24 = vadd.f32 %v4508_v61, %v7936_v49  ;;  %v4268_v48 = vadd.f32 %v7857_v27, %v4200_v60 }
 0x38b   :  { %v4479_v50 = vrot.slane %v4478_v35, 1  ;;  %v4524_v30 = vrot.slane %v4523_v9, 4  ;;  %v4397_v7 = vmul.f32 %v4333_v63, %v9101_v1  ;;  %v4485_v45 = vadd.f32 %v4484_v15, %v8190_v33 }
 0x38c   :  { %v4515_v16 = vadd.f32 %v4514_v10, %v4513_v34  ;;  %v4520_v11 = vadd.f32 %v4519_v25, %v4518_v37  ;;  %v5699_v43 = vpop.f32.mrb[98].mxu1  ;;  %v4332_v19 = vmax.f32 %v4268_v48, 0.0  ;;  %v4659_v59 = vadd.f32 %v8162_v21, %v9104_v26 }
 0x38d   :  { %v4480_v41 = vadd.f32 %v4479_v50, %v4478_v35  ;;  %v4525_v17 = vadd.f32 %v4524_v30, %v4523_v9  ;;  %v4660_v49 = vadd.f32 %v8198_v40, %v7913_v18  ;;  %v3955_v13 = vpop.f32.mrb[99].mxu1  ;;  %v4486_v34 = vrot.slane %v4485_v45, 1  ;;  %v9106_v30 = vld [vmem:[#allocation53_spill] sm:$0xff] }
 0x38e   :  { %v8250_v47 = vadd.f32 %v4515_v16, %v7940_v6  ;;  %v4521_v35 = vrot.slane %v4520_v11, 1  ;;  %v4661_v1 = vadd.f32 %v8206_v5, %v7918_v2  ;;  %v4396_v33 = vmul.f32 %v4332_v19, %v9103_v28 }
 0x38f   :  { %v4526_v37 = vrot.slane %v4525_v17, 2  ;;  %v4662_v61 = vadd.f32 %v4480_v41, %v8028_v46  ;;  %v4744_v21 = vsel %vm4743_vm0, %v8144_v0, %v8134_v29  ;;  %v4487_v18 = vadd.f32 %v4486_v34, %v4485_v45  ;;  %v9105_v0 = vld [vmem:[#allocation55_spill] sm:$0xff] }
 0x390   :  { %v8259_v9 = vadd.f32 %v4521_v35, %v4520_v11  ;;  %v4746_v6 = vsel %vm4745_vm1, %v8156_v55, %v4744_v21  ;;  %v4139_v40 = vadd.f32 %v5693_v42, %v7854_v32  ;;  %v5702_v60 = vpop.f32.mrb[100].mxu1  ;;  %v4530_v2 = vadd.f32 %v4397_v7, %v4396_v33 }
 0x391   :  { %v4527_v50 = vadd.f32 %v4526_v37, %v4525_v17  ;;  %v4748_v5 = vsel %vm4747_vm2, %v4659_v59, %v4746_v6  ;;  %v4138_v28 = vadd.f32 %v7854_v32, %v3935_v44  ;;  %v3965_v46 = vpop.f32.mrb[101].mxu1  ;;  %v4663_v10 = vadd.f32 %v4487_v18, %v8041_v3  ;;  %v9107_v44 = vld [vmem:[#allocation59_spill] sm:$0xff]  ;;  %v9108_v59 = vld [vmem:[#allocation57_spill] sm:$0xff] }
 0x392   :  { %v4750_v29 = vsel %vm4749_vm3, %v4660_v49, %v4748_v5  ;;  %v4203_v25 = vmul.f32 %v4139_v40, %v9105_v0  ;;  %v4141_v63 = vadd.f32 %v5696_v12, %v7854_v32  ;;  %v4531_v55 = vrot.slane %v4530_v2, 4  ;;  %v9109_v40 = vld [vmem:[#allocation63_spill] sm:$0xff] }
 0x393   :  { %v4528_v15 = vrot.slane %v4527_v50, 1  ;;  %v4752_v42 = vsel %vm4751_vm4, %v4661_v1, %v4750_v29  ;;  %v4202_v48 = vmul.f32 %v4138_v28, %v9106_v30  ;;  %v4140_v3 = vadd.f32 %v7854_v32, %v3945_v53 }
 0x394   :  { %v4754_v41 = vsel %vm4753_vm5, %v4662_v61, %v4752_v42  ;;  %v4271_v16 = vadd.f32 %v7857_v27, %v4203_v25  ;;  %v4205_v11 = vmul.f32 %v4141_v63, %v9107_v44  ;;  %v4532_v45 = vadd.f32 %v4531_v55, %v4530_v2 }
 0x395   :  { %v8276_v7 = vadd.f32 %v4528_v15, %v4527_v50  ;;  %v4756_v17 = vsel %vm4755_vm6, %v4663_v10, %v4754_v41  ;;  %v4270_v12 = vadd.f32 %v7857_v27, %v4202_v48  ;;  %v4204_v49 = vmul.f32 %v4140_v3, %v9108_v59  ;;  %v5705_v34 = vpop.f32.mrb[102].mxu1  ;;  %v9111_v10 = vld [vmem:[#allocation67_spill] sm:$0xff] }
 0x396   :  { %5774 = vmatprep.mubr.f32.mxu0 %v4756_v17  ;;  %v4335_v19 = vmax.f32 %v4271_v16, 0.0  ;;  %v4273_v26 = vadd.f32 %v7857_v27, %v4205_v11  ;;  %v4143_v35 = vadd.f32 %v5699_v43, %v7854_v32  ;;  %v4533_v1 = vrot.slane %v4532_v45, 2  ;;  %v3975_v61 = vpop.f32.mrb[103].mxu1  ;;  %v9110_v43 = vld [vmem:[#allocation61_spill] sm:$0xff] }
 0x397   :  { %v4334_v37 = vmax.f32 %v4270_v12, 0.0  ;;  %v4142_v53 = vadd.f32 %v7854_v32, %v3955_v13  ;;  %v4145_v33 = vadd.f32 %v5702_v60, %v7854_v32  ;;  %v4272_v6 = vadd.f32 %v7857_v27, %v4204_v49  ;;  %v9112_v11 = vld [vmem:[#allocation65_spill] sm:$0xff] }
 0x398   :  { %v4399_v21 = vmul.f32 %v4335_v19, %v9105_v0  ;;  %v4337_v18 = vmax.f32 %v4273_v26, 0.0  ;;  %v4207_v50 = vmul.f32 %v4143_v35, %v9109_v40  ;;  %v8288_v2 = vadd.f32 %v4533_v1, %v4532_v45  ;;  %v9113_v35 = vld [vmem:[#allocation71_spill] sm:$0xff] }
 0x399   :  { %v4398_v5 = vmul.f32 %v4334_v37, %v9106_v30  ;;  %v4206_v28 = vmul.f32 %v4142_v53, %v9110_v43  ;;  %v4209_v29 = vmul.f32 %v4145_v33, %v9111_v10  ;;  %v4336_v25 = vmax.f32 %v4272_v6, 0.0  ;;  %v5708_v63 = vpop.f32.mrb[104].mxu1 }
 0x39a   :  { %v4401_v13 = vmul.f32 %v4337_v18, %v9107_v44  ;;  %v4275_v60 = vadd.f32 %v7857_v27, %v4207_v50  ;;  %v4144_v0 = vadd.f32 %v7854_v32, %v3965_v46  ;;  %v4535_v15 = vrot.slane %v8288_v2, 1  ;;  %v3985_v30 = vpop.f32.mrb[105].mxu1 }
 0x39b   :  { %v4537_v55 = vadd.f32 %v4399_v21, %v4398_v5  ;;  %v4274_v42 = vadd.f32 %v7857_v27, %v4206_v28  ;;  %v4277_v48 = vadd.f32 %v7857_v27, %v4209_v29  ;;  %v4400_v41 = vmul.f32 %v4336_v25, %v9108_v59  ;;  %v9114_v21 = vld [vmem:[#allocation69_spill] sm:$0xff] }
 0x39c   :  { %v4339_v16 = vmax.f32 %v4275_v60, 0.0  ;;  %v4208_v3 = vmul.f32 %v4144_v0, %v9112_v11  ;;  %v4147_v44 = vadd.f32 %v5705_v34, %v7854_v32  ;;  %v4146_v46 = vadd.f32 %v7854_v32, %v3975_v61 }
 0x39d   :  { %v4538_v45 = vrot.slane %v4537_v55, 4  ;;  %v4338_v17 = vmax.f32 %v4274_v42, 0.0  ;;  %v4341_v12 = vmax.f32 %v4277_v48, 0.0  ;;  %v4544_v19 = vadd.f32 %v4401_v13, %v4400_v41  ;;  %v5711_v37 = vpop.f32.mrb[106].mxu1 }
 0x39e   :  { %v4403_v26 = vmul.f32 %v4339_v16, %v9109_v40  ;;  %v4276_v49 = vadd.f32 %v7857_v27, %v4208_v3  ;;  %v4211_v1 = vmul.f32 %v4147_v44, %v9113_v35  ;;  %v4210_v34 = vmul.f32 %v4146_v46, %v9114_v21  ;;  %v3995_v18 = vpop.f32.mrb[107].mxu1  ;;  %v9116_v16 = vld [vmem:[#allocation73_spill] sm:$0xff] }
 0x39f   :  { %v4539_v53 = vadd.f32 %v4538_v45, %v4537_v55  ;;  %v4402_v59 = vmul.f32 %v4338_v17, %v9110_v43  ;;  %v4405_v33 = vmul.f32 %v4341_v12, %v9111_v10  ;;  %v4545_v6 = vrot.slane %v4544_v19, 4  ;;  %v9115_v10 = vld [vmem:[#allocation75_spill] sm:$0xff] }
 0x3a0   :  { %v4340_v50 = vmax.f32 %v4276_v49, 0.0  ;;  %v4279_v61 = vadd.f32 %v7857_v27, %v4211_v1  ;;  %v4149_v5 = vadd.f32 %v5708_v63, %v7854_v32  ;;  %v4278_v29 = vadd.f32 %v7857_v27, %v4210_v34 }
 0x3a1   :  { %v4540_v40 = vrot.slane %v4539_v53, 2  ;;  %v4551_v28 = vadd.f32 %v4403_v26, %v4402_v59  ;;  %v4148_v13 = vadd.f32 %v7854_v32, %v3985_v30  ;;  %v4546_v25 = vadd.f32 %v4545_v6, %v4544_v19  ;;  %v5714_v55 = vpop.f32.mrb[108].mxu1 }
 0x3a2   :  { %v4404_v43 = vmul.f32 %v4340_v50, %v9112_v11  ;;  %v4343_v60 = vmax.f32 %v4279_v61, 0.0  ;;  %v4213_v0 = vmul.f32 %v4149_v5, %v9115_v10  ;;  %v4342_v41 = vmax.f32 %v4278_v29, 0.0  ;;  %v4005_v63 = vpop.f32.mrb[109].mxu1 }
 0x3a3   :  { %v8315_v42 = vadd.f32 %v4540_v40, %v4539_v53  ;;  %v4552_v48 = vrot.slane %v4551_v28, 4  ;;  %v4212_v3 = vmul.f32 %v4148_v13, %v9116_v16  ;;  %v4547_v44 = vrot.slane %v4546_v25, 2  ;;  %v9118_v40 = vld [vmem:[#allocation77_spill] sm:$0xff] }
 0x3a4   :  { %v4558_v45 = vadd.f32 %v4405_v33, %v4404_v43  ;;  %v4407_v17 = vmul.f32 %v4343_v60, %v9113_v35  ;;  %v4281_v30 = vadd.f32 %v7857_v27, %v4213_v0  ;;  %v4406_v11 = vmul.f32 %v4342_v41, %v9114_v21  ;;  %v9117_v33 = vld [vmem:[#allocation79_spill] sm:$0xff] }
 0x3a5   :  { %v4553_v12 = vadd.f32 %v4552_v48, %v4551_v28  ;;  %v4280_v46 = vadd.f32 %v7857_v27, %v4212_v3  ;;  %v4151_v19 = vadd.f32 %v5711_v37, %v7854_v32  ;;  %v4548_v26 = vadd.f32 %v4547_v44, %v4546_v25 }
 0x3a6   :  { %v4559_v49 = vrot.slane %v4558_v45, 4  ;;  %v4345_v1 = vmax.f32 %v4281_v30, 0.0  ;;  %v4150_v53 = vadd.f32 %v7854_v32, %v3995_v18  ;;  %v4565_v34 = vadd.f32 %v4407_v17, %v4406_v11  ;;  %v8325_v35 = vpop.f32.mrb[110].mxu1  ;;  %v9119_v11 = vld [vmem:[#allocation83_spill] sm:$0xff] }
 0x3a7   :  { %v4554_v59 = vrot.slane %v4553_v12, 2  ;;  %v4344_v6 = vmax.f32 %v4280_v46, 0.0  ;;  %v4215_v50 = vmul.f32 %v4151_v19, %v9117_v33  ;;  %v4549_v61 = vrot.slane %v4548_v26, 1  ;;  %v8329_v29 = vpop.f32.mrb[111].mxu1 }
 0x3a8   :  { %v4560_v5 = vadd.f32 %v4559_v49, %v4558_v45  ;;  %v4409_v21 = vmul.f32 %v4345_v1, %v9115_v10  ;;  %v4214_v28 = vmul.f32 %v4150_v53, %v9118_v40  ;;  %v4566_v13 = vrot.slane %v4565_v34, 4 }
 0x3a9   :  { %v4555_v37 = vadd.f32 %v4554_v59, %v4553_v12  ;;  %v4408_v25 = vmul.f32 %v4344_v6, %v9116_v16  ;;  %v4283_v18 = vadd.f32 %v7857_v27, %v4215_v50  ;;  %v4550_v43 = vadd.f32 %v4549_v61, %v4548_v26 }
 0x3aa   :  { %v4561_v60 = vrot.slane %v4560_v5, 2  ;;  %v4282_v0 = vadd.f32 %v7857_v27, %v4214_v28  ;;  %v4153_v48 = vadd.f32 %v5714_v55, %v7854_v32  ;;  %v4567_v3 = vadd.f32 %v4566_v13, %v4565_v34  ;;  %v5720_v45 = vpop.f32.mrb[112].mxu1 }
 0x3ab   :  { %v4556_v41 = vrot.slane %v4555_v37, 1  ;;  %v4572_v44 = vadd.f32 %v4409_v21, %v4408_v25  ;;  %v4347_v10 = vmax.f32 %v4283_v18, 0.0  ;;  %v8336_v17 = vadd.f32 %v4550_v43, %v7978_v62  ;;  %v4025_v46 = vpop.f32.mrb[113].mxu1 }
 0x3ac   :  { %v4562_v30 = vadd.f32 %v4561_v60, %v4560_v5  ;;  %v4346_v12 = vmax.f32 %v4282_v0, 0.0  ;;  %v4217_v16 = vmul.f32 %v4153_v48, %v9119_v11  ;;  %v4568_v26 = vrot.slane %v4567_v3, 2 }
 0x3ad   :  { %v4557_v19 = vadd.f32 %v4556_v41, %v4555_v37  ;;  %v4573_v49 = vrot.slane %v4572_v44, 4  ;;  %v4411_v1 = vmul.f32 %v4347_v10, %v9117_v33  ;;  %v4152_v34 = vadd.f32 %v7854_v32, %v4005_v63  ;;  %v9120_v37 = vld [vmem:[#allocation81_spill] sm:$0xff] }
 0x3ae   :  { %v4563_v53 = vrot.slane %v4562_v30, 1  ;;  %v4410_v55 = vmul.f32 %v4346_v12, %v9118_v40  ;;  %v4285_v59 = vadd.f32 %v7857_v27, %v4217_v16  ;;  %v4569_v6 = vadd.f32 %v4568_v26, %v4567_v3  ;;  %v5723_v5 = vpop.f32.mrb[114].mxu1 }
 0x3af   :  { %v8344_v62 = vadd.f32 %v4557_v19, %v7980_v58  ;;  %v4574_v50 = vadd.f32 %v4573_v49, %v4572_v44  ;;  %v4536_v61 = vadd.f32 %v4535_v15, %v8288_v2  ;;  %v4216_v13 = vmul.f32 %v4152_v34, %v9120_v37  ;;  %v4035_v40 = vpop.f32.mrb[115].mxu1  ;;  %v9121_v19 = vld [vmem:[#allocation87_spill] sm:$0xff] }
 0x3b0   :  { %v4564_v21 = vadd.f32 %v4563_v53, %v4562_v30  ;;  %v4579_v28 = vadd.f32 %v4411_v1, %v4410_v55  ;;  %v4349_v33 = vmax.f32 %v4285_v59, 0.0  ;;  %v4570_v25 = vrot.slane %v4569_v6, 1  ;;  %v9122_v55 = vld [vmem:[#allocation85_spill] sm:$0xff] }
 0x3b1   :  { %v4575_v18 = vrot.slane %v4574_v50, 2  ;;  %v4542_v63 = vrot.slane %v8315_v42, 1  ;;  %v4668_v58 = vadd.f32 %v8259_v9, %v7943_v51  ;;  %v4284_v15 = vadd.f32 %v7857_v27, %v4216_v13 }
 0x3b2   :  { %v8354_v43 = vadd.f32 %v4564_v21, %v8035_v4  ;;  %v4580_v60 = vrot.slane %v4579_v28, 4  ;;  %v4413_v2 = vmul.f32 %v4349_v33, %v9119_v11  ;;  %v8358_v0 = vadd.f32 %v4570_v25, %v4569_v6  ;;  %v5726_v44 = vpop.f32.mrb[116].mxu1  ;;  %v9123_v6 = vld [vmem:[#allocation91_spill] sm:$0xff] }
 0x3b3   :  { %v8360_v48 = vadd.f32 %v4575_v18, %v4574_v50  ;;  %v4543_v41 = vadd.f32 %v4542_v63, %v8315_v42  ;;  %v4669_v3 = vadd.f32 %v8276_v7, %v7947_v20  ;;  %v4348_v51 = vmax.f32 %v4284_v15, 0.0  ;;  %v4045_v30 = vpop.f32.mrb[117].mxu1 }
 0x3b4   :  { %v4581_v10 = vadd.f32 %v4580_v60, %v4579_v28  ;;  %v4670_v4 = vadd.f32 %v4536_v61, %v8010_v38  ;;  %v4757_v9 = vsel %vm4743_vm0, %v8234_v31, %v8224_v14  ;;  %v4155_v20 = vadd.f32 %v8325_v35, %v7854_v32  ;;  %v9124_v61 = vld [vmem:[#allocation89_spill] sm:$0xff] }
 0x3b5   :  { %v4577_v12 = vrot.slane %v8360_v48, 1  ;;  %v4671_v11 = vadd.f32 %v4543_v41, %v8031_v8  ;;  %v4758_v42 = vsel %vm4745_vm1, %v8240_v24, %v4757_v9  ;;  %v4412_v16 = vmul.f32 %v4348_v51, %v9120_v37 }
 0x3b6   :  { %v4582_v7 = vrot.slane %v4581_v10, 2  ;;  %v4759_v38 = vsel %vm4747_vm2, %v8250_v47, %v4758_v42  ;;  %v4154_v14 = vadd.f32 %v7854_v32, %v8329_v29  ;;  %v4219_v26 = vmul.f32 %v4155_v20, %v9121_v19  ;;  %v5729_v49 = vpop.f32.mrb[118].mxu1 }
 0x3b7   :  { %v4760_v31 = vsel %vm4749_vm3, %v4668_v58, %v4759_v38  ;;  %v4157_v8 = vadd.f32 %v5720_v45, %v7854_v32  ;;  %v4156_v24 = vadd.f32 %v7854_v32, %v4025_v46  ;;  %v4586_v35 = vadd.f32 %v4413_v2, %v4412_v16  ;;  %v4055_v47 = vpop.f32.mrb[119].mxu1  ;;  %v9125_v2 = vld [vmem:[#allocation95_spill] sm:$0xff] }
 0x3b8   :  { %v8384_v1 = vadd.f32 %v4582_v7, %v4581_v10  ;;  %v4761_v53 = vsel %vm4751_vm4, %v4669_v3, %v4760_v31  ;;  %v4218_v59 = vmul.f32 %v4154_v14, %v9122_v55  ;;  %v4287_v29 = vadd.f32 %v7857_v27, %v4219_v26 }
 0x3b9   :  { %v4762_v34 = vsel %vm4753_vm5, %v4670_v4, %v4761_v53  ;;  %v4221_v50 = vmul.f32 %v4157_v8, %v9123_v6  ;;  %v4220_v21 = vmul.f32 %v4156_v24, %v9124_v61  ;;  %v4587_v45 = vrot.slane %v4586_v35, 4  ;;  %v9126_v4 = vld [vmem:[#allocation93_spill] sm:$0xff] }
 0x3ba   :  { %v4763_v46 = vsel %vm4755_vm6, %v4671_v11, %v4762_v34  ;;  %v4286_v28 = vadd.f32 %v7857_v27, %v4218_v59  ;;  %v4159_v33 = vadd.f32 %v5723_v5, %v7854_v32  ;;  %v4351_v37 = vmax.f32 %v4287_v29, 0.0  ;;  %v5732_v63 = vpop.f32.mrb[120].mxu1 }
 0x3bb   :  { %5775 = vmatmul.mubr.f32.vlgmr.msra.gmra.mrb[128].mxu0 %v4763_v46  ;;  %v4289_v13 = vadd.f32 %v7857_v27, %v4221_v50  ;;  %v4288_v25 = vadd.f32 %v7857_v27, %v4220_v21  ;;  %v4158_v18 = vadd.f32 %v7854_v32, %v4035_v40  ;;  %v8398_v58 = vadd.f32 %v4587_v45, %v4586_v35  ;;  %v4065_v3 = vpop.f32.mrb[121].mxu1  ;;  %v9127_v45 = vld [vmem:[#allocation101_spill] sm:$0xff] }
 0x3bc   :  { %v4350_v60 = vmax.f32 %v4286_v28, 0.0  ;;  %v4223_v15 = vmul.f32 %v4159_v33, %v9125_v2  ;;  %v4161_v41 = vadd.f32 %v5726_v44, %v7854_v32  ;;  %v4415_v10 = vmul.f32 %v4351_v37, %v9121_v19 }
 0x3bd   :  { %v4353_v5 = vmax.f32 %v4289_v13, 0.0  ;;  %v4352_v51 = vmax.f32 %v4288_v25, 0.0  ;;  %v4222_v9 = vmul.f32 %v4158_v18, %v9126_v4  ;;  %v4589_v11 = vrot.slane %v8398_v58, 2 }
 0x3be   :  { %v4414_v42 = vmul.f32 %v4350_v60, %v9122_v55  ;;  %v4291_v40 = vadd.f32 %v7857_v27, %v4223_v15  ;;  %v4225_v20 = vmul.f32 %v4161_v41, %v8982_v23  ;;  %v4160_v38 = vadd.f32 %v7854_v32, %v4045_v30  ;;  %v5735_v14 = vpop.f32.mrb[122].mxu1  ;;  %v9128_v41 = vld [vmem:[#allocation107_spill] sm:$0xff] }
 0x3bf   :  { %v4417_v7 = vmul.f32 %v4353_v5, %v9123_v6  ;;  %v4416_v16 = vmul.f32 %v4352_v51, %v9124_v61  ;;  %v4290_v44 = vadd.f32 %v7857_v27, %v4222_v9  ;;  %v4163_v8 = vadd.f32 %v5729_v49, %v7854_v32  ;;  %v4075_v24 = vpop.f32.mrb[123].mxu1 }
 0x3c0   :  { %v4593_v31 = vadd.f32 %v4415_v10, %v4414_v42  ;;  %v4355_v19 = vmax.f32 %v4291_v40, 0.0  ;;  %v4293_v26 = vadd.f32 %v7857_v27, %v4225_v20  ;;  %v4224_v55 = vmul.f32 %v4160_v38, %v8980_v56 }
 0x3c1   :  { %v4600_v35 = vadd.f32 %v4417_v7, %v4416_v16  ;;  %v4354_v53 = vmax.f32 %v4290_v44, 0.0  ;;  %v4162_v59 = vadd.f32 %v7854_v32, %v4055_v47  ;;  %v4227_v30 = vmul.f32 %v4163_v8, %v8985_v36  ;;  %v9129_v7 = vld [vmem:[#allocation105_spill] sm:$0xff] }
 0x3c2   :  { %v4594_v34 = vrot.slane %v4593_v31, 4  ;;  %v4419_v29 = vmul.f32 %v4355_v19, %v9125_v2  ;;  %v4357_v6 = vmax.f32 %v4293_v26, 0.0  ;;  %v4292_v21 = vadd.f32 %v7857_v27, %v4224_v55  ;;  %v5738_v46 = vpop.f32.mrb[124].mxu1 }
 0x3c3   :  { %v4601_v50 = vrot.slane %v4600_v35, 4  ;;  %v4418_v61 = vmul.f32 %v4354_v53, %v9126_v4  ;;  %v4226_v49 = vmul.f32 %v4162_v59, %v9127_v45  ;;  %v4295_v47 = vadd.f32 %v7857_v27, %v4227_v30  ;;  %v4085_v13 = vpop.f32.mrb[125].mxu1 }
 0x3c4   :  { %v8421_v28 = vadd.f32 %v4594_v34, %v4593_v31  ;;  %v4421_v33 = vmul.f32 %v4357_v6, %v8982_v23  ;;  %v4165_v37 = vadd.f32 %v5732_v63, %v7854_v32  ;;  %v4356_v60 = vmax.f32 %v4292_v21, 0.0 }
 0x3c5   :  { %v4602_v25 = vadd.f32 %v4601_v50, %v4600_v35  ;;  %v4607_v18 = vadd.f32 %v4419_v29, %v4418_v61  ;;  %v4294_v2 = vadd.f32 %v7857_v27, %v4226_v49  ;;  %v4359_v15 = vmax.f32 %v4295_v47, 0.0 }
 0x3c6   :  { %v4229_v10 = vmul.f32 %v4165_v37, %v9128_v41  ;;  %v4164_v5 = vadd.f32 %v7854_v32, %v4065_v3  ;;  %v4167_v51 = vadd.f32 %v5735_v14, %v7854_v32  ;;  %v4420_v23 = vmul.f32 %v4356_v60, %v8980_v56  ;;  %v8431_v40 = vpop.f32.mrb[126].mxu1 }
 0x3c7   :  { %v4603_v4 = vrot.slane %v4602_v25, 2  ;;  %v4608_v9 = vrot.slane %v4607_v18, 4  ;;  %v4358_v42 = vmax.f32 %v4294_v2, 0.0  ;;  %v4423_v63 = vmul.f32 %v4359_v15, %v8985_v36  ;;  %v8437_v38 = vpop.f32.mrb[127].mxu1 }
 0x3c8   :  { %v4297_v20 = vadd.f32 %v7857_v27, %v4229_v10  ;;  %v4228_v16 = vmul.f32 %v4164_v5, %v9129_v7  ;;  %v4231_v44 = vmul.f32 %v4167_v51, %v8993_v57  ;;  %v4614_v14 = vadd.f32 %v4421_v33, %v4420_v23 }
 0x3c9   :  { %v4604_v3 = vadd.f32 %v4603_v4, %v4602_v25  ;;  %v4609_v31 = vadd.f32 %v4608_v9, %v4607_v18  ;;  %v4422_v19 = vmul.f32 %v4358_v42, %v9127_v45  ;;  %v4166_v36 = vadd.f32 %v7854_v32, %v4075_v24  ;;  %v9130_v42 = vld [vmem:[#allocation72_spill] sm:$0xff] }
 0x3ca   :  { %v4361_v26 = vmax.f32 %v4297_v20, 0.0  ;;  %v4296_v56 = vadd.f32 %v7857_v27, %v4228_v16  ;;  %v4299_v8 = vadd.f32 %v7857_v27, %v4231_v44  ;;  %v4615_v55 = vrot.slane %v4614_v14, 4 }
 0x3cb   :  { %v4605_v35 = vrot.slane %v4604_v3, 1  ;;  %v4610_v53 = vrot.slane %v4609_v31, 2  ;;  %v4621_v59 = vadd.f32 %v4423_v63, %v4422_v19  ;;  %v4230_v30 = vmul.f32 %v4166_v36, %v8991_v52  ;;  %v9131_v36 = vld [vmem:[#allocation74_spill] sm:$0xff] }
 0x3cc   :  { %v4425_v34 = vmul.f32 %v4361_v26, %v9128_v41  ;;  %v4360_v29 = vmax.f32 %v4296_v56, 0.0  ;;  %v4363_v6 = vmax.f32 %v4299_v8, 0.0  ;;  %v4616_v21 = vadd.f32 %v4615_v55, %v4614_v14 }
 0x3cd   :  { %v4606_v50 = vadd.f32 %v4605_v35, %v4604_v3  ;;  %v4611_v61 = vadd.f32 %v4610_v53, %v4609_v31  ;;  %v4622_v45 = vrot.slane %v4621_v59, 4  ;;  %v4298_v24 = vadd.f32 %v7857_v27, %v4230_v30 }
 0x3ce   :  { %v4424_v49 = vmul.f32 %v4360_v29, %v9129_v7  ;;  %v4427_v33 = vmul.f32 %v4363_v6, %v8993_v57  ;;  %v4169_v47 = vadd.f32 %v5738_v46, %v7854_v32  ;;  %v4617_v18 = vrot.slane %v4616_v21, 2 }
 0x3cf   :  { %v8450_v37 = vadd.f32 %v4606_v50, %v8085_v54  ;;  %v4612_v25 = vrot.slane %v4611_v61, 1  ;;  %v4623_v60 = vadd.f32 %v4622_v45, %v4621_v59  ;;  %v4362_v15 = vmax.f32 %v4298_v24, 0.0  ;;  %v9133_v50 = vld [vmem:[#allocation76_spill] sm:$0xff] }
 0x3d0   :  { %v4628_v2 = vadd.f32 %v4425_v34, %v4424_v49  ;;  %v4233_v41 = vmul.f32 %v4169_v47, %v9039_v22  ;;  %v4168_v10 = vadd.f32 %v7854_v32, %v4085_v13  ;;  %v4618_v51 = vadd.f32 %v4617_v18, %v4616_v21  ;;  %v9135_v24 = vld [vmem:[#allocation64_spill] sm:$0xff]  ;;  %v9136_v18 = vld [vmem:[#allocation66_spill] sm:$0xff] }
 0x3d1   :  { %v4613_v5 = vadd.f32 %v4612_v25, %v4611_v61  ;;  %v4624_v4 = vrot.slane %v4623_v60, 2  ;;  %v4578_v57 = vadd.f32 %v4577_v12, %v8360_v48  ;;  %v4426_v54 = vmul.f32 %v4362_v15, %v8991_v52 }
 0x3d2   :  { %v4629_v46 = vrot.slane %v4628_v2, 4  ;;  %v4301_v9 = vadd.f32 %v7857_v27, %v4233_v41  ;;  %v4232_v23 = vmul.f32 %v4168_v10, %v8994_v39  ;;  %v4619_v20 = vrot.slane %v4618_v51, 1 }
 0x3d3   :  { %v4681_v63 = vadd.f32 %v4613_v5, %v9130_v42  ;;  %v4625_v7 = vadd.f32 %v4624_v4, %v4623_v60  ;;  %v4584_v13 = vrot.slane %v8384_v1, 1  ;;  %v4635_v44 = vadd.f32 %v4427_v33, %v4426_v54 }
 0x3d4   :  { %v4630_v16 = vadd.f32 %v4629_v46, %v4628_v2  ;;  %v4365_v3 = vmax.f32 %v4301_v9, 0.0  ;;  %v4300_v31 = vadd.f32 %v7857_v27, %v4232_v23  ;;  %v4620_v14 = vadd.f32 %v4619_v20, %v4618_v51  ;;  %v9137_v51 = vld [vmem:[#allocation115_spill] sm:$0xff]  ;;  %v9139_v9 = vld [vmem:[#allocation68_spill] sm:$0xff] }
 0x3d5   :  { %v4626_v48 = vrot.slane %v4625_v7, 1  ;;  %v4585_v12 = vadd.f32 %v4584_v13, %v8384_v1  ;;  %v4590_v52 = vadd.f32 %v4589_v11, %v8398_v58  ;;  %v4636_v26 = vrot.slane %v4635_v44, 4  ;;  %v9132_v1 = vld [vmem:[#allocation60_spill] sm:$0xff] }
 0x3d6   :  { %v4631_v19 = vrot.slane %v4630_v16, 2  ;;  %v4429_v56 = vmul.f32 %v4365_v3, %v9039_v22  ;;  %v4364_v8 = vmax.f32 %v4300_v31, 0.0  ;;  %v4682_v35 = vadd.f32 %v4620_v14, %v9131_v36  ;;  %v9134_v22 = vld [vmem:[#allocation62_spill] sm:$0xff]  ;;  %v9140_v20 = vld [vmem:[#allocation116_spill] sm:$0xff] }
 0x3d7   :  { %v4627_v53 = vadd.f32 %v4626_v48, %v4625_v7  ;;  %v4591_v55 = vrot.slane %v4590_v52, 1  ;;  %v4596_v59 = vrot.slane %v8421_v28, 2  ;;  %v4637_v29 = vadd.f32 %v4636_v26, %v4635_v44  ;;  %v9141_v48 = vld [vmem:[#allocation82_spill] sm:$0xff] }
 0x3d8   :  { %v4632_v34 = vadd.f32 %v4631_v19, %v4630_v16  ;;  %v4428_v6 = vmul.f32 %v4364_v8, %v8994_v39  ;;  %v4675_v30 = vadd.f32 %v8358_v0, %v9132_v1  ;;  %v4676_v21 = vadd.f32 %v4578_v57, %v9134_v22  ;;  %v9142_v19 = vld [vmem:[#allocation80_spill] sm:$0xff]  ;;  %v9143_v8 = vld [vmem:[#allocation70_spill] sm:$0xff] }
 0x3d9   :  { %v4683_v58 = vadd.f32 %v4627_v53, %v9133_v50  ;;  %v4592_v11 = vadd.f32 %v4591_v55, %v4590_v52  ;;  %v4597_v61 = vadd.f32 %v4596_v59, %v8421_v28  ;;  %v4638_v49 = vrot.slane %v4637_v29, 2 }
 0x3da   :  { %v4633_v45 = vrot.slane %v4632_v34, 1  ;;  %v4642_v33 = vadd.f32 %v4429_v56, %v4428_v6  ;;  %v4677_v47 = vadd.f32 %v4585_v12, %v9135_v24  ;;  %v4764_v39 = vsel %vm4743_vm0, %v8344_v62, %v8336_v17  ;;  %v9138_v62 = vld [vmem:[#allocation78_spill] sm:$0xff] }
 0x3db   :  { %v4598_v25 = vrot.slane %v4597_v61, 1  ;;  %v4678_v60 = vadd.f32 %v4592_v11, %v9136_v18  ;;  %v4171_v0 = vadd.f32 %v8431_v40, %v7854_v32  ;;  %v4639_v15 = vadd.f32 %v4638_v49, %v4637_v29  ;;  %v4889_v18 = vld [vmem:[%s8537_s5] ss:$0 sm:$0xff] }
 0x3dc   :  { %v4634_v2 = vadd.f32 %v4633_v45, %v4632_v34  ;;  %v4643_v28 = vrot.slane %v4642_v33, 4  ;;  %v4765_v41 = vsel %vm4745_vm1, %v8354_v43, %v4764_v39  ;;  %v4170_v57 = vadd.f32 %v7854_v32, %v8437_v38 }
 0x3dd   :  { %v4599_v10 = vadd.f32 %v4598_v25, %v4597_v61  ;;  %v4766_v5 = vsel %vm4747_vm2, %v4675_v30, %v4765_v41  ;;  %v4235_v4 = vmul.f32 %v4171_v0, %v9137_v51  ;;  %v4640_v46 = vrot.slane %v4639_v15, 1 }
 0x3de   :  { %v4644_v54 = vadd.f32 %v4643_v28, %v4642_v33  ;;  %v4767_v17 = vsel %vm4749_vm3, %v4676_v21, %v4766_v5  ;;  %v4684_v40 = vadd.f32 %v4634_v2, %v9138_v62  ;;  %v4234_v7 = vmul.f32 %v4170_v57, %v9140_v20 }
 0x3df   :  { %v4679_v23 = vadd.f32 %v4599_v10, %v9139_v9  ;;  %v4768_v42 = vsel %vm4751_vm4, %v4677_v47, %v4767_v17  ;;  %v4303_v43 = vadd.f32 %v7857_v27, %v4235_v4  ;;  %v4641_v13 = vadd.f32 %v4640_v46, %v4639_v15 }
 0x3e0   :  { %v4645_v16 = vrot.slane %v4644_v54, 2  ;;  %v4769_v44 = vsel %vm4753_vm5, %v4678_v60, %v4768_v42  ;;  %v4771_v32 = vsel %vm4743_vm0, %v4681_v63, %v8450_v37  ;;  %v4302_v31 = vadd.f32 %v7857_v27, %v4234_v7 }
 0x3e1   :  { %v4770_v38 = vsel %vm4755_vm6, %v4679_v23, %v4769_v44  ;;  %v4367_v3 = vmax.f32 %v4303_v43, 0.0  ;;  %v4772_v14 = vsel %vm4745_vm1, %v4682_v35, %v4771_v32  ;;  %v2693_v12 = vrot.slane %v9141_v48, 1 }
 0x3e2   :  { %v4646_v52 = vadd.f32 %v4645_v16, %v4644_v54  ;;  %5777 = vmatprep.mubr.f32.mxu1 %v4770_v38  ;;  %v4685_v26 = vadd.f32 %v4641_v13, %v9142_v19  ;;  %v4773_v56 = vsel %vm4747_vm2, %v4683_v58, %v4772_v14  ;;  %v9144_v36 = vrot.slane %v9143_v8, 4 }
 0x3e3   :  { %v4431_v37 = vmul.f32 %v4367_v3, %v9137_v51  ;;  %v4366_v63 = vmax.f32 %v4302_v31, 0.0  ;;  %v4774_v55 = vsel %vm4749_vm3, %v4684_v40, %v4773_v56  ;;  %v2694_v34 = vadd.f32 %v2693_v12, %v9141_v48 }
 0x3e4   :  { %v2697_v53 = vadd.f32 %v9144_v36, %v9143_v8  ;;  %v4647_v27 = vrot.slane %v4646_v52, 1  ;;  %v4775_v35 = vsel %vm4751_vm4, %v4685_v26, %v4774_v55 }
 0x3e5   :  { %v4430_v59 = vmul.f32 %v4366_v63, %v9140_v20 }
 0x3e6   :  { %v4648_v29 = vadd.f32 %v4647_v27, %v4646_v52  ;;  %v2698_v6 = vrot.slane %v2697_v53, 2 }
 0x3e7   :  { %v4649_v1 = vadd.f32 %v4431_v37, %v4430_v59 }
 0x3e8   :  { %v4686_v30 = vadd.f32 %v4648_v29, %v2694_v34  ;;  %v2699_v11 = vadd.f32 %v2698_v6, %v2697_v53 }
 0x3e9   :  { %v4650_v50 = vrot.slane %v4649_v1, 4 }
 0x3ea   :  { %v4776_v58 = vsel %vm4753_vm5, %v4686_v30, %v4775_v35  ;;  %v2700_v45 = vrot.slane %v2699_v11, 1 }
 0x3eb   :  { %v4651_v61 = vadd.f32 %v4650_v50, %v4649_v1 }
 0x3ec   :  { %v2701_v33 = vadd.f32 %v2700_v45, %v2699_v11 }
 0x3ed   :  { %v4652_v22 = vrot.slane %v4651_v61, 2 }
 0x3ef   :  { %v4653_v21 = vadd.f32 %v4652_v22, %v4651_v61 }
 0x3f1   :  { %v4654_v49 = vrot.slane %v4653_v21, 1 }
 0x3f3   :  { %v4655_v24 = vadd.f32 %v4654_v49, %v4653_v21 }
 0x3f5   :  { %v4687_v47 = vadd.f32 %v4655_v24, %v2701_v33 }
 0x3f7   :  { %v4777_v25 = vsel %vm4755_vm6, %v4687_v47, %v4776_v58 }
 0x3f8   :  { %5778 = vmatmul.mubr.f32.vlgmr.msra.gmra.mrb[128].mxu1 %v4777_v25 }
 0x48e   :  { %v5776_v60 = vpop.f32.mrb[128].mxu0 }
 0x48f   :  { %v4854_v39 = vadd.f32 %v5776_v60, %v4889_v18  ;;  %v4848_v0 = vpop.f32.mrb[129].mxu0 }
 0x490   :  { %v4849_v2 = vadd.f32 %v4889_v18, %v4848_v0 }
 0x491   :  { %4868 = vst [vmem:[#allocation5 + $0x8] sm:$0xff] %v4854_v39 }
 0x492   :  { %4867 = vst [vmem:[#allocation5] sm:$0xff] %v4849_v2 }
 0x4cb   :  { %v5779_v15 = vpop.f32.mrb[128].mxu1 }
 0x4cc   :  { %v4864_v28 = vadd.f32 %v5779_v15, %v4889_v18  ;;  %v4858_v41 = vpop.f32.mrb[129].mxu1 }
 0x4cd   :  { %v4859_v10 = vadd.f32 %v4889_v18, %v4858_v41 }
 0x4ce   :  { %4870 = vst [vmem:[#allocation5 + $0x18] sm:$0xff] %v4864_v28 }
 0x4cf   :  { %4869 = vst [vmem:[#allocation5 + $0x10] sm:$0xff] %v4859_v10 }
 0x4d0   :  { %5997 = shalt.err (!%p5994_p12)
}
 0x4d1   :  { %s5998_s24 = scalar_lea.hbm %s8538_s6, 512 }
 0x4d2   :  { %p5999_p13 = scmp.ne.s32.totalorder %s8538_s6, %s5998_s24  ;;  %p6002_p0 = scmp.lt.u32.totalorder %s5998_s24, %s8538_s6 }
 0x4d4   :  { %p6004_p1 = pnand %p6002_p0, %p5999_p13 }
 0x4d6   :  { %6007 = shalt.err (!%p6004_p1)
}
 0x4d7   :  { %4882 = dma.vmem_to_hbm [thread:$0]  %s4877_s21, 512, %s8538_s6, [#allocation4], %s6013_s7, %s6013_s7, %s6014_s8  }
 0x4d8   :  { %6010 = dma.done.wait [#allocation4], 512  }
 0x4d9   :  { %6011 = vsyncadd [#allocation4], 4294966784 }
 0x4da   :  { %4886 = vsyncpa [#allocation3], 1 }
 0x4db   :  { %4887 = vsyncpa [#allocation4], 1 }

</bundles_post_ra>
